<compile_context>
chip_gen: v7x
topology: tpu7x:2x2x1
jax: 0.10.0
libtpu: 0.0.40
codegen_flags: <defaults>
</compile_context>

<pallas_src>
import numpy as np
import jax
import jax.numpy as jnp
from jax.experimental import pallas as pl
from jax.experimental.pallas import tpu as pltpu

EPS = 1e-5
NEG_BIG = -1e30          # mask value for padded logit lanes (exp underflows to 0)

# Static network geometry (from the PyTorch module).
IMG = 40                 # input image height/width
K1, C1 = 5, 10           # conv1 kernel / out channels
H1 = IMG - K1 + 1        # 36  conv1 output spatial size
P1 = H1 // 2             # 18  pooled size after block 1
L1 = H1 * C1             # 360 conv1 matmul output lanes, index = wo*10 + c
L1P = L1 - C1            # 350 lanes kept after the w-pool slice

K2, C2 = 5, 15           # conv2 kernel / out channels
C2L = 16                 # lanes per wo2 group (15 channels padded to 16)
H2 = P1 - K2 + 1         # 14  conv2 output spatial size
P2 = H2 // 2             # 7   pooled size after block 2
KIN2 = P1 * C1           # 180 conv2 contraction lanes, index = w1*10 + c1
L2 = H2 * C2L            # 224 conv2 matmul output lanes, index = wo2*16 + c2
L2P = L2 - C2L           # 208 lanes kept after the w-pool slice

DH, DHP = 300, 384       # hidden size / padded hidden
DO, DOP = 27, 128        # logits / padded logits


def _round_up(x, m):
    return (x + m - 1) // m * m


def _cdiv(a, b):
    return -(-a // b)


def _batch_tile(n, target):
    """Batch tile (16-aligned when tiling) and grid size for n images."""
    if n <= target:
        return n, 1
    tb = min(target, _round_up(_cdiv(n, 2), 16))
    return tb, _cdiv(n, tb)


# ---------------------------------------------------------------------------
# Pallas kernels
# ---------------------------------------------------------------------------
def conv1_block_kernel(x_ref, w_ref, shift_ref, o_ref):
    """conv1 + BN(eval) + ReLU + 2x2 maxpool for a tile of TB images.

    x_ref:     (TB, 40, 40) f32  raw images
    w_ref:     (5, 40, 360) bf16 banded conv1 weights (BN scale folded in)
    shift_ref: (1, 350)     f32  (conv_bias - mean)*scale + beta, tiled per wo
    o_ref:     (TB*40, 350) bf16 pooled activations; valid at even rows/wo
    """
    tb = x_ref.shape[0]
    rows = tb * IMG
    r = rows - (K1 - 1)                      # valid matmul rows
    x2 = x_ref[...].reshape(rows, IMG).astype(jnp.bfloat16)

    # y[(n, ho), wo*10 + c] = scale1[c] * conv1_nobias[n, c, ho, wo]
    acc = jnp.dot(x2[0:r], w_ref[0], preferred_element_type=jnp.float32)
    for kh in range(1, K1):
        acc = acc + jnp.dot(x2[kh:kh + r], w_ref[kh],
                            preferred_element_type=jnp.float32)

    # 2x2 max-pool BEFORE shift+ReLU (commutes; 4x fewer elementwise elements)
    ph = jnp.maximum(acc[0:r - 1], acc[1:r])          # rows:  max(ho, ho+1)
    pw = jnp.maximum(ph[:, 0:L1P], ph[:, C1:L1])      # lanes: max(wo, wo+1)
    act = jnp.maximum(pw + shift_ref[...], 0.0)       # BN shift + ReLU once
    o_ref[0:r - 1, :] = act.astype(o_ref.dtype)


def conv2_mlp_kernel(a_ref, w2_ref, shift2_ref, w1_ref, b1_ref,
                     wo_ref, bo_ref, o_ref):
    """conv2 block + Linear(735->300) + ReLU + Linear(300->27) + LogSoftmax.

    a_ref:      (18, TB, 180) bf16 pooled conv1 activations, rows=(row, batch)
    w2_ref:     (5, 180, 224) bf16 banded conv2 weights (BN scale folded in)
    shift2_ref: (1, 208)      f32
    w1_ref:     (7, 208, 384) bf16 lin1 weights grouped per pooled row
    b1_ref:     (1, 384)      f32
    wo_ref:     (384, 128)    bf16 lin2 weights (padded)
    bo_ref:     (1, 128)      f32  (padded lanes = -1e30)
    o_ref:      (TB, 128)     f32  log-probabilities
    """
    tb = a_ref.shape[1]
    x2 = a_ref[...].reshape(P1 * tb, KIN2)            # rows = (i, n)
    r = H2 * tb                                       # valid conv2 rows

    # y[(ho2, n), wo2*16 + c2] = scale2[c2] * conv2_nobias[n, c2, ho2, wo2]
    acc = jnp.dot(x2[0:r], w2_ref[0], preferred_element_type=jnp.float32)
    for kh in range(1, K2):
        acc = acc + jnp.dot(x2[kh * tb: kh * tb + r], w2_ref[kh],
                            preferred_element_type=jnp.float32)

    mh = jnp.maximum(acc[0:r - tb], acc[tb:r])        # pool over ho2
    pw = jnp.maximum(mh[:, 0:L2P], mh[:, C2L:L2])     # pool over wo2

    # lin1 as a sum over the 7 pooled rows (no flatten/transpose needed).
    lin1 = jnp.zeros((tb, DHP), jnp.float32)
    for h in range(P2):
        p = pw[2 * h * tb: (2 * h + 1) * tb, :]
        pa = jnp.maximum(p + shift2_ref[...], 0.0).astype(jnp.bfloat16)
        lin1 = lin1 + jnp.dot(pa, w1_ref[h], preferred_element_type=jnp.float32)

    hid = jnp.maximum(lin1 + b1_ref[...], 0.0).astype(jnp.bfloat16)
    logits = jnp.dot(hid, wo_ref[...],
                     preferred_element_type=jnp.float32) + bo_ref[...]
    m = jnp.max(logits, axis=-1, keepdims=True)
    lse = jnp.log(jnp.sum(jnp.exp(logits - m), axis=-1, keepdims=True)) + m
    o_ref[...] = logits - lse


# ---------------------------------------------------------------------------
# Parameter preparation (runs once, outside the jitted forward)
# ---------------------------------------------------------------------------
def _banded_conv1(w_oihw, scale):
    """(5, 40, 360): B[kh][w, wo*10 + c] = w[c,0,kh,w-wo]*scale[c]."""
    w = np.asarray(w_oihw, np.float32) * np.asarray(scale, np.float32)[:, None, None, None]
    b = np.zeros((K1, IMG, L1), np.float32)
    for kh in range(K1):
        for kw in range(K1):
            for wo in range(H1):
                b[kh, wo + kw, wo * C1: wo * C1 + C1] = w[:, 0, kh, kw]
    return b


def _banded_conv2(w_oihw, scale):
    """(5, 180, 224): B[kh][w1*10 + c1, wo2*16 + c2] = w[c2,c1,kh,w1-wo2]*scale[c2]."""
    w = np.asarray(w_oihw, np.float32) * np.asarray(scale, np.float32)[:, None, None, None]
    b = np.zeros((K2, KIN2, L2), np.float32)
    for kh in range(K2):
        for kw in range(K2):
            for wo in range(H2):
                w1 = wo + kw
                b[kh, w1 * C1:(w1 + 1) * C1, wo * C2L: wo * C2L + C2] = w[:, :, kh, kw].T
    return b


def _lin1_grouped(lw1):
    """(7, 208, 384): W[h][2*wp*16 + c, j] = lw1[j, c*49 + h*7 + wp]."""
    lw1 = np.asarray(lw1, np.float32)
    w = np.zeros((P2, L2P, DHP), np.float32)
    for h in range(P2):
        for wp in range(P2):
            for c in range(C2):
                w[h, 2 * wp * C2L + c, 0:DH] = lw1[:, c * (P2 * P2) + h * P2 + wp]
    return w


def prepare_params(p):
    scale1 = np.asarray(p["g1"], np.float32) / np.sqrt(np.asarray(p["v1"], np.float32) + EPS)
    shift1 = (np.asarray(p["b1"], np.float32) - np.asarray(p["m1"], np.float32)) * scale1 \
        + np.asarray(p["be1"], np.float32)
    scale2 = np.asarray(p["g2"], np.float32) / np.sqrt(np.asarray(p["v2"], np.float32) + EPS)
    shift2 = (np.asarray(p["b2"], np.float32) - np.asarray(p["m2"], np.float32)) * scale2 \
        + np.asarray(p["be2"], np.float32)

    b1w = _banded_conv1(p["w1"], scale1)
    b2w = _banded_conv2(p["w2"], scale2)
    w1g = _lin1_grouped(p["lw1"])

    shift1_row = np.tile(shift1, L1P // C1).reshape(1, L1P)
    shift2_row = np.tile(
        np.concatenate([shift2, np.zeros((C2L - C2,), np.float32)]),
        L2P // C2L).reshape(1, L2P)

    b1row = np.zeros((1, DHP), np.float32)
    b1row[0, :DH] = np.asarray(p["lb1"], np.float32)
    w2col = np.zeros((DHP, DOP), np.float32)
    w2col[:DH, :DO] = np.asarray(p["lw2"], np.float32).T
    b2row = np.full((1, DOP), NEG_BIG, np.float32)
    b2row[0, :DO] = np.asarray(p["lb2"], np.float32)

    return dict(
        b1w=jnp.asarray(b1w, jnp.bfloat16),
        shift1=jnp.asarray(shift1_row, jnp.float32),
        b2w=jnp.asarray(b2w, jnp.bfloat16),
        shift2=jnp.asarray(shift2_row, jnp.float32),
        w1g=jnp.asarray(w1g, jnp.bfloat16),
        b1row=jnp.asarray(b1row, jnp.float32),
        w2col=jnp.asarray(w2col, jnp.bfloat16),
        b2row=jnp.asarray(b2row, jnp.float32),
    )


# ---------------------------------------------------------------------------
# Wrappers around pallas_call
# ---------------------------------------------------------------------------
def conv1_block(x_nchw, pp, *, tile_imgs=16):
    n = x_nchw.shape[0]
    x3 = x_nchw.reshape(n, IMG, IMG)                  # free bitcast, (N,40,40) f32
    tb, grid = _batch_tile(n, tile_imgs)
    return pl.pallas_call(
        conv1_block_kernel,
        out_shape=jax.ShapeDtypeStruct((n * IMG, L1P), jnp.bfloat16),
        grid=(grid,),
        in_specs=[
            pl.BlockSpec((tb, IMG, IMG), lambda i: (i, 0, 0)),
            pl.BlockSpec((K1, IMG, L1), lambda i: (0, 0, 0)),
            pl.BlockSpec((1, L1P), lambda i: (0, 0)),
        ],
        out_specs=pl.BlockSpec((tb * IMG, L1P), lambda i: (i, 0)),
        compiler_params=pltpu.CompilerParams(
            dimension_semantics=("parallel",)),
    )(x3, pp["b1w"], pp["shift1"])


def _compact_pool1(a1u, n):
    """(N*40, 350) -> (18, N, 180): keep even rows / even wo groups, row-major."""
    a = a1u.reshape(n, IMG, L1P)[:, 0:H1:2, :]                    # (N,18,350)
    a = a.reshape(n, P1, H1 - 1, C1)[:, :, 0:H1 - 1:2, :]         # (N,18,18,10)
    a = a.reshape(n, P1, P1 * C1)
    return jnp.transpose(a, (1, 0, 2))                            # (18,N,180)


def conv2_mlp(a1p, pp, n, *, tile_imgs=64):
    tb, grid = _batch_tile(n, tile_imgs)
    out = pl.pallas_call(
        conv2_mlp_kernel,
        out_shape=jax.ShapeDtypeStruct((n, DOP), jnp.float32),
        grid=(grid,),
        in_specs=[
            pl.BlockSpec((P1, tb, KIN2), lambda i: (0, i, 0)),
            pl.BlockSpec((K2, KIN2, L2), lambda i: (0, 0, 0)),
            pl.BlockSpec((1, L2P), lambda i: (0, 0)),
            pl.BlockSpec((P2, L2P, DHP), lambda i: (0, 0, 0)),
            pl.BlockSpec((1, DHP), lambda i: (0, 0)),
            pl.BlockSpec((DHP, DOP), lambda i: (0, 0)),
            pl.BlockSpec((1, DOP), lambda i: (0, 0)),
        ],
        out_specs=pl.BlockSpec((tb, DOP), lambda i: (i, 0)),
        compiler_params=pltpu.CompilerParams(
            dimension_semantics=("parallel",)),
    )(a1p, pp["b2w"], pp["shift2"], pp["w1g"], pp["b1row"],
      pp["w2col"], pp["b2row"])
    return out[:, :DO]


def character_recognizer_forward(x_nchw, pp):
    # x_nchw: (N, 1, 40, 40) f32, matching the PyTorch module.
    n = x_nchw.shape[0]
    a1u = conv1_block(x_nchw, pp)          # (N*40, 350) bf16, valid at even rows/wo
    a1p = _compact_pool1(a1u, n)           # (18, N, 180) bf16
    return conv2_mlp(a1p, pp, n)           # (N, 27) f32 log-probs


# ---------------------------------------------------------------------------
# Pure-JAX reference (for correctness check)
# ---------------------------------------------------------------------------
def reference_forward(x_nchw, p):
    def conv_block_ref(x, w, b, g, be, m, v):
        y = jax.lax.conv_general_dilated(
            x, w, (1, 1), "VALID",
            dimension_numbers=("NCHW", "OIHW", "NCHW"))
        y = y + b[None, :, None, None]
        y = (y - m[None, :, None, None]) / jnp.sqrt(v[None, :, None, None] + EPS)
        y = y * g[None, :, None, None] + be[None, :, None, None]
        y = jnp.maximum(y, 0.0)
        return jax.lax.reduce_window(y, -jnp.inf, jax.lax.max,
                                     (1, 1, 2, 2), (1, 1, 2, 2), "VALID")

    y = conv_block_ref(x_nchw, p["w1"], p["b1"], p["g1"], p["be1"], p["m1"], p["v1"])
    y = conv_block_ref(y, p["w2"], p["b2"], p["g2"], p["be2"], p["m2"], p["v2"])
    y = y.reshape(y.shape[0], -1)
    h = jnp.maximum(y @ p["lw1"].T + p["lb1"], 0.0)
    logits = h @ p["lw2"].T + p["lb2"]
    return jax.nn.log_softmax(logits, axis=1)


# ---------------------------------------------------------------------------
# Deterministic parameter init (synthetic; module's __init__ gives the shapes)
# ---------------------------------------------------------------------------
def init_params(key):
    ks = jax.random.split(key, 16)
    f32 = jnp.float32
    p = {}
    p["w1"] = 0.10 * jax.random.normal(ks[0], (10, 1, 5, 5), f32)
    p["b1"] = 0.10 * jax.random.normal(ks[1], (10,), f32)
    p["g1"] = 1.0 + 0.10 * jax.random.normal(ks[2], (10,), f32)
    p["be1"] = 0.10 * jax.random.normal(ks[3], (10,), f32)
    p["m1"] = 0.10 * jax.random.normal(ks[4], (10,), f32)
    p["v1"] = jax.random.uniform(ks[5], (10,), f32, 0.5, 1.5)
    p["w2"] = 0.05 * jax.random.normal(ks[6], (15, 10, 5, 5), f32)
    p["b2"] = 0.10 * jax.random.normal(ks[7], (15,), f32)
    p["g2"] = 1.0 + 0.10 * jax.random.normal(ks[8], (15,), f32)
    p["be2"] = 0.10 * jax.random.normal(ks[9], (15,), f32)
    p["m2"] = 0.10 * jax.random.normal(ks[10], (15,), f32)
    p["v2"] = jax.random.uniform(ks[11], (15,), f32, 0.5, 1.5)
    p["lw1"] = 0.05 * jax.random.normal(ks[12], (300, 7 * 7 * 15), f32)
    p["lb1"] = 0.05 * jax.random.normal(ks[13], (300,), f32)
    p["lw2"] = 0.05 * jax.random.normal(ks[14], (27, 300), f32)
    p["lb2"] = 0.05 * jax.random.normal(ks[15], (27,), f32)
    return p


if __name__ == "__main__":
    key = jax.random.PRNGKey(0)
    k_params, k_x = jax.random.split(key)
    params = init_params(k_params)

    # Forward requires 40x40 single-channel inputs (flatten to 7*7*15 only then).
    x = jax.random.normal(k_x, (2, 1, 40, 40), jnp.float32)

    prepped = prepare_params(params)          # one-time, outside jit
    fwd = jax.jit(lambda inp: character_recognizer_forward(inp, prepped))
    out = jax.block_until_ready(fwd(x))

    assert out.shape == (2, 27) and out.dtype == jnp.float32

    ref = jax.block_until_ready(reference_forward(x, params))
    if not jnp.allclose(out, ref, atol=5e-2, rtol=5e-2):
        raise AssertionError(
            f"Pallas output mismatch vs reference; max abs diff = "
            f"{float(jnp.max(jnp.abs(out - ref)))}")
    # log-softmax rows must exponentiate-sum to 1
    if not jnp.allclose(jnp.exp(out).sum(axis=1), 1.0, atol=1e-3):
        raise AssertionError("log_softmax rows do not normalize")

    print("KERNEL_OK")
</pallas_src>

<mosaic_0001>
module attributes {stable_mosaic.version = 11 : i64} {
  func.func @conv1_block_kernel(%arg0: i32, %arg1: memref<2x40x40xf32, #tpu.memory_space<vmem>>, %arg2: memref<5x40x360xbf16, #tpu.memory_space<vmem>>, %arg3: memref<1x350xf32, #tpu.memory_space<vmem>>, %arg4: memref<80x350xbf16, #tpu.memory_space<vmem>>) attributes {dimension_semantics = [#tpu.dimension_semantics<parallel>], iteration_bounds = array<i64: 1>, scalar_prefetch = 0 : i64, scratch_operands = 0 : i64, tpu.core_type = #tpu.core_type<tc>, window_params = [{transform_indices = @transform_0, window_bounds = array<i64: 2, 40, 40>}, {pipeline_mode = #tpu.pipeline_mode<synchronous>, transform_indices = @transform_1, window_bounds = array<i64: 5, 40, 360>}, {pipeline_mode = #tpu.pipeline_mode<synchronous>, transform_indices = @transform_2, window_bounds = array<i64: 1, 350>}, {transform_indices = @transform_3, window_bounds = array<i64: 80, 350>}]} {
    %c0 = arith.constant 0 : index
    %c0_0 = arith.constant 0 : index
    %c0_1 = arith.constant 0 : index
    %0 = vector.load %arg1[%c0, %c0_0, %c0_1] : memref<2x40x40xf32, #tpu.memory_space<vmem>>, vector<2x40x40xf32>
    %1 = vector.shape_cast %0 : vector<2x40x40xf32> to vector<80x40xf32>
    %2 = arith.truncf %1 : vector<80x40xf32> to vector<80x40xbf16>
    %3 = vector.extract_strided_slice %2 {offsets = [0, 0], sizes = [76, 40], strides = [1, 1]} : vector<80x40xbf16> to vector<76x40xbf16>
    %c0_2 = arith.constant 0 : index
    %c0_3 = arith.constant 0 : index
    %c0_4 = arith.constant 0 : index
    %4 = vector.load %arg2[%c0_2, %c0_3, %c0_4] : memref<5x40x360xbf16, #tpu.memory_space<vmem>>, vector<1x40x360xbf16>
    %5 = vector.shape_cast %4 : vector<1x40x360xbf16> to vector<40x360xbf16>
    %cst = arith.constant dense<0.000000e+00> : vector<76x360xf32>
    %6 = tpu.matmul %3, %5, %cst {dimension_numbers = #tpu.dot_dimension_numbers<[1], [0], [0], [1], [0, 0, 1, 1], [], []>} : vector<76x40xbf16>, vector<40x360xbf16>, vector<76x360xf32> -> vector<76x360xf32>
    %7 = vector.extract_strided_slice %2 {offsets = [1, 0], sizes = [76, 40], strides = [1, 1]} : vector<80x40xbf16> to vector<76x40xbf16>
    %c1 = arith.constant 1 : index
    %c0_5 = arith.constant 0 : index
    %c0_6 = arith.constant 0 : index
    %8 = vector.load %arg2[%c1, %c0_5, %c0_6] : memref<5x40x360xbf16, #tpu.memory_space<vmem>>, vector<1x40x360xbf16>
    %9 = vector.shape_cast %8 : vector<1x40x360xbf16> to vector<40x360xbf16>
    %cst_7 = arith.constant dense<0.000000e+00> : vector<76x360xf32>
    %10 = tpu.matmul %7, %9, %cst_7 {dimension_numbers = #tpu.dot_dimension_numbers<[1], [0], [0], [1], [0, 0, 1, 1], [], []>} : vector<76x40xbf16>, vector<40x360xbf16>, vector<76x360xf32> -> vector<76x360xf32>
    %11 = arith.addf %6, %10 : vector<76x360xf32>
    %12 = vector.extract_strided_slice %2 {offsets = [2, 0], sizes = [76, 40], strides = [1, 1]} : vector<80x40xbf16> to vector<76x40xbf16>
    %c2 = arith.constant 2 : index
    %c0_8 = arith.constant 0 : index
    %c0_9 = arith.constant 0 : index
    %13 = vector.load %arg2[%c2, %c0_8, %c0_9] : memref<5x40x360xbf16, #tpu.memory_space<vmem>>, vector<1x40x360xbf16>
    %14 = vector.shape_cast %13 : vector<1x40x360xbf16> to vector<40x360xbf16>
    %cst_10 = arith.constant dense<0.000000e+00> : vector<76x360xf32>
    %15 = tpu.matmul %12, %14, %cst_10 {dimension_numbers = #tpu.dot_dimension_numbers<[1], [0], [0], [1], [0, 0, 1, 1], [], []>} : vector<76x40xbf16>, vector<40x360xbf16>, vector<76x360xf32> -> vector<76x360xf32>
    %16 = arith.addf %11, %15 : vector<76x360xf32>
    %17 = vector.extract_strided_slice %2 {offsets = [3, 0], sizes = [76, 40], strides = [1, 1]} : vector<80x40xbf16> to vector<76x40xbf16>
    %c3 = arith.constant 3 : index
    %c0_11 = arith.constant 0 : index
    %c0_12 = arith.constant 0 : index
    %18 = vector.load %arg2[%c3, %c0_11, %c0_12] : memref<5x40x360xbf16, #tpu.memory_space<vmem>>, vector<1x40x360xbf16>
    %19 = vector.shape_cast %18 : vector<1x40x360xbf16> to vector<40x360xbf16>
    %cst_13 = arith.constant dense<0.000000e+00> : vector<76x360xf32>
    %20 = tpu.matmul %17, %19, %cst_13 {dimension_numbers = #tpu.dot_dimension_numbers<[1], [0], [0], [1], [0, 0, 1, 1], [], []>} : vector<76x40xbf16>, vector<40x360xbf16>, vector<76x360xf32> -> vector<76x360xf32>
    %21 = arith.addf %16, %20 : vector<76x360xf32>
    %22 = vector.extract_strided_slice %2 {offsets = [4, 0], sizes = [76, 40], strides = [1, 1]} : vector<80x40xbf16> to vector<76x40xbf16>
    %c4 = arith.constant 4 : index
    %c0_14 = arith.constant 0 : index
    %c0_15 = arith.constant 0 : index
    %23 = vector.load %arg2[%c4, %c0_14, %c0_15] : memref<5x40x360xbf16, #tpu.memory_space<vmem>>, vector<1x40x360xbf16>
    %24 = vector.shape_cast %23 : vector<1x40x360xbf16> to vector<40x360xbf16>
    %cst_16 = arith.constant dense<0.000000e+00> : vector<76x360xf32>
    %25 = tpu.matmul %22, %24, %cst_16 {dimension_numbers = #tpu.dot_dimension_numbers<[1], [0], [0], [1], [0, 0, 1, 1], [], []>} : vector<76x40xbf16>, vector<40x360xbf16>, vector<76x360xf32> -> vector<76x360xf32>
    %26 = arith.addf %21, %25 : vector<76x360xf32>
    %27 = vector.extract_strided_slice %26 {offsets = [0, 0], sizes = [75, 360], strides = [1, 1]} : vector<76x360xf32> to vector<75x360xf32>
    %28 = vector.extract_strided_slice %26 {offsets = [1, 0], sizes = [75, 360], strides = [1, 1]} : vector<76x360xf32> to vector<75x360xf32>
    %29 = arith.maximumf %27, %28 : vector<75x360xf32>
    %30 = vector.extract_strided_slice %29 {offsets = [0, 0], sizes = [75, 350], strides = [1, 1]} : vector<75x360xf32> to vector<75x350xf32>
    %31 = vector.extract_strided_slice %29 {offsets = [0, 10], sizes = [75, 350], strides = [1, 1]} : vector<75x360xf32> to vector<75x350xf32>
    %32 = arith.maximumf %30, %31 : vector<75x350xf32>
    %c0_17 = arith.constant 0 : index
    %c0_18 = arith.constant 0 : index
    %33 = vector.load %arg3[%c0_17, %c0_18] : memref<1x350xf32, #tpu.memory_space<vmem>>, vector<1x350xf32>
    %34 = vector.broadcast %33 : vector<1x350xf32> to vector<75x350xf32>
    %35 = arith.addf %32, %34 : vector<75x350xf32>
    %cst_19 = arith.constant 0.000000e+00 : f32
    %36 = vector.broadcast %cst_19 : f32 to vector<75x350xf32>
    %37 = arith.maximumf %35, %36 : vector<75x350xf32>
    %38 = arith.truncf %37 : vector<75x350xf32> to vector<75x350xbf16>
    %c0_20 = arith.constant 0 : index
    %c0_21 = arith.constant 0 : index
    %39 = vector.load %arg4[%c0_20, %c0_21] : memref<80x350xbf16, #tpu.memory_space<vmem>>, vector<75x350xbf16>
    tpu.vector_store %arg4[%c0_20, %c0_21], %38 {strides = array<i32>} : memref<80x350xbf16, #tpu.memory_space<vmem>>, vector<75x350xbf16>,
    return
  }
  func.func @transform_0(%arg0: i32) -> (i32, i32, i32) {
    %c0_i32 = arith.constant 0 : i32
    %c0_i32_0 = arith.constant 0 : i32
    %c0_i32_1 = arith.constant 0 : i32
    return %arg0, %c0_i32, %c0_i32_0 : i32, i32, i32
  }
  func.func @transform_1(%arg0: i32) -> (i32, i32, i32) {
    %c0_i32 = arith.constant 0 : i32
    %c0_i32_0 = arith.constant 0 : i32
    %c0_i32_1 = arith.constant 0 : i32
    %c0_i32_2 = arith.constant 0 : i32
    return %c0_i32, %c0_i32_0, %c0_i32_1 : i32, i32, i32
  }
  func.func @transform_2(%arg0: i32) -> (i32, i32) {
    %c0_i32 = arith.constant 0 : i32
    %c0_i32_0 = arith.constant 0 : i32
    %c0_i32_1 = arith.constant 0 : i32
    return %c0_i32, %c0_i32_0 : i32, i32
  }
  func.func @transform_3(%arg0: i32) -> (i32, i32) {
    %c0_i32 = arith.constant 0 : i32
    %c0_i32_0 = arith.constant 0 : i32
    return %arg0, %c0_i32 : i32, i32
  }
}

module attributes {stable_mosaic.version = 11 : i64} {
  func.func @conv2_mlp_kernel(%arg0: i32, %arg1: memref<18x2x180xbf16, #tpu.memory_space<vmem>>, %arg2: memref<5x180x224xbf16, #tpu.memory_space<vmem>>, %arg3: memref<1x208xf32, #tpu.memory_space<vmem>>, %arg4: memref<7x208x384xbf16, #tpu.memory_space<vmem>>, %arg5: memref<1x384xf32, #tpu.memory_space<vmem>>, %arg6: memref<384x128xbf16, #tpu.memory_space<vmem>>, %arg7: memref<1x128xf32, #tpu.memory_space<vmem>>, %arg8: memref<2x128xf32, #tpu.memory_space<vmem>>) attributes {dimension_semantics = [#tpu.dimension_semantics<parallel>], iteration_bounds = array<i64: 1>, scalar_prefetch = 0 : i64, scratch_operands = 0 : i64, tpu.core_type = #tpu.core_type<tc>, window_params = [{transform_indices = @transform_0, window_bounds = array<i64: 18, 2, 180>}, {pipeline_mode = #tpu.pipeline_mode<synchronous>, transform_indices = @transform_1, window_bounds = array<i64: 5, 180, 224>}, {pipeline_mode = #tpu.pipeline_mode<synchronous>, transform_indices = @transform_2, window_bounds = array<i64: 1, 208>}, {pipeline_mode = #tpu.pipeline_mode<synchronous>, transform_indices = @transform_3, window_bounds = array<i64: 7, 208, 384>}, {pipeline_mode = #tpu.pipeline_mode<synchronous>, transform_indices = @transform_4, window_bounds = array<i64: 1, 384>}, {pipeline_mode = #tpu.pipeline_mode<synchronous>, transform_indices = @transform_5, window_bounds = array<i64: 384, 128>}, {pipeline_mode = #tpu.pipeline_mode<synchronous>, transform_indices = @transform_6, window_bounds = array<i64: 1, 128>}, {transform_indices = @transform_7, window_bounds = array<i64: 2, 128>}]} {
    %c0 = arith.constant 0 : index
    %c0_0 = arith.constant 0 : index
    %c0_1 = arith.constant 0 : index
    %0 = vector.load %arg1[%c0, %c0_0, %c0_1] : memref<18x2x180xbf16, #tpu.memory_space<vmem>>, vector<18x2x180xbf16>
    %1 = vector.shape_cast %0 : vector<18x2x180xbf16> to vector<36x180xbf16>
    %2 = vector.extract_strided_slice %1 {offsets = [0, 0], sizes = [28, 180], strides = [1, 1]} : vector<36x180xbf16> to vector<28x180xbf16>
    %c0_2 = arith.constant 0 : index
    %c0_3 = arith.constant 0 : index
    %c0_4 = arith.constant 0 : index
    %3 = vector.load %arg2[%c0_2, %c0_3, %c0_4] : memref<5x180x224xbf16, #tpu.memory_space<vmem>>, vector<1x180x224xbf16>
    %4 = vector.shape_cast %3 : vector<1x180x224xbf16> to vector<180x224xbf16>
    %cst = arith.constant dense<0.000000e+00> : vector<28x224xf32>
    %5 = tpu.matmul %2, %4, %cst {dimension_numbers = #tpu.dot_dimension_numbers<[1], [0], [0], [1], [0, 0, 1, 1], [], []>} : vector<28x180xbf16>, vector<180x224xbf16>, vector<28x224xf32> -> vector<28x224xf32>
    %6 = vector.extract_strided_slice %1 {offsets = [2, 0], sizes = [28, 180], strides = [1, 1]} : vector<36x180xbf16> to vector<28x180xbf16>
    %c1 = arith.constant 1 : index
    %c0_5 = arith.constant 0 : index
    %c0_6 = arith.constant 0 : index
    %7 = vector.load %arg2[%c1, %c0_5, %c0_6] : memref<5x180x224xbf16, #tpu.memory_space<vmem>>, vector<1x180x224xbf16>
    %8 = vector.shape_cast %7 : vector<1x180x224xbf16> to vector<180x224xbf16>
    %cst_7 = arith.constant dense<0.000000e+00> : vector<28x224xf32>
    %9 = tpu.matmul %6, %8, %cst_7 {dimension_numbers = #tpu.dot_dimension_numbers<[1], [0], [0], [1], [0, 0, 1, 1], [], []>} : vector<28x180xbf16>, vector<180x224xbf16>, vector<28x224xf32> -> vector<28x224xf32>
    %10 = arith.addf %5, %9 : vector<28x224xf32>
    %11 = vector.extract_strided_slice %1 {offsets = [4, 0], sizes = [28, 180], strides = [1, 1]} : vector<36x180xbf16> to vector<28x180xbf16>
    %c2 = arith.constant 2 : index
    %c0_8 = arith.constant 0 : index
    %c0_9 = arith.constant 0 : index
    %12 = vector.load %arg2[%c2, %c0_8, %c0_9] : memref<5x180x224xbf16, #tpu.memory_space<vmem>>, vector<1x180x224xbf16>
    %13 = vector.shape_cast %12 : vector<1x180x224xbf16> to vector<180x224xbf16>
    %cst_10 = arith.constant dense<0.000000e+00> : vector<28x224xf32>
    %14 = tpu.matmul %11, %13, %cst_10 {dimension_numbers = #tpu.dot_dimension_numbers<[1], [0], [0], [1], [0, 0, 1, 1], [], []>} : vector<28x180xbf16>, vector<180x224xbf16>, vector<28x224xf32> -> vector<28x224xf32>
    %15 = arith.addf %10, %14 : vector<28x224xf32>
    %16 = vector.extract_strided_slice %1 {offsets = [6, 0], sizes = [28, 180], strides = [1, 1]} : vector<36x180xbf16> to vector<28x180xbf16>
    %c3 = arith.constant 3 : index
    %c0_11 = arith.constant 0 : index
    %c0_12 = arith.constant 0 : index
    %17 = vector.load %arg2[%c3, %c0_11, %c0_12] : memref<5x180x224xbf16, #tpu.memory_space<vmem>>, vector<1x180x224xbf16>
    %18 = vector.shape_cast %17 : vector<1x180x224xbf16> to vector<180x224xbf16>
    %cst_13 = arith.constant dense<0.000000e+00> : vector<28x224xf32>
    %19 = tpu.matmul %16, %18, %cst_13 {dimension_numbers = #tpu.dot_dimension_numbers<[1], [0], [0], [1], [0, 0, 1, 1], [], []>} : vector<28x180xbf16>, vector<180x224xbf16>, vector<28x224xf32> -> vector<28x224xf32>
    %20 = arith.addf %15, %19 : vector<28x224xf32>
    %21 = vector.extract_strided_slice %1 {offsets = [8, 0], sizes = [28, 180], strides = [1, 1]} : vector<36x180xbf16> to vector<28x180xbf16>
    %c4 = arith.constant 4 : index
    %c0_14 = arith.constant 0 : index
    %c0_15 = arith.constant 0 : index
    %22 = vector.load %arg2[%c4, %c0_14, %c0_15] : memref<5x180x224xbf16, #tpu.memory_space<vmem>>, vector<1x180x224xbf16>
    %23 = vector.shape_cast %22 : vector<1x180x224xbf16> to vector<180x224xbf16>
    %cst_16 = arith.constant dense<0.000000e+00> : vector<28x224xf32>
    %24 = tpu.matmul %21, %23, %cst_16 {dimension_numbers = #tpu.dot_dimension_numbers<[1], [0], [0], [1], [0, 0, 1, 1], [], []>} : vector<28x180xbf16>, vector<180x224xbf16>, vector<28x224xf32> -> vector<28x224xf32>
    %25 = arith.addf %20, %24 : vector<28x224xf32>
    %26 = vector.extract_strided_slice %25 {offsets = [0, 0], sizes = [26, 224], strides = [1, 1]} : vector<28x224xf32> to vector<26x224xf32>
    %27 = vector.extract_strided_slice %25 {offsets = [2, 0], sizes = [26, 224], strides = [1, 1]} : vector<28x224xf32> to vector<26x224xf32>
    %28 = arith.maximumf %26, %27 : vector<26x224xf32>
    %29 = vector.extract_strided_slice %28 {offsets = [0, 0], sizes = [26, 208], strides = [1, 1]} : vector<26x224xf32> to vector<26x208xf32>
    %30 = vector.extract_strided_slice %28 {offsets = [0, 16], sizes = [26, 208], strides = [1, 1]} : vector<26x224xf32> to vector<26x208xf32>
    %31 = arith.maximumf %29, %30 : vector<26x208xf32>
    %cst_17 = arith.constant 0.000000e+00 : f32
    %32 = vector.broadcast %cst_17 : f32 to vector<2x384xf32>
    %33 = vector.extract_strided_slice %31 {offsets = [0, 0], sizes = [2, 208], strides = [1, 1]} : vector<26x208xf32> to vector<2x208xf32>
    %c0_18 = arith.constant 0 : index
    %c0_19 = arith.constant 0 : index
    %34 = vector.load %arg3[%c0_18, %c0_19] : memref<1x208xf32, #tpu.memory_space<vmem>>, vector<1x208xf32>
    %35 = vector.broadcast %34 : vector<1x208xf32> to vector<2x208xf32>
    %36 = arith.addf %33, %35 : vector<2x208xf32>
    %cst_20 = arith.constant 0.000000e+00 : f32
    %37 = vector.broadcast %cst_20 : f32 to vector<2x208xf32>
    %38 = arith.maximumf %36, %37 : vector<2x208xf32>
    %39 = arith.truncf %38 : vector<2x208xf32> to vector<2x208xbf16>
    %c0_21 = arith.constant 0 : index
    %c0_22 = arith.constant 0 : index
    %c0_23 = arith.constant 0 : index
    %40 = vector.load %arg4[%c0_21, %c0_22, %c0_23] : memref<7x208x384xbf16, #tpu.memory_space<vmem>>, vector<1x208x384xbf16>
    %41 = vector.shape_cast %40 : vector<1x208x384xbf16> to vector<208x384xbf16>
    %cst_24 = arith.constant dense<0.000000e+00> : vector<2x384xf32>
    %42 = tpu.matmul %39, %41, %cst_24 {dimension_numbers = #tpu.dot_dimension_numbers<[1], [0], [0], [1], [0, 0, 1, 1], [], []>} : vector<2x208xbf16>, vector<208x384xbf16>, vector<2x384xf32> -> vector<2x384xf32>
    %43 = arith.addf %32, %42 : vector<2x384xf32>
    %44 = vector.extract_strided_slice %31 {offsets = [4, 0], sizes = [2, 208], strides = [1, 1]} : vector<26x208xf32> to vector<2x208xf32>
    %c0_25 = arith.constant 0 : index
    %c0_26 = arith.constant 0 : index
    %45 = vector.load %arg3[%c0_25, %c0_26] : memref<1x208xf32, #tpu.memory_space<vmem>>, vector<1x208xf32>
    %46 = vector.broadcast %45 : vector<1x208xf32> to vector<2x208xf32>
    %47 = arith.addf %44, %46 : vector<2x208xf32>
    %cst_27 = arith.constant 0.000000e+00 : f32
    %48 = vector.broadcast %cst_27 : f32 to vector<2x208xf32>
    %49 = arith.maximumf %47, %48 : vector<2x208xf32>
    %50 = arith.truncf %49 : vector<2x208xf32> to vector<2x208xbf16>
    %c1_28 = arith.constant 1 : index
    %c0_29 = arith.constant 0 : index
    %c0_30 = arith.constant 0 : index
    %51 = vector.load %arg4[%c1_28, %c0_29, %c0_30] : memref<7x208x384xbf16, #tpu.memory_space<vmem>>, vector<1x208x384xbf16>
    %52 = vector.shape_cast %51 : vector<1x208x384xbf16> to vector<208x384xbf16>
    %cst_31 = arith.constant dense<0.000000e+00> : vector<2x384xf32>
    %53 = tpu.matmul %50, %52, %cst_31 {dimension_numbers = #tpu.dot_dimension_numbers<[1], [0], [0], [1], [0, 0, 1, 1], [], []>} : vector<2x208xbf16>, vector<208x384xbf16>, vector<2x384xf32> -> vector<2x384xf32>
    %54 = arith.addf %43, %53 : vector<2x384xf32>
    %55 = vector.extract_strided_slice %31 {offsets = [8, 0], sizes = [2, 208], strides = [1, 1]} : vector<26x208xf32> to vector<2x208xf32>
    %c0_32 = arith.constant 0 : index
    %c0_33 = arith.constant 0 : index
    %56 = vector.load %arg3[%c0_32, %c0_33] : memref<1x208xf32, #tpu.memory_space<vmem>>, vector<1x208xf32>
    %57 = vector.broadcast %56 : vector<1x208xf32> to vector<2x208xf32>
    %58 = arith.addf %55, %57 : vector<2x208xf32>
    %cst_34 = arith.constant 0.000000e+00 : f32
    %59 = vector.broadcast %cst_34 : f32 to vector<2x208xf32>
    %60 = arith.maximumf %58, %59 : vector<2x208xf32>
    %61 = arith.truncf %60 : vector<2x208xf32> to vector<2x208xbf16>
    %c2_35 = arith.constant 2 : index
    %c0_36 = arith.constant 0 : index
    %c0_37 = arith.constant 0 : index
    %62 = vector.load %arg4[%c2_35, %c0_36, %c0_37] : memref<7x208x384xbf16, #tpu.memory_space<vmem>>, vector<1x208x384xbf16>
    %63 = vector.shape_cast %62 : vector<1x208x384xbf16> to vector<208x384xbf16>
    %cst_38 = arith.constant dense<0.000000e+00> : vector<2x384xf32>
    %64 = tpu.matmul %61, %63, %cst_38 {dimension_numbers = #tpu.dot_dimension_numbers<[1], [0], [0], [1], [0, 0, 1, 1], [], []>} : vector<2x208xbf16>, vector<208x384xbf16>, vector<2x384xf32> -> vector<2x384xf32>
    %65 = arith.addf %54, %64 : vector<2x384xf32>
    %66 = vector.extract_strided_slice %31 {offsets = [12, 0], sizes = [2, 208], strides = [1, 1]} : vector<26x208xf32> to vector<2x208xf32>
    %c0_39 = arith.constant 0 : index
    %c0_40 = arith.constant 0 : index
    %67 = vector.load %arg3[%c0_39, %c0_40] : memref<1x208xf32, #tpu.memory_space<vmem>>, vector<1x208xf32>
    %68 = vector.broadcast %67 : vector<1x208xf32> to vector<2x208xf32>
    %69 = arith.addf %66, %68 : vector<2x208xf32>
    %cst_41 = arith.constant 0.000000e+00 : f32
    %70 = vector.broadcast %cst_41 : f32 to vector<2x208xf32>
    %71 = arith.maximumf %69, %70 : vector<2x208xf32>
    %72 = arith.truncf %71 : vector<2x208xf32> to vector<2x208xbf16>
    %c3_42 = arith.constant 3 : index
    %c0_43 = arith.constant 0 : index
    %c0_44 = arith.constant 0 : index
    %73 = vector.load %arg4[%c3_42, %c0_43, %c0_44] : memref<7x208x384xbf16, #tpu.memory_space<vmem>>, vector<1x208x384xbf16>
    %74 = vector.shape_cast %73 : vector<1x208x384xbf16> to vector<208x384xbf16>
    %cst_45 = arith.constant dense<0.000000e+00> : vector<2x384xf32>
    %75 = tpu.matmul %72, %74, %cst_45 {dimension_numbers = #tpu.dot_dimension_numbers<[1], [0], [0], [1], [0, 0, 1, 1], [], []>} : vector<2x208xbf16>, vector<208x384xbf16>, vector<2x384xf32> -> vector<2x384xf32>
    %76 = arith.addf %65, %75 : vector<2x384xf32>
    %77 = vector.extract_strided_slice %31 {offsets = [16, 0], sizes = [2, 208], strides = [1, 1]} : vector<26x208xf32> to vector<2x208xf32>
    %c0_46 = arith.constant 0 : index
    %c0_47 = arith.constant 0 : index
    %78 = vector.load %arg3[%c0_46, %c0_47] : memref<1x208xf32, #tpu.memory_space<vmem>>, vector<1x208xf32>
    %79 = vector.broadcast %78 : vector<1x208xf32> to vector<2x208xf32>
    %80 = arith.addf %77, %79 : vector<2x208xf32>
    %cst_48 = arith.constant 0.000000e+00 : f32
    %81 = vector.broadcast %cst_48 : f32 to vector<2x208xf32>
    %82 = arith.maximumf %80, %81 : vector<2x208xf32>
    %83 = arith.truncf %82 : vector<2x208xf32> to vector<2x208xbf16>
    %c4_49 = arith.constant 4 : index
    %c0_50 = arith.constant 0 : index
    %c0_51 = arith.constant 0 : index
    %84 = vector.load %arg4[%c4_49, %c0_50, %c0_51] : memref<7x208x384xbf16, #tpu.memory_space<vmem>>, vector<1x208x384xbf16>
    %85 = vector.shape_cast %84 : vector<1x208x384xbf16> to vector<208x384xbf16>
    %cst_52 = arith.constant dense<0.000000e+00> : vector<2x384xf32>
    %86 = tpu.matmul %83, %85, %cst_52 {dimension_numbers = #tpu.dot_dimension_numbers<[1], [0], [0], [1], [0, 0, 1, 1], [], []>} : vector<2x208xbf16>, vector<208x384xbf16>, vector<2x384xf32> -> vector<2x384xf32>
    %87 = arith.addf %76, %86 : vector<2x384xf32>
    %88 = vector.extract_strided_slice %31 {offsets = [20, 0], sizes = [2, 208], strides = [1, 1]} : vector<26x208xf32> to vector<2x208xf32>
    %c0_53 = arith.constant 0 : index
    %c0_54 = arith.constant 0 : index
    %89 = vector.load %arg3[%c0_53, %c0_54] : memref<1x208xf32, #tpu.memory_space<vmem>>, vector<1x208xf32>
    %90 = vector.broadcast %89 : vector<1x208xf32> to vector<2x208xf32>
    %91 = arith.addf %88, %90 : vector<2x208xf32>
    %cst_55 = arith.constant 0.000000e+00 : f32
    %92 = vector.broadcast %cst_55 : f32 to vector<2x208xf32>
    %93 = arith.maximumf %91, %92 : vector<2x208xf32>
    %94 = arith.truncf %93 : vector<2x208xf32> to vector<2x208xbf16>
    %c5 = arith.constant 5 : index
    %c0_56 = arith.constant 0 : index
    %c0_57 = arith.constant 0 : index
    %95 = vector.load %arg4[%c5, %c0_56, %c0_57] : memref<7x208x384xbf16, #tpu.memory_space<vmem>>, vector<1x208x384xbf16>
    %96 = vector.shape_cast %95 : vector<1x208x384xbf16> to vector<208x384xbf16>
    %cst_58 = arith.constant dense<0.000000e+00> : vector<2x384xf32>
    %97 = tpu.matmul %94, %96, %cst_58 {dimension_numbers = #tpu.dot_dimension_numbers<[1], [0], [0], [1], [0, 0, 1, 1], [], []>} : vector<2x208xbf16>, vector<208x384xbf16>, vector<2x384xf32> -> vector<2x384xf32>
    %98 = arith.addf %87, %97 : vector<2x384xf32>
    %99 = vector.extract_strided_slice %31 {offsets = [24, 0], sizes = [2, 208], strides = [1, 1]} : vector<26x208xf32> to vector<2x208xf32>
    %c0_59 = arith.constant 0 : index
    %c0_60 = arith.constant 0 : index
    %100 = vector.load %arg3[%c0_59, %c0_60] : memref<1x208xf32, #tpu.memory_space<vmem>>, vector<1x208xf32>
    %101 = vector.broadcast %100 : vector<1x208xf32> to vector<2x208xf32>
    %102 = arith.addf %99, %101 : vector<2x208xf32>
    %cst_61 = arith.constant 0.000000e+00 : f32
    %103 = vector.broadcast %cst_61 : f32 to vector<2x208xf32>
    %104 = arith.maximumf %102, %103 : vector<2x208xf32>
    %105 = arith.truncf %104 : vector<2x208xf32> to vector<2x208xbf16>
    %c6 = arith.constant 6 : index
    %c0_62 = arith.constant 0 : index
    %c0_63 = arith.constant 0 : index
    %106 = vector.load %arg4[%c6, %c0_62, %c0_63] : memref<7x208x384xbf16, #tpu.memory_space<vmem>>, vector<1x208x384xbf16>
    %107 = vector.shape_cast %106 : vector<1x208x384xbf16> to vector<208x384xbf16>
    %cst_64 = arith.constant dense<0.000000e+00> : vector<2x384xf32>
    %108 = tpu.matmul %105, %107, %cst_64 {dimension_numbers = #tpu.dot_dimension_numbers<[1], [0], [0], [1], [0, 0, 1, 1], [], []>} : vector<2x208xbf16>, vector<208x384xbf16>, vector<2x384xf32> -> vector<2x384xf32>
    %109 = arith.addf %98, %108 : vector<2x384xf32>
    %c0_65 = arith.constant 0 : index
    %c0_66 = arith.constant 0 : index
    %110 = vector.load %arg5[%c0_65, %c0_66] : memref<1x384xf32, #tpu.memory_space<vmem>>, vector<1x384xf32>
    %111 = vector.broadcast %110 : vector<1x384xf32> to vector<2x384xf32>
    %112 = arith.addf %109, %111 : vector<2x384xf32>
    %cst_67 = arith.constant 0.000000e+00 : f32
    %113 = vector.broadcast %cst_67 : f32 to vector<2x384xf32>
    %114 = arith.maximumf %112, %113 : vector<2x384xf32>
    %115 = arith.truncf %114 : vector<2x384xf32> to vector<2x384xbf16>
    %c0_68 = arith.constant 0 : index
    %c0_69 = arith.constant 0 : index
    %116 = vector.load %arg6[%c0_68, %c0_69] : memref<384x128xbf16, #tpu.memory_space<vmem>>, vector<384x128xbf16>
    %cst_70 = arith.constant dense<0.000000e+00> : vector<2x128xf32>
    %117 = tpu.matmul %115, %116, %cst_70 {dimension_numbers = #tpu.dot_dimension_numbers<[1], [0], [0], [1], [0, 0, 1, 1], [], []>} : vector<2x384xbf16>, vector<384x128xbf16>, vector<2x128xf32> -> vector<2x128xf32>
    %c0_71 = arith.constant 0 : index
    %c0_72 = arith.constant 0 : index
    %118 = vector.load %arg7[%c0_71, %c0_72] : memref<1x128xf32, #tpu.memory_space<vmem>>, vector<1x128xf32>
    %119 = vector.broadcast %118 : vector<1x128xf32> to vector<2x128xf32>
    %120 = arith.addf %117, %119 : vector<2x128xf32>
    %cst_73 = arith.constant dense<0xFF800000> : vector<2xf32>
    %121 = vector.multi_reduction <maximumf>, %120, %cst_73 [1] : vector<2x128xf32> to vector<2xf32>
    %122 = vector.shape_cast %121 : vector<2xf32> to vector<2x1xf32>
    %123 = vector.broadcast %122 : vector<2x1xf32> to vector<2x128xf32>
    %124 = arith.subf %120, %123 : vector<2x128xf32>
    %125 = math.exp %124 : vector<2x128xf32>
    %cst_74 = arith.constant dense<0.000000e+00> : vector<2xf32>
    %126 = vector.multi_reduction <add>, %125, %cst_74 [1] : vector<2x128xf32> to vector<2xf32>
    %127 = vector.shape_cast %126 : vector<2xf32> to vector<2x1xf32>
    %128 = math.log %127 : vector<2x1xf32>
    %129 = arith.addf %128, %122 : vector<2x1xf32>
    %130 = vector.broadcast %129 : vector<2x1xf32> to vector<2x128xf32>
    %131 = arith.subf %120, %130 : vector<2x128xf32>
    %c0_75 = arith.constant 0 : index
    %c0_76 = arith.constant 0 : index
    %132 = vector.load %arg8[%c0_75, %c0_76] : memref<2x128xf32, #tpu.memory_space<vmem>>, vector<2x128xf32>
    tpu.vector_store %arg8[%c0_75, %c0_76], %131 {strides = array<i32>} : memref<2x128xf32, #tpu.memory_space<vmem>>, vector<2x128xf32>,
    return
  }
  func.func @transform_0(%arg0: i32) -> (i32, i32, i32) {
    %c0_i32 = arith.constant 0 : i32
    %c0_i32_0 = arith.constant 0 : i32
    %c0_i32_1 = arith.constant 0 : i32
    return %c0_i32, %arg0, %c0_i32_0 : i32, i32, i32
  }
  func.func @transform_1(%arg0: i32) -> (i32, i32, i32) {
    %c0_i32 = arith.constant 0 : i32
    %c0_i32_0 = arith.constant 0 : i32
    %c0_i32_1 = arith.constant 0 : i32
    %c0_i32_2 = arith.constant 0 : i32
    return %c0_i32, %c0_i32_0, %c0_i32_1 : i32, i32, i32
  }
  func.func @transform_2(%arg0: i32) -> (i32, i32) {
    %c0_i32 = arith.constant 0 : i32
    %c0_i32_0 = arith.constant 0 : i32
    %c0_i32_1 = arith.constant 0 : i32
    return %c0_i32, %c0_i32_0 : i32, i32
  }
  func.func @transform_3(%arg0: i32) -> (i32, i32, i32) {
    %c0_i32 = arith.constant 0 : i32
    %c0_i32_0 = arith.constant 0 : i32
    %c0_i32_1 = arith.constant 0 : i32
    %c0_i32_2 = arith.constant 0 : i32
    return %c0_i32, %c0_i32_0, %c0_i32_1 : i32, i32, i32
  }
  func.func @transform_4(%arg0: i32) -> (i32, i32) {
    %c0_i32 = arith.constant 0 : i32
    %c0_i32_0 = arith.constant 0 : i32
    %c0_i32_1 = arith.constant 0 : i32
    return %c0_i32, %c0_i32_0 : i32, i32
  }
  func.func @transform_5(%arg0: i32) -> (i32, i32) {
    %c0_i32 = arith.constant 0 : i32
    %c0_i32_0 = arith.constant 0 : i32
    %c0_i32_1 = arith.constant 0 : i32
    return %c0_i32, %c0_i32_0 : i32, i32
  }
  func.func @transform_6(%arg0: i32) -> (i32, i32) {
    %c0_i32 = arith.constant 0 : i32
    %c0_i32_0 = arith.constant 0 : i32
    %c0_i32_1 = arith.constant 0 : i32
    return %c0_i32, %c0_i32_0 : i32, i32
  }
  func.func @transform_7(%arg0: i32) -> (i32, i32) {
    %c0_i32 = arith.constant 0 : i32
    %c0_i32_0 = arith.constant 0 : i32
    return %arg0, %c0_i32 : i32, i32
  }
}

</mosaic_0001>

<bundles_post_ra>
// kernel: _lambda_.2
= control target key start
LH: loop header
LB: loop body
LE: loop exit
PB: predicated region body
PF: predicated region fallthrough
CT: control target
= control target key end

     0   :  { %8 = vsyncpa [#allocation3], 0  ;;  %s3190_s0 = inlined_call_operand.hbm [shape: f32[2,40,40], index: 0, kind: input, shape index: {}]   ;;  %s3191_s1 = inlined_call_operand.hbm [shape: bf16[5,40,360], index: 1, kind: input, shape index: {}]   ;;  %s3192_s2 = inlined_call_operand.hbm [shape: f32[1,350], index: 2, kind: input, shape index: {}]   ;;  %s3193_s3 = inlined_call_operand.vmem [shape: bf16[80,350], index: 3, kind: output, shape index: {}]  }
   0x1   :  { %9 = vsyncpa [#allocation5], 0  ;;  %s2537_s12 = smov [#allocation4]   ;;  %s2467_s16 = scalar_lea.hbm %s3191_s1, 4800 }
   0x2   :  { %s27_s13 = sshll.u32 %s2537_s12, 4  ;;  %p2468_p0 = scmp.ne.s32.totalorder %s3191_s1, %s2467_s16  ;;  %s28_s13 = int_to_ptr.vmem [resolvable:$true] %s27_s13 }
   0x3   :  { %p2471_p1 = scmp.lt.u32.totalorder %s2467_s16, %s3191_s1 }
   0x5   :  { %p2473_p2 = pnand %p2471_p1, %p2468_p0 }
   0x7   :  { %2476 = shalt.err (!%p2473_p2)
}
   0x8   :  { %s2477_s21 = scalar_lea.vmem %s28_s13, 4800  ;;  %p2482_p4 = scmp.lt.s32.totalorder %s28_s13, %s28_s13 }
   0x9   :  { %p2478_p3 = scmp.ne.s32.totalorder %s28_s13, %s2477_s21  ;;  %p2483_p5 = scmp.lt.s32.totalorder %s2477_s21, %s2477_s21 }
   0xb   :  { %p2484_p6 = por %p2483_p5, %p2482_p4 }
   0xd   :  { %p2485_p7 = pnand %p2484_p6, %p2478_p3 }
   0xf   :  { %2488 = shalt.err (!%p2485_p7)
}
  0x10   :  { %s2538_s22 = smov 192   ;;  %s2539_s23 = smov 12  }
  0x11   :  { %33 = dma.hbm_to_vmem [thread:$0]  %s3191_s1, 4800, %s28_s13, [#allocation5], %s2538_s22, %s2538_s22, %s2539_s23  }
  0x12   :  { %s2540_s26 = smov [#allocation2]   ;;  %s2489_s30 = scalar_lea.hbm %s3190_s0, 1280 }
  0x13   :  { %s15_s27 = sshll.u32 %s2540_s26, 4  ;;  %p2490_p8 = scmp.ne.s32.totalorder %s3190_s0, %s2489_s30  ;;  %s16_s27 = int_to_ptr.vmem [resolvable:$true] %s15_s27 }
  0x14   :  { %p2493_p9 = scmp.lt.u32.totalorder %s2489_s30, %s3190_s0 }
  0x16   :  { %p2495_p10 = pnand %p2493_p9, %p2490_p8 }
  0x18   :  { %2498 = shalt.err (!%p2495_p10)
}
  0x19   :  { %s2499_s8 = scalar_lea.vmem %s16_s27, 1280  ;;  %p2504_p12 = scmp.lt.s32.totalorder %s16_s27, %s16_s27 }
  0x1a   :  { %p2500_p11 = scmp.ne.s32.totalorder %s16_s27, %s2499_s8  ;;  %p2505_p13 = scmp.lt.s32.totalorder %s2499_s8, %s2499_s8 }
  0x1c   :  { %p2506_p0 = por %p2505_p13, %p2504_p12 }
  0x1e   :  { %p2507_p1 = pnand %p2506_p0, %p2500_p11 }
  0x20   :  { %2510 = shalt.err (!%p2507_p1)
}
  0x21   :  { %s2541_s1 = smov 128   ;;  %s2542_s9 = smov 8  }
  0x22   :  { %21 = dma.hbm_to_vmem [thread:$0]  %s3190_s0, 1280, %s16_s27, [#allocation3], %s2541_s1, %s2541_s1, %s2542_s9  }
  0x23   :  { %s2543_s12 = smov [#allocation6]   ;;  %s2511_s16 = scalar_lea.hbm %s3192_s2, 48 }
  0x24   :  { %s40_s13 = sshll.u32 %s2543_s12, 4  ;;  %p2512_p2 = scmp.ne.s32.totalorder %s3192_s2, %s2511_s16  ;;  %s41_s13 = int_to_ptr.vmem [resolvable:$true] %s40_s13 }
  0x25   :  { %p2515_p3 = scmp.lt.u32.totalorder %s2511_s16, %s3192_s2 }
  0x27   :  { %p2517_p4 = pnand %p2515_p3, %p2512_p2 }
  0x29   :  { %2520 = shalt.err (!%p2517_p4)
}
  0x2a   :  { %s2521_s21 = scalar_lea.vmem %s41_s13, 48  ;;  %s2525_s0 = scalar_lea.vmem %s41_s13, 64 }
  0x2b   :  { %p2522_p5 = scmp.ne.s32.totalorder %s41_s13, %s2521_s21  ;;  %p2526_p6 = scmp.lt.s32.totalorder %s41_s13, %s41_s13 }
  0x2c   :  { %p2527_p7 = scmp.lt.s32.totalorder %s2525_s0, %s2521_s21 }
  0x2e   :  { %p2528_p8 = por %p2527_p7, %p2526_p6 }
  0x30   :  { %p2529_p9 = pnand %p2528_p8, %p2522_p5 }
  0x32   :  { %2532 = shalt.err (!%p2529_p9)
}
  0x33   :  { %43 = dma.hbm_to_vmem [thread:$0]  %s3192_s2, 48, %s41_s13, [#allocation5]  }
  0x34   :  { %2533 = dma.done.wait [#allocation3], 1280  }
  0x35   :  { %2534 = vsyncadd [#allocation3], 4294966016 }
  0x36   :  { %2535 = dma.done.wait [#allocation5], 4848  }
  0x37   :  { %2536 = vsyncadd [#allocation5], 4294962448  ;;  %v2544_v0 = vmov 0.0   ;;  %vm2545_vm0 = vmmov 0   ;;  %v2546_v1 = vmov 0   ;;  %v88_v8 = vld [vmem:[#allocation4 + $0x6c] sm:$0xff] }
  0x38   :  { %2111 = vmatprep.subr.bf16.mxu1 %v2544_v0  ;;  %2117 = vmatprep.mubr.msk.bf16.mxu1 %vm2545_vm0, %v2544_v0  ;;  %v2412_v2 = vld [vmem:[#allocation4 + $0x40] ss:$12 sps:$4 sm:$0xff]   ;;  %v2414_v3 = vld [vmem:[#allocation4 + $0x44] ss:$12 sps:$4 sm:$0xff]   ;;  %v2415_v4 = vld [vmem:[#allocation4 + $0x3c] ss:$12 sps:$4 sm:$0xff]   ;;  %v1938_v9 = vcombine.high %v88_v8, %v88_v8  ;;  %v1937_v11 = vcombine.low %v88_v8, %v88_v8 }
  0x39   :  { %228 = vmatprep.mubr.bf16.mxu0 %v2546_v1  ;;  %196 = vmatprep.subr.bf16.mxu0 %v2412_v2  ;;  %v2416_v5 = vld [vmem:[#allocation4 + $0x58] ss:$12 sps:$4 sm:$0xff]   ;;  %v2418_v6 = vld [vmem:[#allocation4 + $0x5c] ss:$12 sps:$4 sm:$0xff]   ;;  %v2419_v7 = vld [vmem:[#allocation4 + $0x54] ss:$12 sps:$4 sm:$0xff]  }
  0x3a   :  { %2112 = vmatpush3.bf16.msra.mxu1 %v2414_v3  ;;  %197 = vmatpush1.bf16.msra.mxu0 %v2415_v4  ;;  %vm186_vm1 = vcmask 1043456   ;;  %v2421_v10 = vld [vmem:[#allocation4 + $0x74] ss:$0 sps:$4 sm:$0xff]   ;;  %v55_v13 = vld [vmem:[#allocation2 + $0x8] sm:$0xff]  ;;  %v56_v14 = vld [vmem:[#allocation2 + $0x10] sm:$0xff]  ;;  %vm170_vm3 = vcmask 326656  }
  0x3b   :  { %2113 = vmatprep.subr.bf16.mxu1 %v2544_v0  ;;  %198 = vmatprep.subr.bf16.mxu0 %v2416_v5  ;;  %v54_v12 = vld [vmem:[#allocation2] sm:$0xff]  ;;  %v57_v15 = vld [vmem:[#allocation2 + $0x18] sm:$0xff]  ;;  %vm90_vm2 = vsmask.f32 7424  ;;  %vm583_vm4 = vcmask 1046528   ;;  %v194_v18 = vsel %vm186_vm1, %v2421_v10, 0 }
  0x3c   :  { %v2609_v16 = vpack.c.bf16 %v55_v13, %v54_v12  ;;  %v2611_v17 = vpack.c.bf16 %v57_v15, %v56_v14  ;;  %v188_v19 = vsel %vm186_vm1, %v1937_v11, 0  ;;  %v2425_v23 = vld [vmem:[#allocation4 + $0x4] ss:$12 sps:$4 sm:$0xff]   ;;  %v59_v25 = vld [vmem:[#allocation2 + $0x28] sm:$0xff]  ;;  %v2423_v38 = vld [vmem:[#allocation4] ss:$12 sps:$4 sm:$0xff]  }
  0x3d   :  { %v58_v24 = vld [vmem:[#allocation2 + $0x20] sm:$0xff]  ;;  %v60_v42 = vld [vmem:[#allocation2 + $0x30] sm:$0xff]  ;;  %v61_v43 = vld [vmem:[#allocation2 + $0x38] sm:$0xff]  ;;  %vm854_vm5 = vsmask.f32 6400  ;;  %vm1135_vm6 = vcmask 1045504  }
  0x3e   :  { %2114 = vmatpush3.bf16.msra.mxu1 %v2418_v6  ;;  %199 = vmatpush1.bf16.msra.mxu0 %v2419_v7  ;;  %v92_v20 = vshrl.u32 %v2609_v16, 16  ;;  %v94_v21 = vshll.u32 %v2609_v16, 16  ;;  %v99_v22 = vshll.u32 %v2611_v17, 16  ;;  %v103_v26 = vshrl.u32 %v2611_v17, 16  ;;  %v2426_v39 = vld [vmem:[#allocation4 + $0x8] ss:$12 sps:$4 sm:$0xff]  }
  0x3f   :  { %2115 = vmatprep.subr.bf16.mxu1 %v2544_v0  ;;  %1940 = vmatprep.subr.msk.bf16.mxu0 %vm186_vm1, %v1938_v9  ;;  %v584_v27 = vrot.slane %v2609_v16, 1  ;;  %v585_v28 = vrot.slane %v2611_v17, 1  ;;  %v2624_v34 = vpack.c.bf16 %v59_v25, %v58_v24  ;;  %v2429_v47 = vld [vmem:[#allocation4 + $0x1c] ss:$12 sps:$4 sm:$0xff]   ;;  %v77_v48 = vld [vmem:[#allocation4 + $0x30] sm:$0xff]  ;;  %v2637_v54 = vpack.c.bf16 %v61_v43, %v60_v42  ;;  %s2547_s2 = smov 118  }
  0x40   :  { %v96_v29 = vrot.slane %v94_v21, 1  ;;  %v101_v30 = vrot.slane %v99_v22, 1  ;;  %v855_v31 = vrot.slane %v92_v20, 1  ;;  %v856_v32 = vrot.slane %v94_v21, 2  ;;  %v2427_v52 = vld [vmem:[#allocation4 + $0x18] ss:$12 sps:$4 sm:$0xff]  }
  0x41   :  { %v859_v33 = vrot.slane %v99_v22, 2  ;;  %v858_v35 = vrot.slane %v103_v26, 1  ;;  %v2627_v36 = vsel %vm583_vm4, %v584_v27, %v585_v28  ;;  %v107_v41 = vshll.u32 %v2624_v34, 16  ;;  %v2430_v53 = vld [vmem:[#allocation4 + $0x20] ss:$12 sps:$4 sm:$0xff]   ;;  %v62_v55 = vld [vmem:[#allocation2 + $0x40] sm:$0xff] }
  0x42   :  { %2116 = vmatpush3.bf16.msra.mxu1 %v194_v18  ;;  %201 = vmatpush1.bf16.msra.mxu0 %v188_v19  ;;  %v97_v37 = vor.u32 %v96_v29, %v92_v20  ;;  %v857_v40 = vor.u32 %v856_v32, %v855_v31  ;;  %v587_v44 = vrot.slane %v2624_v34, 1  ;;  %v105_v50 = vor.u32 %v103_v26, %v101_v30  ;;  %v63_v56 = vld [vmem:[#allocation2 + $0x48] sm:$0xff]  ;;  %v576_v42 = vld [vmem:[#allocation4 + $0xa8] sm:$0xff] }
  0x43   :  { %2137 = vmatprep.subr.bf16.mxu1 %v2544_v0  ;;  %411 = vmatprep.subr.bf16.mxu0 %v2425_v23  ;;  %v860_v45 = vor.u32 %v859_v33, %v858_v35  ;;  %v109_v51 = vrot.slane %v107_v41, 1  ;;  %v1958_v57 = vcombine.high %v77_v48, %v77_v48  ;;  %v2432_v58 = vld [vmem:[#allocation4 + $0x38] ss:$0 sps:$4 sm:$0xff]   ;;  %v1957_v59 = vcombine.low %v77_v48, %v77_v48  ;;  %v2436_v7 = vld [vmem:[#allocation4 + $0x7c] ss:$12 sps:$4 sm:$0xff]  }
  0x44   :  { %v102_v46 = vsel %vm90_vm2, %v97_v37, %v101_v30  ;;  %v2635_v49 = vsel %vm583_vm4, %v585_v28, %v587_v44  ;;  %v111_v62 = vshrl.u32 %v2624_v34, 16  ;;  %v115_v63 = vshll.u32 %v2637_v54, 16  ;;  %v2438_v43 = vld [vmem:[#allocation4 + $0x90] ss:$12 sps:$4 sm:$0xff]  }
  0x45   :  { %2118 = vmatmul.mubr.msk.bf16.vlgmr.msra.gmra.mrb[0].mxu1 %vm170_vm3, %v102_v46  ;;  %1941 = vmatmul.mubr.msk.bf16.vlgmr.msra.gmra.mrb[0].mxu0 %vm170_vm3, %v102_v46  ;;  %v2644_v60 = vsel %vm854_vm5, %v857_v40, %v860_v45  ;;  %v110_v61 = vsel %vm90_vm2, %v105_v50, %v109_v51  ;;  %v589_v2 = vrot.slane %v2637_v54, 1  ;;  %v2650_v3 = vpack.c.bf16 %v63_v56, %v62_v55  ;;  %v2437_v40 = vld [vmem:[#allocation4 + $0x80] ss:$12 sps:$4 sm:$0xff]   ;;  %v852_v55 = vld [vmem:[#allocation4 + $0xe4] sm:$0xff] }
  0x46   :  { %2138 = vmatpush3.bf16.msra.mxu1 %v2426_v39  ;;  %412 = vmatpush1.bf16.msra.mxu0 %v2423_v38  ;;  %v119_v4 = vshrl.u32 %v2637_v54, 16  ;;  %v409_v5 = vsel %vm186_vm1, %v2432_v58, 0  ;;  %v403_v6 = vsel %vm186_vm1, %v1957_v59, 0  ;;  %v862_v9 = vrot.slane %v111_v62, 1  ;;  %v2434_v39 = vld [vmem:[#allocation4 + $0x78] ss:$12 sps:$4 sm:$0xff]  }
  0x47   :  { %2121 = vmatprep.mubr.msk.bf16.mxu1 %vm2545_vm0, %v2544_v0  ;;  %238 = vmatprep.mubr.bf16.mxu0 %v2546_v1  ;;  %v2660_v8 = vsel %vm583_vm4, %v587_v44, %v589_v2  ;;  %v113_v10 = vor.u32 %v111_v62, %v109_v51  ;;  %v117_v11 = vrot.slane %v115_v63, 1  ;;  %v863_v12 = vrot.slane %v107_v41, 2  ;;  %v2440_v41 = vld [vmem:[#allocation4 + $0x94] ss:$12 sps:$4 sm:$0xff]   ;;  %v2441_v44 = vld [vmem:[#allocation4 + $0x98] ss:$12 sps:$4 sm:$0xff]  }
  0x48   :  { %2139 = vmatprep.subr.bf16.mxu1 %v2544_v0  ;;  %413 = vmatprep.subr.bf16.mxu0 %v2429_v47  ;;  %v866_v13 = vrot.slane %v119_v4, 1  ;;  %v127_v14 = vshrl.u32 %v2650_v3, 16  ;;  %v123_v15 = vshll.u32 %v2650_v3, 16  ;;  %v867_v19 = vrot.slane %v115_v63, 2  ;;  %v2443_v47 = vld [vmem:[#allocation4 + $0xb0] ss:$0 sps:$4 sm:$0xff]  }
  0x49   :  { %v864_v18 = vor.u32 %v863_v12, %v862_v9  ;;  %v118_v21 = vsel %vm90_vm2, %v113_v10, %v117_v11  ;;  %v121_v27 = vor.u32 %v119_v4, %v117_v11  ;;  %v1136_v31 = vrot.slane %v2609_v16, 2  ;;  %v2449_v56 = vld [vmem:[#allocation4 + $0xcc] ss:$12 sps:$4 sm:$0xff]   ;;  %v2458_v63 = vld [vmem:[#allocation4 + $0xf4] ss:$12 sps:$4 sm:$0xff]  }
  0x4a   :  { %2140 = vmatpush3.bf16.msra.mxu1 %v2430_v53  ;;  %414 = vmatpush1.bf16.msra.mxu0 %v2427_v52  ;;  %v870_v20 = vrot.slane %v127_v14, 1  ;;  %v868_v23 = vor.u32 %v867_v19, %v866_v13  ;;  %v871_v24 = vrot.slane %v123_v15, 2  ;;  %v125_v28 = vrot.slane %v123_v15, 1  ;;  %v2447_v52 = vld [vmem:[#allocation4 + $0xb8] ss:$12 sps:$4 sm:$0xff]  }
  0x4b   :  { %2141 = vmatprep.subr.bf16.mxu1 %v2544_v0  ;;  %1960 = vmatprep.subr.msk.bf16.mxu0 %vm186_vm1, %v1958_v57  ;;  %v2672_v22 = vsel %vm854_vm5, %v860_v45, %v864_v18  ;;  %v1137_v32 = vrot.slane %v2611_v17, 2  ;;  %v1139_v37 = vrot.slane %v2624_v34, 2  ;;  %v1141_v45 = vrot.slane %v2637_v54, 2  ;;  %v2451_v53 = vld [vmem:[#allocation4 + $0xd0] ss:$12 sps:$4 sm:$0xff]  }
  0x4c   :  { %v2675_v25 = vsel %vm854_vm5, %v864_v18, %v868_v23  ;;  %v2677_v26 = vor.u32 %v871_v24, %v870_v20  ;;  %v126_v30 = vsel %vm90_vm2, %v121_v27, %v125_v28  ;;  %v129_v35 = vor.u32 %v127_v14, %v125_v28  ;;  %v2452_v57 = vld [vmem:[#allocation4 + $0xd4] ss:$12 sps:$4 sm:$0xff]   ;;  %v2454_v59 = vld [vmem:[#allocation4 + $0xec] ss:$0 sps:$4 sm:$0xff]   ;;  %v2463_v9 = vld [vmem:[#allocation4 + $0x110] ss:$12 sps:$4 sm:$0xff]  }
  0x4d   :  { %2122 = vmatmul.mubr.msk.bf16.gmra.mrb[4].mxu1 %vm170_vm3, %v110_v61  ;;  %1942 = vmatmul.mubr.msk.bf16.gmra.mrb[4].mxu0 %vm170_vm3, %v110_v61  ;;  %v2697_v33 = vsel %vm1135_vm6, %v1136_v31, %v1137_v32  ;;  %v2706_v38 = vsel %vm1135_vm6, %v1137_v32, %v1139_v37  ;;  %v1978_v46 = vcombine.high %v576_v42, %v576_v42  ;;  %v655_v50 = vsel %vm186_vm1, %v2443_v47, 0  ;;  %v2465_v11 = vld [vmem:[#allocation4 + $0x128] ss:$0 sps:$4 sm:$0xff]  }
  0x4e   :  { %2125 = vmatprep.mubr.msk.bf16.mxu1 %vm2545_vm0, %v2544_v0  ;;  %248 = vmatprep.mubr.bf16.mxu0 %v2546_v1  ;;  %v2686_v29 = vsel %vm854_vm5, %v868_v23, %v2677_v26  ;;  %v1977_v48 = vcombine.low %v576_v42, %v576_v42  ;;  %v1998_v58 = vcombine.high %v852_v55, %v852_v55  ;;  %v1143_v14 = vrot.slane %v2650_v3, 2 }
  0x4f   :  { %2142 = vmatpush3.bf16.msra.mxu1 %v409_v5  ;;  %416 = vmatpush1.bf16.msra.mxu0 %v403_v6  ;;  %v1997_v61 = vcombine.low %v852_v55, %v852_v55  ;;  %v2456_v5 = vld [vmem:[#allocation4 + $0xf0] ss:$12 sps:$4 sm:$0xff]   ;;  %v2462_v6 = vld [vmem:[#allocation4 + $0x10c] ss:$12 sps:$4 sm:$0xff]   ;;  %vm1633_vm7 = vcmask 965632   ;;  %vm1892_vm8 = vcmask 764928  }
  0x50   :  { %2163 = vmatprep.subr.bf16.mxu1 %v2544_v0  ;;  %657 = vmatprep.subr.bf16.mxu0 %v2436_v7  ;;  %v649_v51 = vsel %vm186_vm1, %v1977_v48, 0  ;;  %v1133_v7 = vld [vmem:[#allocation4 + $0x120] sm:$0xff]  ;;  %v1144_v15 = vsel %vm1135_vm6, %v1141_v45, %v1143_v14  ;;  %vm1911_vm9 = vsmask.f32 1280  ;;  %vm1920_vm10 = vcmask 762880  }
  0x51   :  { %v930_v62 = vsel %vm186_vm1, %v1997_v61, 0  ;;  %v2018_v10 = vcombine.high %v1133_v7, %v1133_v7  ;;  %v2017_v12 = vcombine.low %v1133_v7, %v1133_v7  ;;  %vm1921_vm11 = vmand %vm1920_vm10, %vm1911_vm9  ;;  %vm1910_vm12 = vcmask 1041408  }
  0x52   :  { %vm1913_vm13 = vcmask 1045508   ;;  %vm1914_vm14 = vsmask.f32 5376  ;;  %vm3152_vm15 = vmand %vm1910_vm12, %vm1911_vm9 }
  0x53   :  { %v1201_v13 = vsel %vm186_vm1, %v2017_v12, 0 }
  0x55   :  { %2126 = vmatmul.mubr.msk.bf16.gmra.mrb[8].mxu1 %vm170_vm3, %v118_v21  ;;  %1943 = vmatmul.mubr.msk.bf16.gmra.mrb[8].mxu0 %vm170_vm3, %v118_v21 }
  0x56   :  { %2129 = vmatprep.mubr.msk.bf16.mxu1 %vm2545_vm0, %v2544_v0  ;;  %258 = vmatprep.mubr.bf16.mxu0 %v2546_v1 }
  0x5d   :  { %2130 = vmatmul.mubr.msk.bf16.gmra.mrb[12].mxu1 %vm170_vm3, %v126_v30  ;;  %1944 = vmatmul.mubr.msk.bf16.gmra.mrb[12].mxu0 %vm170_vm3, %v126_v30 }
  0x5e   :  { %2133 = vmatprep.mubr.msk.bf16.mxu1 %vm2545_vm0, %v2544_v0  ;;  %268 = vmatprep.mubr.bf16.mxu0 %v2546_v1 }
  0x65   :  { %2134 = vmatmul.mubr.msk.bf16.gmra.mrb[16].mxu1 %vm170_vm3, %v129_v35  ;;  %1945 = vmatmul.mubr.msk.bf16.gmra.mrb[16].mxu0 %vm170_vm3, %v129_v35 }
  0x66   :  { %2143 = vmatprep.mubr.msk.bf16.mxu1 %vm2545_vm0, %v2544_v0  ;;  %443 = vmatprep.mubr.bf16.mxu0 %v2546_v1 }
  0x6d   :  { %2144 = vmatmul.mubr.msk.bf16.vlgmr.msra.gmra.mrb[0].mxu1 %vm170_vm3, %v2609_v16  ;;  %1961 = vmatmul.mubr.msk.bf16.vlgmr.msra.gmra.mrb[0].mxu0 %vm170_vm3, %v2609_v16  ;;  %v2720_v16 = vsel %vm1135_vm6, %v1139_v37, %v1141_v45 }
  0x6e   :  { %2164 = vmatpush3.bf16.msra.mxu1 %v2437_v40  ;;  %658 = vmatpush1.bf16.msra.mxu0 %v2434_v39 }
  0x6f   :  { %2147 = vmatprep.mubr.msk.bf16.mxu1 %vm2545_vm0, %v2544_v0  ;;  %453 = vmatprep.mubr.bf16.mxu0 %v2546_v1 }
  0x70   :  { %2165 = vmatprep.subr.bf16.mxu1 %v2544_v0  ;;  %659 = vmatprep.subr.bf16.mxu0 %v2440_v41 }
  0x72   :  { %2166 = vmatpush3.bf16.msra.mxu1 %v2441_v44  ;;  %660 = vmatpush1.bf16.msra.mxu0 %v2438_v43 }
  0x73   :  { %2167 = vmatprep.subr.bf16.mxu1 %v2544_v0  ;;  %1980 = vmatprep.subr.msk.bf16.mxu0 %vm186_vm1, %v1978_v46 }
  0x75   :  { %2148 = vmatmul.mubr.msk.bf16.gmra.mrb[4].mxu1 %vm170_vm3, %v2611_v17  ;;  %1962 = vmatmul.mubr.msk.bf16.gmra.mrb[4].mxu0 %vm170_vm3, %v2611_v17  ;;  %v2445_v17 = vld [vmem:[#allocation4 + $0xb4] ss:$12 sps:$4 sm:$0xff]  }
  0x76   :  { %2151 = vmatprep.mubr.msk.bf16.mxu1 %vm2545_vm0, %v2544_v0  ;;  %463 = vmatprep.mubr.bf16.mxu0 %v2546_v1 }
  0x77   :  { %2168 = vmatpush3.bf16.msra.mxu1 %v655_v50  ;;  %662 = vmatpush1.bf16.msra.mxu0 %v649_v51 }
  0x78   :  { %2189 = vmatprep.subr.bf16.mxu1 %v2544_v0  ;;  %938 = vmatprep.subr.bf16.mxu0 %v2447_v52 }
  0x7d   :  { %2152 = vmatmul.mubr.msk.bf16.gmra.mrb[8].mxu1 %vm170_vm3, %v2624_v34  ;;  %1963 = vmatmul.mubr.msk.bf16.gmra.mrb[8].mxu0 %vm170_vm3, %v2624_v34  ;;  %v2448_v34 = vld [vmem:[#allocation4 + $0xbc] ss:$12 sps:$4 sm:$0xff]  }
  0x7e   :  { %2155 = vmatprep.mubr.msk.bf16.mxu1 %vm2545_vm0, %v2544_v0  ;;  %473 = vmatprep.mubr.bf16.mxu0 %v2546_v1 }
  0x85   :  { %2156 = vmatmul.mubr.msk.bf16.gmra.mrb[12].mxu1 %vm170_vm3, %v2637_v54  ;;  %1964 = vmatmul.mubr.msk.bf16.gmra.mrb[12].mxu0 %vm170_vm3, %v2637_v54 }
  0x86   :  { %2159 = vmatprep.mubr.msk.bf16.mxu1 %vm2545_vm0, %v2544_v0  ;;  %483 = vmatprep.mubr.bf16.mxu0 %v2546_v1 }
  0x8d   :  { %2160 = vmatmul.mubr.msk.bf16.gmra.mrb[16].mxu1 %vm170_vm3, %v2650_v3  ;;  %1965 = vmatmul.mubr.msk.bf16.gmra.mrb[16].mxu0 %vm170_vm3, %v2650_v3 }
  0x8e   :  { %2169 = vmatprep.mubr.msk.bf16.mxu1 %vm2545_vm0, %v2544_v0  ;;  %689 = vmatprep.mubr.bf16.mxu0 %v2546_v1 }
  0x95   :  { %2170 = vmatmul.mubr.msk.bf16.vlgmr.msra.gmra.mrb[0].mxu1 %vm170_vm3, %v2627_v36  ;;  %1981 = vmatmul.mubr.msk.bf16.vlgmr.msra.gmra.mrb[0].mxu0 %vm170_vm3, %v2627_v36  ;;  %v936_v36 = vsel %vm186_vm1, %v2454_v59, 0 }
  0x96   :  { %2190 = vmatpush3.bf16.msra.mxu1 %v2448_v34  ;;  %939 = vmatpush1.bf16.msra.mxu0 %v2445_v17 }
  0x97   :  { %2173 = vmatprep.mubr.msk.bf16.mxu1 %vm2545_vm0, %v2544_v0  ;;  %699 = vmatprep.mubr.bf16.mxu0 %v2546_v1 }
  0x98   :  { %2191 = vmatprep.subr.bf16.mxu1 %v2544_v0  ;;  %940 = vmatprep.subr.bf16.mxu0 %v2451_v53 }
  0x9a   :  { %2192 = vmatpush3.bf16.msra.mxu1 %v2452_v57  ;;  %941 = vmatpush1.bf16.msra.mxu0 %v2449_v56 }
  0x9b   :  { %2193 = vmatprep.subr.bf16.mxu1 %v2544_v0  ;;  %2000 = vmatprep.subr.msk.bf16.mxu0 %vm186_vm1, %v1998_v58 }
  0x9d   :  { %2174 = vmatmul.mubr.msk.bf16.gmra.mrb[4].mxu1 %vm170_vm3, %v2635_v49  ;;  %1982 = vmatmul.mubr.msk.bf16.gmra.mrb[4].mxu0 %vm170_vm3, %v2635_v49  ;;  %v591_v49 = vrot.slane %v2650_v3, 1 }
  0x9e   :  { %2177 = vmatprep.mubr.msk.bf16.mxu1 %vm2545_vm0, %v2544_v0  ;;  %709 = vmatprep.mubr.bf16.mxu0 %v2546_v1 }
  0x9f   :  { %2194 = vmatpush3.bf16.msra.mxu1 %v936_v36  ;;  %943 = vmatpush1.bf16.msra.mxu0 %v930_v62  ;;  %v592_v4 = vsel %vm583_vm4, %v589_v2, %v591_v49  ;;  %v2459_v2 = vld [vmem:[#allocation4 + $0xf8] ss:$12 sps:$4 sm:$0xff]  }
  0xa0   :  { %2215 = vmatprep.subr.bf16.mxu1 %v2544_v0  ;;  %1209 = vmatprep.subr.bf16.mxu0 %v2458_v63 }
  0xa5   :  { %2178 = vmatmul.mubr.msk.bf16.gmra.mrb[8].mxu1 %vm170_vm3, %v2660_v8  ;;  %1983 = vmatmul.mubr.msk.bf16.gmra.mrb[8].mxu0 %vm170_vm3, %v2660_v8  ;;  %v2460_v8 = vld [vmem:[#allocation4 + $0x108] ss:$12 sps:$4 sm:$0xff]  }
  0xa6   :  { %2181 = vmatprep.mubr.msk.bf16.mxu1 %vm2545_vm0, %v2544_v0  ;;  %719 = vmatprep.mubr.bf16.mxu0 %v2546_v1 }
  0xad   :  { %2182 = vmatmul.mubr.msk.bf16.gmra.mrb[12].mxu1 %vm170_vm3, %v592_v4  ;;  %1984 = vmatmul.mubr.msk.bf16.gmra.mrb[12].mxu0 %vm170_vm3, %v592_v4 }
  0xae   :  { %2185 = vmatprep.mubr.msk.bf16.mxu1 %vm2545_vm0, %v2544_v0  ;;  %729 = vmatprep.mubr.bf16.mxu0 %v2546_v1 }
  0xb5   :  { %2186 = vmatmul.mubr.msk.bf16.gmra.mrb[16].mxu1 %vm170_vm3, %v591_v49  ;;  %1985 = vmatmul.mubr.msk.bf16.gmra.mrb[16].mxu0 %vm170_vm3, %v591_v49 }
  0xb6   :  { %2195 = vmatprep.mubr.msk.bf16.mxu1 %vm2545_vm0, %v2544_v0  ;;  %970 = vmatprep.mubr.bf16.mxu0 %v2546_v1 }
  0xbd   :  { %2196 = vmatmul.mubr.msk.bf16.vlgmr.msra.gmra.mrb[0].mxu1 %vm170_vm3, %v2644_v60  ;;  %2001 = vmatmul.mubr.msk.bf16.vlgmr.msra.gmra.mrb[0].mxu0 %vm170_vm3, %v2644_v60  ;;  %v1207_v60 = vsel %vm186_vm1, %v2465_v11, 0 }
  0xbe   :  { %2216 = vmatpush3.bf16.msra.mxu1 %v2459_v2  ;;  %1210 = vmatpush1.bf16.msra.mxu0 %v2456_v5 }
  0xbf   :  { %2199 = vmatprep.mubr.msk.bf16.mxu1 %vm2545_vm0, %v2544_v0  ;;  %980 = vmatprep.mubr.bf16.mxu0 %v2546_v1 }
  0xc0   :  { %2217 = vmatprep.subr.bf16.mxu1 %v2544_v0  ;;  %1211 = vmatprep.subr.bf16.mxu0 %v2462_v6 }
  0xc2   :  { %2218 = vmatpush3.bf16.msra.mxu1 %v2463_v9  ;;  %1212 = vmatpush1.bf16.msra.mxu0 %v2460_v8 }
  0xc3   :  { %2219 = vmatprep.subr.bf16.mxu1 %v2544_v0  ;;  %2020 = vmatprep.subr.msk.bf16.mxu0 %vm186_vm1, %v2018_v10 }
  0xc5   :  { %2200 = vmatmul.mubr.msk.bf16.gmra.mrb[4].mxu1 %vm170_vm3, %v2672_v22  ;;  %2002 = vmatmul.mubr.msk.bf16.gmra.mrb[4].mxu0 %vm170_vm3, %v2672_v22 }
  0xc6   :  { %2203 = vmatprep.mubr.msk.bf16.mxu1 %vm2545_vm0, %v2544_v0  ;;  %990 = vmatprep.mubr.bf16.mxu0 %v2546_v1 }
  0xc7   :  { %2220 = vmatpush3.bf16.msra.mxu1 %v1207_v60  ;;  %1214 = vmatpush1.bf16.msra.mxu0 %v1201_v13 }
  0xcd   :  { %2204 = vmatmul.mubr.msk.bf16.gmra.mrb[8].mxu1 %vm170_vm3, %v2675_v25  ;;  %2003 = vmatmul.mubr.msk.bf16.gmra.mrb[8].mxu0 %vm170_vm3, %v2675_v25 }
  0xce   :  { %2207 = vmatprep.mubr.msk.bf16.mxu1 %vm2545_vm0, %v2544_v0  ;;  %1000 = vmatprep.mubr.bf16.mxu0 %v2546_v1 }
  0xd5   :  { %2208 = vmatmul.mubr.msk.bf16.gmra.mrb[12].mxu1 %vm170_vm3, %v2686_v29  ;;  %2004 = vmatmul.mubr.msk.bf16.gmra.mrb[12].mxu0 %vm170_vm3, %v2686_v29 }
  0xd6   :  { %2211 = vmatprep.mubr.msk.bf16.mxu1 %vm2545_vm0, %v2544_v0  ;;  %1010 = vmatprep.mubr.bf16.mxu0 %v2546_v1 }
  0xdd   :  { %2212 = vmatmul.mubr.msk.bf16.gmra.mrb[16].mxu1 %vm170_vm3, %v2677_v26  ;;  %2005 = vmatmul.mubr.msk.bf16.gmra.mrb[16].mxu0 %vm170_vm3, %v2677_v26 }
  0xde   :  { %2221 = vmatprep.mubr.msk.bf16.mxu1 %vm2545_vm0, %v2544_v0  ;;  %1241 = vmatprep.mubr.bf16.mxu0 %v2546_v1 }
  0xe5   :  { %2222 = vmatmul.mubr.msk.bf16.vlgmr.msra.gmra.mrb[0].mxu1 %vm170_vm3, %v2697_v33  ;;  %2021 = vmatmul.mubr.msk.bf16.vlgmr.msra.gmra.mrb[0].mxu0 %vm170_vm3, %v2697_v33 }
  0xe6   :  { %2225 = vmatprep.mubr.msk.bf16.mxu1 %vm2545_vm0, %v2544_v0  ;;  %1251 = vmatprep.mubr.bf16.mxu0 %v2546_v1 }
  0xed   :  { %2226 = vmatmul.mubr.msk.bf16.gmra.mrb[4].mxu1 %vm170_vm3, %v2706_v38  ;;  %2022 = vmatmul.mubr.msk.bf16.gmra.mrb[4].mxu0 %vm170_vm3, %v2706_v38 }
  0xee   :  { %2229 = vmatprep.mubr.msk.bf16.mxu1 %vm2545_vm0, %v2544_v0  ;;  %1261 = vmatprep.mubr.bf16.mxu0 %v2546_v1 }
  0xf5   :  { %2230 = vmatmul.mubr.msk.bf16.gmra.mrb[8].mxu1 %vm170_vm3, %v2720_v16  ;;  %2023 = vmatmul.mubr.msk.bf16.gmra.mrb[8].mxu0 %vm170_vm3, %v2720_v16 }
  0xf6   :  { %2233 = vmatprep.mubr.msk.bf16.mxu1 %vm2545_vm0, %v2544_v0  ;;  %1271 = vmatprep.mubr.bf16.mxu0 %v2546_v1 }
  0xfd   :  { %2234 = vmatmul.mubr.msk.bf16.gmra.mrb[12].mxu1 %vm170_vm3, %v1144_v15  ;;  %2024 = vmatmul.mubr.msk.bf16.gmra.mrb[12].mxu0 %vm170_vm3, %v1144_v15 }
  0xfe   :  { %2237 = vmatprep.mubr.msk.bf16.mxu1 %vm2545_vm0, %v2544_v0  ;;  %1281 = vmatprep.mubr.bf16.mxu0 %v2546_v1  ;;  %vm3160_vm0 = vmand %vm1913_vm13, %vm1914_vm14 }
  0xff   :  { %vm1916_vm1 = vmor %vm3160_vm0, %vm3152_vm15 }
 0x105   :  { %2238 = vmatmul.mubr.msk.bf16.gmra.mrb[16].mxu1 %vm170_vm3, %v1143_v14  ;;  %2025 = vmatmul.mubr.msk.bf16.gmra.mrb[16].mxu0 %vm170_vm3, %v1143_v14 }
 0x1b8   :  { %v1326_v18 = vpop.f32.mrb[0].mxu1  ;;  %v1243_v19 = vpop.f32.mrb[0].mxu0 }
 0x1b9   :  { %v2223_v3 = vpop.f32.mrb[1].mxu1  ;;  %v1245_v20 = vpop.f32.mrb[1].mxu0  ;;  %v1432_v22 = vrot.slane %v1326_v18, 1  ;;  %v1426_v23 = vrot.slane %v1243_v19, 1 }
 0x1ba   :  { %v1329_v54 = vpop.f32.mrb[2].mxu1  ;;  %v1247_v21 = vpop.f32.mrb[2].mxu0  ;;  %v1429_v28 = vrot.slane %v1245_v20, 1 }
 0x1bb   :  { %v1433_v24 = vrot.slane %v1329_v54, 1  ;;  %v1427_v25 = vrot.slane %v1247_v21, 1  ;;  %v2224_v26 = vpop.f32.mrb[3].mxu1  ;;  %v1249_v27 = vpop.f32.mrb[3].mxu0 }
 0x1bc   :  { %v1430_v0 = vrot.slane %v1249_v27, 1 }
 0x1bd   :  { %v1434_v1 = vsel %vm583_vm4, %v1432_v22, %v1433_v24  ;;  %v1428_v29 = vsel %vm583_vm4, %v1426_v23, %v1427_v25 }
 0x1be   :  { %v2870_v30 = vmax.f32 %v1326_v18, %v1434_v1  ;;  %v1431_v31 = vsel %vm583_vm4, %v1429_v28, %v1430_v0  ;;  %v2873_v32 = vmax.f32 %v1243_v19, %v1428_v29 }
 0x1bf   :  { %v2875_v33 = vmax.f32 %v1245_v20, %v1431_v31 }
 0x1c0   :  { %1577 = vrot.lane.b32.xlu1 %v2870_v30, %s2547_s2  ;;  %v1334_v35 = vpop.f32.mrb[4].mxu1  ;;  %v1253_v37 = vpop.f32.mrb[4].mxu0 }
 0x1c1   :  { %v1439_v38 = vrot.slane %v1334_v35, 1  ;;  %v1435_v39 = vrot.slane %v1253_v37, 1  ;;  %v2227_v40 = vpop.f32.mrb[5].mxu1  ;;  %1575 = vrot.lane.b32.xlu0 %v2875_v33, %s2547_s2  ;;  %v1255_v41 = vpop.f32.mrb[5].mxu0 }
 0x1c2   :  { %v1337_v42 = vpop.f32.mrb[6].mxu1  ;;  %v1437_v43 = vrot.slane %v1255_v41, 1  ;;  %v1257_v44 = vpop.f32.mrb[6].mxu0 }
 0x1c3   :  { %v1445_v45 = vrot.slane %v1337_v42, 1  ;;  %v1441_v46 = vrot.slane %v1257_v44, 1  ;;  %v2228_v47 = vpop.f32.mrb[7].mxu1  ;;  %v1259_v48 = vpop.f32.mrb[7].mxu0  ;;  %v1440_v16 = vsel %vm583_vm4, %v1433_v24, %v1439_v38  ;;  %v1436_v50 = vsel %vm583_vm4, %v1427_v25, %v1435_v39 }
 0x1c4   :  { %1573 = vrot.lane.b32.xlu1 %v2873_v32, %s2547_s2  ;;  %v1443_v51 = vrot.slane %v1259_v48, 1  ;;  %v2885_v52 = vmax.f32 %v1329_v54, %v1440_v16  ;;  %v1438_v17 = vsel %vm583_vm4, %v1430_v0, %v1437_v43  ;;  %v2888_v34 = vmax.f32 %v1247_v21, %v1436_v50 }
 0x1c5   :  { %v2890_v53 = vmax.f32 %v1249_v27, %v1438_v17  ;;  %v1446_v55 = vsel %vm583_vm4, %v1439_v38, %v1445_v45  ;;  %v1442_v56 = vsel %vm583_vm4, %v1435_v39, %v1441_v46 }
 0x1c6   :  { %1583 = vrot.lane.b32.xlu0 %v2885_v52, %s2547_s2  ;;  %v2896_v57 = vmax.f32 %v1334_v35, %v1446_v55  ;;  %v1444_v58 = vsel %vm583_vm4, %v1437_v43, %v1443_v51  ;;  %v2899_v59 = vmax.f32 %v1253_v37, %v1442_v56 }
 0x1c7   :  { %v2901_v61 = vmax.f32 %v1255_v41, %v1444_v58 }
 0x1c8   :  { %v1342_v36 = vpop.f32.mrb[8].mxu1  ;;  %1581 = vrot.lane.b32.xlu1 %v2890_v53, %s2547_s2  ;;  %v1263_v62 = vpop.f32.mrb[8].mxu0 }
 0x1c9   :  { %v1451_v63 = vrot.slane %v1342_v36, 1  ;;  %v1447_v49 = vrot.slane %v1263_v62, 1  ;;  %v2231_v4 = vpop.f32.mrb[9].mxu1  ;;  %v1265_v5 = vpop.f32.mrb[9].mxu0 }
 0x1ca   :  { %v1345_v2 = vpop.f32.mrb[10].mxu1  ;;  %1579 = vrot.lane.b32.xlu0 %v2888_v34, %s2547_s2  ;;  %v1449_v6 = vrot.slane %v1265_v5, 1  ;;  %v1267_v7 = vpop.f32.mrb[10].mxu0 }
 0x1cb   :  { %v1457_v8 = vrot.slane %v1345_v2, 1  ;;  %v1453_v9 = vrot.slane %v1267_v7, 1  ;;  %v2232_v10 = vpop.f32.mrb[11].mxu1  ;;  %v1269_v11 = vpop.f32.mrb[11].mxu0  ;;  %v1452_v12 = vsel %vm583_vm4, %v1445_v45, %v1451_v63  ;;  %v1448_v60 = vsel %vm583_vm4, %v1441_v46, %v1447_v49 }
 0x1cc   :  { %1589 = vrot.lane.b32.xlu1 %v2896_v57, %s2547_s2  ;;  %v1455_v13 = vrot.slane %v1269_v11, 1  ;;  %v2911_v14 = vmax.f32 %v1337_v42, %v1452_v12  ;;  %v1450_v15 = vsel %vm583_vm4, %v1443_v51, %v1449_v6  ;;  %v2914_v18 = vmax.f32 %v1257_v44, %v1448_v60 }
 0x1cd   :  { %v2916_v19 = vmax.f32 %v1259_v48, %v1450_v15  ;;  %v1458_v3 = vsel %vm583_vm4, %v1451_v63, %v1457_v8  ;;  %v1454_v20 = vsel %vm583_vm4, %v1447_v49, %v1453_v9 }
 0x1ce   :  { %1587 = vrot.lane.b32.xlu0 %v2901_v61, %s2547_s2  ;;  %v2922_v54 = vmax.f32 %v1342_v36, %v1458_v3  ;;  %v1456_v21 = vsel %vm583_vm4, %v1449_v6, %v1455_v13  ;;  %v2925_v22 = vmax.f32 %v1263_v62, %v1454_v20 }
 0x1cf   :  { %v2927_v23 = vmax.f32 %v1265_v5, %v1456_v21 }
 0x1d0   :  { %v1350_v24 = vpop.f32.mrb[12].mxu1  ;;  %1585 = vrot.lane.b32.xlu1 %v2899_v59, %s2547_s2  ;;  %v1273_v25 = vpop.f32.mrb[12].mxu0 }
 0x1d1   :  { %v1463_v26 = vrot.slane %v1350_v24, 1  ;;  %v1459_v27 = vrot.slane %v1273_v25, 1  ;;  %v2235_v28 = vpop.f32.mrb[13].mxu1  ;;  %v1275_v0 = vpop.f32.mrb[13].mxu0 }
 0x1d2   :  { %v1353_v1 = vpop.f32.mrb[14].mxu1  ;;  %1595 = vrot.lane.b32.xlu0 %v2911_v14, %s2547_s2  ;;  %v1461_v29 = vrot.slane %v1275_v0, 1  ;;  %v1277_v31 = vpop.f32.mrb[14].mxu0 }
 0x1d3   :  { %v1469_v35 = vrot.slane %v1353_v1, 1  ;;  %v1465_v37 = vrot.slane %v1277_v31, 1  ;;  %v2236_v38 = vpop.f32.mrb[15].mxu1  ;;  %v1279_v39 = vpop.f32.mrb[15].mxu0  ;;  %v1464_v40 = vsel %vm583_vm4, %v1457_v8, %v1463_v26  ;;  %v1460_v41 = vsel %vm583_vm4, %v1453_v9, %v1459_v27 }
 0x1d4   :  { %1593 = vrot.lane.b32.xlu1 %v2916_v19, %s2547_s2  ;;  %v1467_v42 = vrot.slane %v1279_v39, 1  ;;  %v2937_v43 = vmax.f32 %v1345_v2, %v1464_v40  ;;  %v1462_v44 = vsel %vm583_vm4, %v1455_v13, %v1461_v29  ;;  %v2940_v45 = vmax.f32 %v1267_v7, %v1460_v41 }
 0x1d5   :  { %v2942_v46 = vmax.f32 %v1269_v11, %v1462_v44  ;;  %v1470_v47 = vsel %vm583_vm4, %v1463_v26, %v1469_v35  ;;  %v1466_v48 = vsel %vm583_vm4, %v1459_v27, %v1465_v37 }
 0x1d6   :  { %1591 = vrot.lane.b32.xlu0 %v2914_v18, %s2547_s2  ;;  %v2948_v16 = vmax.f32 %v1350_v24, %v1470_v47  ;;  %v1468_v50 = vsel %vm583_vm4, %v1461_v29, %v1467_v42  ;;  %v2951_v51 = vmax.f32 %v1273_v25, %v1466_v48 }
 0x1d7   :  { %v2953_v17 = vmax.f32 %v1275_v0, %v1468_v50 }
 0x1d8   :  { %v1358_v55 = vpop.f32.mrb[16].mxu1  ;;  %1601 = vrot.lane.b32.xlu1 %v2922_v54, %s2547_s2  ;;  %v1283_v56 = vpop.f32.mrb[16].mxu0 }
 0x1d9   :  { %v1475_v58 = vrot.slane %v1358_v55, 1  ;;  %v1471_v36 = vrot.slane %v1283_v56, 1  ;;  %v2239_v62 = vpop.f32.mrb[17].mxu1  ;;  %v1285_v63 = vpop.f32.mrb[17].mxu0 }
 0x1da   :  { %v1361_v49 = vpop.f32.mrb[18].mxu1  ;;  %1599 = vrot.lane.b32.xlu0 %v2927_v23, %s2547_s2  ;;  %v1473_v4 = vrot.slane %v1285_v63, 1  ;;  %v1287_v5 = vpop.f32.mrb[18].mxu0 }
 0x1db   :  { %v1481_v2 = vrot.slane %v1361_v49, 1  ;;  %v1477_v6 = vrot.slane %v1287_v5, 1  ;;  %v2240_v7 = vpop.f32.mrb[19].mxu1  ;;  %v1289_v8 = vpop.f32.mrb[19].mxu0  ;;  %v1476_v9 = vsel %vm583_vm4, %v1469_v35, %v1475_v58  ;;  %v1472_v10 = vsel %vm583_vm4, %v1465_v37, %v1471_v36  ;;  %v1714_v35 = vld [vmem:[#allocation6] sm:$0x7] }
 0x1dc   :  { %1597 = vrot.lane.b32.xlu1 %v2925_v22, %s2547_s2  ;;  %v1479_v11 = vrot.slane %v1289_v8, 1  ;;  %v2963_v12 = vmax.f32 %v1353_v1, %v1476_v9  ;;  %v2965_v60 = vmax.f32 %v1277_v31, %v1472_v10  ;;  %v1474_v13 = vsel %vm583_vm4, %v1467_v42, %v1473_v4 }
 0x1dd   :  { %v2968_v15 = vmax.f32 %v1279_v39, %v1474_v13  ;;  %v1478_v3 = vsel %vm583_vm4, %v1471_v36, %v1477_v6  ;;  %v1482_v21 = vsel %vm583_vm4, %v1475_v58, %v1481_v2  ;;  %v2991_v27 = vmax.f32 %v1361_v49, %v1481_v2 }
 0x1de   :  { %1607 = vrot.lane.b32.xlu0 %v2937_v43, %s2547_s2  ;;  %v2973_v20 = vmax.f32 %v1283_v56, %v1478_v3  ;;  %v1480_v24 = vsel %vm583_vm4, %v1473_v4, %v1479_v11  ;;  %v2977_v25 = vmax.f32 %v1358_v55, %v1482_v21  ;;  %v2999_v28 = vmax.f32 %v1287_v5, %v1477_v6 }
 0x1df   :  { %v2979_v26 = vmax.f32 %v1285_v63, %v1480_v24  ;;  %v3005_v0 = vmax.f32 %v1289_v8, %v1479_v11  ;;  %v1716_v1 = vlaneseq }
 0x1e0   :  { %1605 = vrot.lane.b32.xlu1 %v2942_v46, %s2547_s2 }
 0x1e1   :  { %v1717_v29 = vshrl.u32 %v1716_v1, 7 }
 0x1e2   :  { %1603 = vrot.lane.b32.xlu0 %v2940_v45, %s2547_s2 }
 0x1e3   :  { %v1726_v31 = vsub.s32 2, %v1717_v29  ;;  %v1722_v37 = vsub.s32 1, %v1717_v29  ;;  %v1718_v40 = vsub.s32 0, %v1717_v29 }
 0x1e4   :  { %1613 = vrot.lane.b32.xlu1 %v2948_v16, %s2547_s2 }
 0x1e5   :  { %v3015_v38 = vrot.slane %v1714_v35, %v1726_v31  ;;  %v3018_v44 = vrot.slane %v1714_v35, %v1722_v37  ;;  %v3023_v55 = vrot.slane %v1714_v35, %v1718_v40 }
 0x1e6   :  { %1611 = vrot.lane.b32.xlu0 %v2953_v17, %s2547_s2 }
 0x1e8   :  { %1609 = vrot.lane.b32.xlu1 %v2951_v51, %s2547_s2 }
 0x1ea   :  { %1619 = vrot.lane.b32.xlu0 %v2963_v12, %s2547_s2 }
 0x1ec   :  { %1631 = vrot.lane.b32.xlu1 %v2991_v27, %s2547_s2 }
 0x1ee   :  { %1615 = vrot.lane.b32.xlu0 %v2965_v60, %s2547_s2 }
 0x1f0   :  { %1617 = vrot.lane.b32.xlu1 %v2968_v15, %s2547_s2 }
 0x1f2   :  { %1627 = vrot.lane.b32.xlu0 %v2999_v28, %s2547_s2 }
 0x1f4   :  { %1621 = vrot.lane.b32.xlu1 %v2973_v20, %s2547_s2 }
 0x1f6   :  { %1629 = vrot.lane.b32.xlu0 %v3005_v0, %s2547_s2 }
 0x1f8   :  { %1625 = vrot.lane.b32.xlu1 %v2977_v25, %s2547_s2 }
 0x1fa   :  { %1623 = vrot.lane.b32.xlu0 %v2979_v26, %s2547_s2 }
 0x232   :  { %v1578_v39 = vpop.permute.xlu1 %1577 }
 0x233   :  { %v1686_v41 = vmax.f32 %v2870_v30, %v1578_v39  ;;  %v1576_v42 = vpop.permute.xlu0 %1575 }
 0x234   :  { %v1635_v47 = vsel %vm1633_vm7, %v1576_v42, %v1578_v39 }
 0x235   :  { %v1733_v48 = vadd.f32 %v3015_v38, %v1686_v41  ;;  %v1685_v50 = vmax.f32 %v2875_v33, %v1635_v47 }
 0x236   :  { %v1574_v56 = vpop.permute.xlu1 %1573 }
 0x237   :  { %v1763_v58 = vmax.f32 %v1733_v48, 0.0  ;;  %v1634_v36 = vsel %vm1633_vm7, %v1574_v56, %v1576_v42  ;;  %v1732_v62 = vadd.f32 %v3018_v44, %v1685_v50 }
 0x238   :  { %v1684_v30 = vmax.f32 %v2873_v32, %v1634_v36  ;;  %v1584_v63 = vpop.permute.xlu0 %1583 }
 0x239   :  { %v2052_v49 = vpack.c.bf16 %v1763_v58, %v1763_v58  ;;  %v1689_v4 = vmax.f32 %v2885_v52, %v1584_v63  ;;  %v1762_v7 = vmax.f32 %v1732_v62, 0.0 }
 0x23a   :  { %v1731_v5 = vadd.f32 %v3023_v55, %v1684_v30  ;;  %v1582_v2 = vpop.permute.xlu1 %1581 }
 0x23b   :  { %1893 = vst.msk [vmem:[%s3193_s3 + $0x8] sm:$0xf] %vm1892_vm8, %v2052_v49  ;;  %v1736_v33 = vadd.f32 %v3015_v38, %v1689_v4  ;;  %v1637_v6 = vsel %vm1633_vm7, %v1582_v2, %v1584_v63 }
 0x23c   :  { %v1761_v8 = vmax.f32 %v1731_v5, 0.0  ;;  %v1688_v32 = vmax.f32 %v2890_v53, %v1637_v6  ;;  %v1580_v9 = vpop.permute.xlu0 %1579 }
 0x23d   :  { %v1766_v10 = vmax.f32 %v1736_v33, 0.0  ;;  %v1636_v52 = vsel %vm1633_vm7, %v1580_v9, %v1582_v2 }
 0x23e   :  { %v2051_v11 = vpack.c.bf16 %v1762_v7, %v1761_v8  ;;  %v1735_v13 = vadd.f32 %v3018_v44, %v1688_v32  ;;  %v1687_v3 = vmax.f32 %v2888_v34, %v1636_v52  ;;  %v1590_v21 = vpop.permute.xlu1 %1589 }
 0x23f   :  { %v2054_v24 = vpack.c.bf16 %v1766_v10, %v1766_v10  ;;  %v1692_v1 = vmax.f32 %v2896_v57, %v1590_v21 }
 0x240   :  { %1891 = vst [vmem:[%s3193_s3] sm:$0xff] %v2051_v11  ;;  %v1734_v29 = vadd.f32 %v3023_v55, %v1687_v3  ;;  %v1588_v53 = vpop.permute.xlu0 %1587  ;;  %v1765_v35 = vmax.f32 %v1735_v13, 0.0 }
 0x241   :  { %1895 = vst.msk [vmem:[%s3193_s3 + $0x14] sm:$0xf] %vm1892_vm8, %v2054_v24  ;;  %v1739_v31 = vadd.f32 %v3015_v38, %v1692_v1  ;;  %v1639_v34 = vsel %vm1633_vm7, %v1588_v53, %v1590_v21 }
 0x242   :  { %v1764_v37 = vmax.f32 %v1734_v29, 0.0  ;;  %v1691_v57 = vmax.f32 %v2901_v61, %v1639_v34  ;;  %v1586_v39 = vpop.permute.xlu1 %1585 }
 0x243   :  { %v1769_v40 = vmax.f32 %v1739_v31, 0.0  ;;  %v1638_v41 = vsel %vm1633_vm7, %v1586_v39, %v1588_v53 }
 0x244   :  { %v2053_v42 = vpack.c.bf16 %v1765_v35, %v1764_v37  ;;  %v1738_v47 = vadd.f32 %v3018_v44, %v1691_v57  ;;  %v1690_v48 = vmax.f32 %v2899_v59, %v1638_v41  ;;  %v1596_v50 = vpop.permute.xlu0 %1595 }
 0x245   :  { %v2056_v56 = vpack.c.bf16 %v1769_v40, %v1769_v40  ;;  %v1695_v58 = vmax.f32 %v2911_v14, %v1596_v50 }
 0x246   :  { %1894 = vst [vmem:[%s3193_s3 + $0xc] sm:$0xff] %v2053_v42  ;;  %v1737_v36 = vadd.f32 %v3023_v55, %v1690_v48  ;;  %v1594_v61 = vpop.permute.xlu1 %1593  ;;  %v1768_v30 = vmax.f32 %v1738_v47, 0.0 }
 0x247   :  { %1897 = vst.msk [vmem:[%s3193_s3 + $0x20] sm:$0xf] %vm1892_vm8, %v2056_v56  ;;  %v1742_v62 = vadd.f32 %v3015_v38, %v1695_v58  ;;  %v1641_v59 = vsel %vm1633_vm7, %v1594_v61, %v1596_v50 }
 0x248   :  { %v1767_v63 = vmax.f32 %v1737_v36, 0.0  ;;  %v1694_v14 = vmax.f32 %v2916_v19, %v1641_v59  ;;  %v1592_v49 = vpop.permute.xlu0 %1591 }
 0x249   :  { %v1772_v4 = vmax.f32 %v1742_v62, 0.0  ;;  %v1640_v5 = vsel %vm1633_vm7, %v1592_v49, %v1594_v61 }
 0x24a   :  { %v2055_v2 = vpack.c.bf16 %v1768_v30, %v1767_v63  ;;  %v1741_v33 = vadd.f32 %v3018_v44, %v1694_v14  ;;  %v1693_v6 = vmax.f32 %v2914_v18, %v1640_v5  ;;  %v1602_v7 = vpop.permute.xlu1 %1601 }
 0x24b   :  { %v2058_v8 = vpack.c.bf16 %v1772_v4, %v1772_v4  ;;  %v1698_v32 = vmax.f32 %v2922_v54, %v1602_v7 }
 0x24c   :  { %1896 = vst [vmem:[%s3193_s3 + $0x18] sm:$0xff] %v2055_v2  ;;  %v1740_v9 = vadd.f32 %v3023_v55, %v1693_v6  ;;  %v1600_v19 = vpop.permute.xlu0 %1599  ;;  %v1771_v52 = vmax.f32 %v1741_v33, 0.0 }
 0x24d   :  { %1899 = vst.msk [vmem:[%s3193_s3 + $0x2c] sm:$0xf] %vm1892_vm8, %v2058_v8  ;;  %v1745_v10 = vadd.f32 %v3015_v38, %v1698_v32  ;;  %v1643_v18 = vsel %vm1633_vm7, %v1600_v19, %v1602_v7 }
 0x24e   :  { %v1770_v11 = vmax.f32 %v1740_v9, 0.0  ;;  %v1697_v54 = vmax.f32 %v2927_v23, %v1643_v18  ;;  %v1598_v13 = vpop.permute.xlu1 %1597 }
 0x24f   :  { %v1775_v3 = vmax.f32 %v1745_v10, 0.0  ;;  %v1642_v21 = vsel %vm1633_vm7, %v1598_v13, %v1600_v19 }
 0x250   :  { %v2057_v24 = vpack.c.bf16 %v1771_v52, %v1770_v11  ;;  %v1744_v1 = vadd.f32 %v3018_v44, %v1697_v54  ;;  %v1696_v29 = vmax.f32 %v2925_v22, %v1642_v21  ;;  %v1608_v53 = vpop.permute.xlu0 %1607 }
 0x251   :  { %v2060_v31 = vpack.c.bf16 %v1775_v3, %v1775_v3  ;;  %v1701_v34 = vmax.f32 %v2937_v43, %v1608_v53 }
 0x252   :  { %1898 = vst [vmem:[%s3193_s3 + $0x24] sm:$0xff] %v2057_v24  ;;  %v1743_v35 = vadd.f32 %v3023_v55, %v1696_v29  ;;  %v1606_v23 = vpop.permute.xlu1 %1605  ;;  %v1774_v57 = vmax.f32 %v1744_v1, 0.0 }
 0x253   :  { %1901 = vst.msk [vmem:[%s3193_s3 + $0x38] sm:$0xf] %vm1892_vm8, %v2060_v31  ;;  %v1748_v37 = vadd.f32 %v3015_v38, %v1701_v34  ;;  %v1645_v22 = vsel %vm1633_vm7, %v1606_v23, %v1608_v53 }
 0x254   :  { %v1773_v39 = vmax.f32 %v1743_v35, 0.0  ;;  %v1700_v43 = vmax.f32 %v2942_v46, %v1645_v22  ;;  %v1604_v40 = vpop.permute.xlu0 %1603 }
 0x255   :  { %v1778_v41 = vmax.f32 %v1748_v37, 0.0  ;;  %v1644_v42 = vsel %vm1633_vm7, %v1604_v40, %v1606_v23 }
 0x256   :  { %v2059_v47 = vpack.c.bf16 %v1774_v57, %v1773_v39  ;;  %v1747_v48 = vadd.f32 %v3018_v44, %v1700_v43  ;;  %v1699_v50 = vmax.f32 %v2940_v45, %v1644_v42  ;;  %v1614_v56 = vpop.permute.xlu1 %1613 }
 0x257   :  { %v2062_v58 = vpack.c.bf16 %v1778_v41, %v1778_v41  ;;  %v1704_v36 = vmax.f32 %v2948_v16, %v1614_v56 }
 0x258   :  { %1900 = vst [vmem:[%s3193_s3 + $0x30] sm:$0xff] %v2059_v47  ;;  %v1746_v61 = vadd.f32 %v3023_v55, %v1699_v50  ;;  %v1612_v46 = vpop.permute.xlu0 %1611  ;;  %v1777_v59 = vmax.f32 %v1747_v48, 0.0 }
 0x259   :  { %1903 = vst.msk [vmem:[%s3193_s3 + $0x44] sm:$0xf] %vm1892_vm8, %v2062_v58  ;;  %v1751_v62 = vadd.f32 %v3015_v38, %v1704_v36  ;;  %v1647_v45 = vsel %vm1633_vm7, %v1612_v46, %v1614_v56 }
 0x25a   :  { %v1776_v30 = vmax.f32 %v1746_v61, 0.0  ;;  %v1703_v16 = vmax.f32 %v2953_v17, %v1647_v45  ;;  %v1610_v63 = vpop.permute.xlu1 %1609  ;;  %v1917_v45 = vld [vmem:[%s3193_s3 + $0x6c] sm:$0x33] }
 0x25b   :  { %v1781_v14 = vmax.f32 %v1751_v62, 0.0  ;;  %v1646_v49 = vsel %vm1633_vm7, %v1610_v63, %v1612_v46 }
 0x25c   :  { %v2061_v4 = vpack.c.bf16 %v1777_v59, %v1776_v30  ;;  %v1750_v5 = vadd.f32 %v3018_v44, %v1703_v16  ;;  %v1702_v2 = vmax.f32 %v2951_v51, %v1646_v49  ;;  %v1620_v33 = vpop.permute.xlu0 %1619 }
 0x25d   :  { %v2064_v6 = vpack.c.bf16 %v1781_v14, %v1781_v14  ;;  %v1707_v7 = vmax.f32 %v2963_v12, %v1620_v33 }
 0x25e   :  { %1902 = vst [vmem:[%s3193_s3 + $0x3c] sm:$0xff] %v2061_v4  ;;  %v1749_v8 = vadd.f32 %v3023_v55, %v1702_v2  ;;  %v1632_v17 = vpop.permute.xlu1 %1631  ;;  %v1780_v9 = vmax.f32 %v1750_v5, 0.0 }
 0x25f   :  { %1905 = vst.msk [vmem:[%s3193_s3 + $0x50] sm:$0xf] %vm1892_vm8, %v2064_v6  ;;  %v1754_v32 = vadd.f32 %v3015_v38, %v1707_v7  ;;  %v1713_v51 = vmax.f32 %v2991_v27, %v1632_v17  ;;  %v1922_v27 = vld [vmem:[%s3193_s3 + $0x74] sm:$0x3] }
 0x260   :  { %v1779_v19 = vmax.f32 %v1749_v8, 0.0  ;;  %v1616_v10 = vpop.permute.xlu0 %1615 }
 0x261   :  { %v1784_v12 = vmax.f32 %v1754_v32, 0.0  ;;  %v1760_v18 = vadd.f32 %v3015_v38, %v1713_v51 }
 0x262   :  { %v2063_v52 = vpack.c.bf16 %v1780_v9, %v1779_v19  ;;  %v1618_v11 = vpop.permute.xlu1 %1617 }
 0x263   :  { %v2066_v54 = vpack.c.bf16 %v1784_v12, %v1784_v12  ;;  %v1790_v13 = vmax.f32 %v1760_v18, 0.0  ;;  %v1648_v3 = vsel %vm1633_vm7, %v1616_v10, %v1618_v11  ;;  %v1649_v21 = vsel %vm1633_vm7, %v1618_v11, %v1620_v33 }
 0x264   :  { %1904 = vst [vmem:[%s3193_s3 + $0x48] sm:$0xff] %v2063_v52  ;;  %v1705_v24 = vmax.f32 %v2965_v60, %v1648_v3  ;;  %v1706_v1 = vmax.f32 %v2968_v15, %v1649_v21  ;;  %v1628_v29 = vpop.permute.xlu0 %1627 }
 0x265   :  { %1907 = vst.msk [vmem:[%s3193_s3 + $0x5c] sm:$0xf] %vm1892_vm8, %v2066_v54  ;;  %v2070_v53 = vpack.c.bf16 %v1790_v13, %v1790_v13 }
 0x266   :  { %v1752_v31 = vadd.f32 %v3023_v55, %v1705_v24  ;;  %v1753_v34 = vadd.f32 %v3018_v44, %v1706_v1  ;;  %v1622_v35 = vpop.permute.xlu1 %1621 }
 0x267   :  { %v1923_v23 = vsel %vm1921_vm11, %v2070_v53, %v1922_v27 }
 0x268   :  { %1924 = vst [vmem:[%s3193_s3 + $0x74] sm:$0x3] %v1923_v23  ;;  %v1782_v60 = vmax.f32 %v1752_v31, 0.0  ;;  %v1783_v15 = vmax.f32 %v1753_v34, 0.0  ;;  %v1630_v37 = vpop.permute.xlu0 %1629 }
 0x269   :  { %v1652_v22 = vsel %vm1633_vm7, %v1628_v29, %v1630_v37  ;;  %v1653_v57 = vsel %vm1633_vm7, %v1630_v37, %v1632_v17 }
 0x26a   :  { %v2065_v39 = vpack.c.bf16 %v1783_v15, %v1782_v60  ;;  %v1711_v43 = vmax.f32 %v2999_v28, %v1652_v22  ;;  %v1712_v40 = vmax.f32 %v3005_v0, %v1653_v57  ;;  %v1626_v41 = vpop.permute.xlu1 %1625 }
 0x26b   :  { %v1710_v47 = vmax.f32 %v2977_v25, %v1626_v41 }
 0x26c   :  { %1906 = vst [vmem:[%s3193_s3 + $0x54] sm:$0xff] %v2065_v39  ;;  %v1758_v28 = vadd.f32 %v3023_v55, %v1711_v43  ;;  %v1759_v0 = vadd.f32 %v3018_v44, %v1712_v40  ;;  %v1624_v50 = vpop.permute.xlu0 %1623 }
 0x26d   :  { %v1757_v56 = vadd.f32 %v3015_v38, %v1710_v47  ;;  %v1650_v58 = vsel %vm1633_vm7, %v1622_v35, %v1624_v50  ;;  %v1651_v36 = vsel %vm1633_vm7, %v1624_v50, %v1626_v41 }
 0x26e   :  { %v1788_v25 = vmax.f32 %v1758_v28, 0.0  ;;  %v1789_v61 = vmax.f32 %v1759_v0, 0.0  ;;  %v1708_v46 = vmax.f32 %v2973_v20, %v1650_v58  ;;  %v1709_v62 = vmax.f32 %v2979_v26, %v1651_v36 }
 0x26f   :  { %v1787_v38 = vmax.f32 %v1757_v56, 0.0 }
 0x270   :  { %v2069_v59 = vpack.c.bf16 %v1789_v61, %v1788_v25  ;;  %v1755_v30 = vadd.f32 %v3023_v55, %v1708_v46  ;;  %v1756_v16 = vadd.f32 %v3018_v44, %v1709_v62 }
 0x271   :  { %v2068_v63 = vpack.c.bf16 %v1787_v38, %v1787_v38 }
 0x272   :  { %v1918_v14 = vsel %vm1916_vm1, %v2069_v59, %v1917_v45  ;;  %v1785_v20 = vmax.f32 %v1755_v30, 0.0  ;;  %v1786_v49 = vmax.f32 %v1756_v16, 0.0 }
 0x273   :  { %1919 = vst [vmem:[%s3193_s3 + $0x6c] sm:$0x33] %v1918_v14  ;;  %1909 = vst.msk [vmem:[%s3193_s3 + $0x68] sm:$0xf] %vm1892_vm8, %v2068_v63 }
 0x274   :  { %v2067_v26 = vpack.c.bf16 %v1786_v49, %v1785_v20 }
 0x276   :  { %1908 = vst [vmem:[%s3193_s3 + $0x60] sm:$0xff] %v2067_v26 }
 0x277   :  { %1929 = vsyncpa [#allocation3], 1 }
 0x278   :  { %1930 = vsyncpa [#allocation5], 1 }

// kernel: _lambda_.3
= control target key start
LH: loop header
LB: loop body
LE: loop exit
PB: predicated region body
PF: predicated region fallthrough
CT: control target
= control target key end

     0   :  { %v5987_v5 = vmov 1966171168   ;;  %v114_v7 = vlaneseq  ;;  %vm347_vm0 = vcmask 424960   ;;  %vm354_vm1 = vcmask 1041408   ;;  %s7832_s0 = inlined_call_operand.vmem [shape: bf16[18,2,180], index: 0, kind: input, shape index: {}]   ;;  %s7833_s1 = inlined_call_operand.vmem [shape: bf16[5,180,224], index: 1, kind: input, shape index: {}]   ;;  %s7834_s2 = inlined_call_operand.vmem [shape: f32[1,208], index: 2, kind: input, shape index: {}]   ;;  %s7835_s3 = inlined_call_operand.vmem [shape: bf16[7,208,384], index: 3, kind: input, shape index: {}]   ;;  %s7836_s4 = inlined_call_operand.vmem [shape: f32[1,384], index: 4, kind: input, shape index: {}]   ;;  %s7837_s5 = inlined_call_operand.vmem [shape: bf16[384,128], index: 5, kind: input, shape index: {}]   ;;  %s7838_s6 = inlined_call_operand.vmem [shape: f32[1,128], index: 6, kind: input, shape index: {}]   ;;  %s7839_s7 = inlined_call_operand.hbm [shape: f32[2,128], index: 7, kind: output, shape index: {}]  }
   0x1   :  { %v5396_v0 = vld [vmem:[%s7833_s1 + $0xbc] ss:$8 sps:$4 sm:$0xff]   ;;  %v5398_v1 = vld [vmem:[%s7833_s1 + $0xb8] ss:$8 sps:$4 sm:$0xff]   ;;  %v5399_v2 = vld [vmem:[%s7833_s1 + $0xcc] ss:$8 sps:$4 sm:$0xff]   ;;  %v112_v6 = vunpack.c.l.s4 %v5987_v5 }
   0x2   :  { %361 = vmatprep.subr.bf16.mxu0 %v5396_v0  ;;  %v5401_v3 = vld [vmem:[%s7833_s1 + $0xc8] ss:$8 sps:$4 sm:$0xff]   ;;  %v5402_v4 = vld [vmem:[%s7833_s1 + $0xdc] ss:$8 sps:$4 sm:$0xff]   ;;  %v5404_v8 = vld [vmem:[%s7833_s1 + $0xd8] ss:$8 sps:$4 sm:$0xff]  }
   0x3   :  { %362 = vmatpush1.bf16.msra.mxu0 %v5398_v1  ;;  %v5405_v9 = vld [vmem:[%s7833_s1 + $0xec] ss:$8 sps:$4 sm:$0xff]   ;;  %v113_v10 = vunpack.c.0.s8 %v112_v6  ;;  %v6054_v11 = vshrl.u32 %v114_v7, 7  ;;  %v5407_v12 = vld [vmem:[%s7833_s1 + $0xe8] ss:$8 sps:$4 sm:$0xff]  }
   0x4   :  { %363 = vmatprep.subr.bf16.mxu0 %v5399_v2  ;;  %v5408_v13 = vld [vmem:[%s7833_s1 + $0xfc] ss:$8 sps:$4 sm:$0xff]   ;;  %v5410_v14 = vld [vmem:[%s7833_s1 + $0xf8] ss:$8 sps:$4 sm:$0xff]   ;;  %v5411_v16 = vld [vmem:[%s7833_s1 + $0x10c] ss:$8 sps:$4 sm:$0xff]  }
   0x5   :  { %v6066_v15 = vsub.s32 %v113_v10, %v6054_v11  ;;  %v6074_v17 = vld [vmem:[%s7832_s0 + $0x2] sm:$0x3]  ;;  %v30_v18 = vld [vmem:[%s7832_s0 + $0x4] sm:$0x3]  ;;  %v31_v19 = vld [vmem:[%s7832_s0 + $0x6] sm:$0x3] }
   0x6   :  { %v32_v20 = vld [vmem:[%s7832_s0 + $0x8] sm:$0x3]  ;;  %v33_v21 = vld [vmem:[%s7832_s0 + $0xa] sm:$0x3]  ;;  %v107_v22 = vcombine.low %v6074_v17, %v30_v18  ;;  %v34_v23 = vld [vmem:[%s7832_s0 + $0xc] sm:$0x3]  ;;  %v416_v34 = vcombine.low %v30_v18, %v31_v19 }
   0x7   :  { %364 = vmatpush1.bf16.msra.mxu0 %v5401_v3  ;;  %v35_v24 = vld [vmem:[%s7832_s0 + $0xe] sm:$0x3]  ;;  %v108_v25 = vcombine.low %v31_v19, %v32_v20  ;;  %v36_v26 = vld [vmem:[%s7832_s0 + $0x10] sm:$0x3]  ;;  %v109_v27 = vcombine.low %v33_v21, %v34_v23  ;;  %v5414_v32 = vld [vmem:[%s7833_s1 + $0x11c] ss:$8 sps:$4 sm:$0xff]   ;;  %v417_v35 = vcombine.low %v32_v20, %v33_v21 }
   0x8   :  { %365 = vmatprep.subr.bf16.mxu0 %v5402_v4  ;;  %v6099_v28 = vrot.slane %v107_v22, %v6066_v15  ;;  %v5413_v29 = vld [vmem:[%s7833_s1 + $0x108] ss:$8 sps:$4 sm:$0xff]   ;;  %v110_v30 = vcombine.low %v35_v24, %v36_v26  ;;  %v418_v39 = vcombine.low %v34_v23, %v35_v24  ;;  %v5416_v41 = vld [vmem:[%s7833_s1 + $0x118] ss:$8 sps:$4 sm:$0xff]   ;;  %v5417_v44 = vld [vmem:[%s7833_s1 + $0x12c] ss:$8 sps:$4 sm:$0xff]   ;;  %v6131_v45 = vrot.slane %v416_v34, %v6066_v15 }
   0x9   :  { %v6105_v31 = vrot.slane %v108_v25, %v6066_v15  ;;  %v6111_v33 = vrot.slane %v109_v27, %v6066_v15  ;;  %v37_v36 = vld [vmem:[%s7832_s0 + $0x12] sm:$0x3]  ;;  %v6134_v46 = vrot.slane %v417_v35, %v6066_v15  ;;  %v5420_v52 = vld [vmem:[%s7833_s1 + $0x13c] ss:$8 sps:$4 sm:$0xff]   ;;  %v38_v54 = vld [vmem:[%s7832_s0 + $0x14] sm:$0x3] }
   0xa   :  { %v6117_v37 = vrot.slane %v110_v30, %v6066_v15  ;;  %v481_v40 = vcombine.low %v36_v26, %v37_v36  ;;  %v6138_v48 = vrot.slane %v418_v39, %v6066_v15  ;;  %v5419_v51 = vld [vmem:[%s7833_s1 + $0x128] ss:$8 sps:$4 sm:$0xff]   ;;  %v5422_v58 = vld [vmem:[%s7833_s1 + $0x138] ss:$8 sps:$4 sm:$0xff]   ;;  %v5423_v59 = vld [vmem:[%s7833_s1 + $0x14c] ss:$8 sps:$4 sm:$0xff]   ;;  %v173_v60 = vcombine.low %v37_v36, %v38_v54 }
   0xb   :  { %366 = vmatpush1.bf16.msra.mxu0 %v5404_v8  ;;  %v140_v38 = vcombine.high %v6099_v28, %v6105_v31  ;;  %v745_v50 = vcombine.low %v6131_v45, %v6134_v46  ;;  %v39_v61 = vld [vmem:[%s7832_s0 + $0x16] sm:$0x3]  ;;  %v6175_v62 = vld [vmem:[%s7832_s0 + $0x18] sm:$0x3]  ;;  %v6180_v63 = vld [vmem:[%s7832_s0 + $0x1a] sm:$0x3] }
   0xc   :  { %367 = vmatprep.subr.bf16.mxu0 %v5405_v9  ;;  %v142_v42 = vcombine.high %v6111_v33, %v6117_v37  ;;  %v6141_v49 = vrot.slane %v481_v40, %v6066_v15  ;;  %v6187_v1 = vld [vmem:[%s7832_s0 + $0x1c] sm:$0x3]  ;;  %v174_v2 = vcombine.low %v39_v61, %v6175_v62  ;;  %v482_v3 = vcombine.low %v38_v54, %v39_v61  ;;  %v5425_v4 = vld [vmem:[%s7833_s1 + $0x148] ss:$8 sps:$4 sm:$0xff]   ;;  %v28_v9 = vld [vmem:[%s7832_s0] sm:$0x3] }
   0xd   :  { %v156_v43 = vrot.slane %v140_v38, %v6066_v15  ;;  %v6157_v56 = vrot.slane %v745_v50, %v6066_v15  ;;  %v175_v5 = vcombine.low %v6180_v63, %v6187_v1  ;;  %v5426_v6 = vld [vmem:[%s7833_s1 + $0x15c] ss:$8 sps:$4 sm:$0xff]   ;;  %v6199_v7 = vrot.slane %v173_v60, %v6066_v15  ;;  %v5428_v20 = vld [vmem:[%s7833_s1 + $0x158] ss:$8 sps:$4 sm:$0xff]  }
   0xe   :  { %v170_v47 = vrot.slane %v142_v42, %v6066_v15  ;;  %v747_v55 = vcombine.low %v6138_v48, %v6141_v49  ;;  %v6202_v8 = vrot.slane %v174_v2, %v6066_v15  ;;  %v141_v18 = vcombine.low %v6111_v33, %v6117_v37  ;;  %v5433_v36 = vld [vmem:[%s7833_s1 + $0x4] ss:$8 sps:$4 sm:$0xff]   ;;  %v5431_v40 = vld [vmem:[%s7833_s1] ss:$8 sps:$4 sm:$0xff]   ;;  %v5442_v60 = vld [vmem:[%s7833_s1 + $0x34] ss:$8 sps:$4 sm:$0xff]  }
   0xf   :  { %368 = vmatpush1.bf16.msra.mxu0 %v5407_v12  ;;  %v6208_v10 = vrot.slane %v175_v5, %v6066_v15  ;;  %v449_v12 = vcombine.low %v6134_v46, %v6138_v48  ;;  %v415_v21 = vcombine.low %v28_v9, %v6074_v17  ;;  %v5439_v54 = vld [vmem:[%s7833_s1 + $0x24] ss:$8 sps:$4 sm:$0xff]   ;;  %v5440_v61 = vld [vmem:[%s7833_s1 + $0x30] ss:$8 sps:$4 sm:$0xff]   ;;  %v1035_v5 = vcombine.low %v6105_v31, %v6111_v33 }
  0x10   :  { %369 = vmatprep.subr.bf16.mxu0 %v5408_v13  ;;  %v172_v53 = vcombine.low %v156_v43, %v170_v47  ;;  %v6161_v57 = vrot.slane %v747_v55, %v6066_v15  ;;  %v6213_v13 = vrot.slane %v482_v3, %v6066_v15  ;;  %v198_v22 = vcombine.high %v6199_v7, %v6202_v8  ;;  %v5445_v2 = vld [vmem:[%s7833_s1 + $0x44] ss:$8 sps:$4 sm:$0xff]  }
  0x11   :  { %v199_v23 = vcombine.high %v6208_v10, %v6208_v10  ;;  %v6233_v26 = vrot.slane %v449_v12, %v6066_v15  ;;  %v163_v17 = vrot.slane %v141_v18, %v6066_v15  ;;  %v6245_v34 = vrot.slane %v415_v21, %v6066_v15  ;;  %v5454_v21 = vld [vmem:[%s7833_s1 + $0x74] ss:$8 sps:$4 sm:$0xff]  }
  0x12   :  { %4504 = vmatprep.mubr.msk.bf16.mxu0 %vm347_vm0, %v172_v53  ;;  %v777_v0 = vcombine.low %v6157_v56, %v6161_v57  ;;  %v505_v19 = vcombine.low %v6141_v49, %v6213_v13  ;;  %v213_v30 = vrot.slane %v198_v22, %v6066_v15  ;;  %v197_v39 = vcombine.low %v6199_v7, %v6202_v8  ;;  %v5452_v22 = vld [vmem:[%s7833_s1 + $0x70] ss:$8 sps:$4 sm:$0xff]   ;;  %v5512_v56 = vld [vmem:[%s7833_s1 + $0x25c] ss:$8 sps:$4 sm:$0xff]  }
  0x13   :  { %370 = vmatpush1.bf16.msra.mxu0 %v5410_v14  ;;  %v4478_v14 = vld [vmem:[%s7833_s1 + $0x168] sm:$0x33]  ;;  %v448_v42 = vcombine.high %v6245_v34, %v6131_v45  ;;  %v450_v43 = vcombine.high %v6134_v46, %v6138_v48  ;;  %v220_v50 = vrot.slane %v6208_v10, %v6066_v15  ;;  %v1036_v3 = vcombine.high %v6105_v31, %v6111_v33 }
  0x14   :  { %371 = vmatprep.subr.bf16.mxu0 %v5411_v16  ;;  %v139_v16 = vcombine.low %v6099_v28, %v6105_v31  ;;  %v4502_v24 = vcombine.high %v4478_v14, %v4478_v14  ;;  %v4501_v25 = vcombine.low %v4478_v14, %v4478_v14  ;;  %v6236_v27 = vrot.slane %v505_v19, %v6066_v15  ;;  %v5443_v14 = vld [vmem:[%s7833_s1 + $0x40] ss:$8 sps:$4 sm:$0xff]   ;;  %v5448_v31 = vld [vmem:[%s7833_s1 + $0x54] ss:$8 sps:$4 sm:$0xff]   ;;  %v5451_v19 = vld [vmem:[%s7833_s1 + $0x64] ss:$8 sps:$4 sm:$0xff]  }
  0x15   :  { %v206_v47 = vrot.slane %v197_v39, %v6066_v15  ;;  %v6273_v53 = vrot.slane %v450_v43, %v6066_v15  ;;  %v6301_v9 = vrot.slane %v1036_v3, %v6066_v15  ;;  %v5477_v3 = vld [vmem:[%s7833_s1 + $0x1a4] ss:$8 sps:$4 sm:$0xff]  }
  0x16   :  { %v149_v28 = vrot.slane %v139_v16, %v6066_v15  ;;  %v356_v35 = vsel %vm354_vm1, %v4501_v25, 0  ;;  %v6310_v16 = vrot.slane %v1035_v5, %v6066_v15  ;;  %v5460_v25 = vld [vmem:[%s7833_s1 + $0x94] ss:$8 sps:$4 sm:$0xff]   ;;  %v5475_v5 = vld [vmem:[%s7833_s1 + $0x1a0] ss:$8 sps:$4 sm:$0xff]  }
  0x17   :  { %372 = vmatpush1.bf16.msra.mxu0 %v5413_v29  ;;  %v1325_v29 = vcombine.low %v6233_v26, %v6236_v27  ;;  %v228_v55 = vcombine.low %v206_v47, %v220_v50  ;;  %v5466_v50 = vld [vmem:[%s7833_s1 + $0x170] ss:$8 sps:$4 sm:$0xff]  }
  0x18   :  { %373 = vmatprep.subr.bf16.mxu0 %v5414_v32  ;;  %v227_v32 = vrot.slane %v199_v23, %v6066_v15  ;;  %v171_v38 = vcombine.low %v149_v28, %v163_v17  ;;  %v5457_v23 = vld [vmem:[%s7833_s1 + $0x84] ss:$8 sps:$4 sm:$0xff]   ;;  %v483_v28 = vcombine.low %v6175_v62, %v6180_v63  ;;  %v5458_v17 = vld [vmem:[%s7833_s1 + $0x90] ss:$8 sps:$4 sm:$0xff]   ;;  %v447_v62 = vcombine.low %v6245_v34, %v6131_v45  ;;  %v5461_v63 = vld [vmem:[%s7833_s1 + $0xa0] ss:$8 sps:$4 sm:$0xff]  }
  0x19   :  { %v5468_v34 = vld [vmem:[%s7833_s1 + $0x174] ss:$8 sps:$4 sm:$0xff]  }
  0x1b   :  { %374 = vmatpush1.bf16.msra.mxu0 %v5416_v41  ;;  %v229_v41 = vcombine.low %v213_v30, %v227_v32  ;;  %v6352_v30 = vrot.slane %v483_v28, %v6066_v15  ;;  %v5463_v32 = vld [vmem:[%s7833_s1 + $0xa4] ss:$8 sps:$4 sm:$0xff]   ;;  %v5490_v28 = vld [vmem:[%s7833_s1 + $0x1f0] ss:$8 sps:$4 sm:$0xff]  }
  0x1c   :  { %375 = vmatprep.subr.bf16.mxu0 %v5417_v44  ;;  %v5436_v44 = vld [vmem:[%s7833_s1 + $0x14] ss:$8 sps:$4 sm:$0xff]  }
  0x1f   :  { %376 = vmatpush1.bf16.msra.mxu0 %v5419_v51  ;;  %v5434_v51 = vld [vmem:[%s7833_s1 + $0x10] ss:$8 sps:$4 sm:$0xff]  }
  0x20   :  { %377 = vmatprep.subr.bf16.mxu0 %v5420_v52  ;;  %v464_v52 = vrot.slane %v448_v42, %v6066_v15 }
  0x23   :  { %378 = vmatpush1.bf16.msra.mxu0 %v5422_v58  ;;  %v5437_v58 = vld [vmem:[%s7833_s1 + $0x20] ss:$8 sps:$4 sm:$0xff]  }
  0x24   :  { %379 = vmatprep.subr.bf16.mxu0 %v5423_v59  ;;  %v480_v59 = vcombine.low %v464_v52, %v6273_v53 }
  0x27   :  { %380 = vmatpush1.bf16.msra.mxu0 %v5425_v4  ;;  %v1038_v4 = vcombine.high %v6117_v37, %v6199_v7 }
  0x28   :  { %381 = vmatprep.subr.bf16.mxu0 %v5426_v6  ;;  %v1037_v6 = vcombine.low %v6117_v37, %v6199_v7  ;;  %v5446_v7 = vld [vmem:[%s7833_s1 + $0x50] ss:$8 sps:$4 sm:$0xff]  }
  0x29   :  { %v6304_v12 = vrot.slane %v1038_v4, %v6066_v15 }
  0x2a   :  { %v6313_v18 = vrot.slane %v1037_v6, %v6066_v15  ;;  %v5480_v6 = vld [vmem:[%s7833_s1 + $0x1b4] ss:$8 sps:$4 sm:$0xff]  }
  0x2b   :  { %382 = vmatpush1.bf16.msra.mxu0 %v5428_v20  ;;  %v1068_v33 = vcombine.low %v6301_v9, %v6304_v12  ;;  %v5449_v20 = vld [vmem:[%s7833_s1 + $0x60] ss:$8 sps:$4 sm:$0xff]   ;;  %v5521_v9 = vld [vmem:[%s7833_s1 + $0x28c] ss:$8 sps:$4 sm:$0xff]  }
  0x2c   :  { %4503 = vmatprep.subr.msk.bf16.mxu0 %vm354_vm1, %v4502_v24  ;;  %v1067_v37 = vcombine.low %v6310_v16, %v6313_v18  ;;  %v5455_v24 = vld [vmem:[%s7833_s1 + $0x80] ss:$8 sps:$4 sm:$0xff]   ;;  %v5547_v18 = vld [vmem:[%s7833_s1 + $0x314] ss:$8 sps:$4 sm:$0xff]  }
  0x2d   :  { %v5519_v12 = vld [vmem:[%s7833_s1 + $0x288] ss:$8 sps:$4 sm:$0xff]  }
  0x2e   :  { %v5542_v16 = vld [vmem:[%s7833_s1 + $0x300] ss:$8 sps:$4 sm:$0xff]  }
  0x2f   :  { %384 = vmatpush1.bf16.msra.mxu0 %v356_v35  ;;  %v68_v35 = vld [vmem:[%s7833_s1 + $0xb0] sm:$0x33] }
  0x30   :  { %667 = vmatprep.subr.bf16.mxu0 %v5433_v36  ;;  %v506_v36 = vcombine.high %v6141_v49, %v6213_v13  ;;  %v4529_v39 = vcombine.high %v68_v35, %v68_v35 }
  0x32   :  { %394 = vmatmul.mubr.bf16.vlgmr.msra.gmra.mrb[0].mxu0 %v171_v38  ;;  %v507_v38 = vcombine.high %v6352_v30, %v6352_v30  ;;  %v6374_v42 = vrot.slane %v506_v36, %v6066_v15 }
  0x33   :  { %668 = vmatpush1.bf16.msra.mxu0 %v5431_v40  ;;  %4505 = vmatprep.mubr.msk.bf16.mxu0 %vm347_vm0, %v229_v41  ;;  %v4528_v40 = vcombine.low %v68_v35, %v68_v35  ;;  %v457_v41 = vrot.slane %v447_v62, %v6066_v15  ;;  %v5493_v62 = vld [vmem:[%s7833_s1 + $0x200] ss:$8 sps:$4 sm:$0xff]  }
  0x34   :  { %669 = vmatprep.subr.bf16.mxu0 %v5436_v44  ;;  %v535_v43 = vrot.slane %v507_v38, %v6066_v15 }
  0x35   :  { %v662_v44 = vsel %vm354_vm1, %v4528_v40, 0  ;;  %v479_v47 = vcombine.low %v457_v41, %v6233_v26 }
  0x36   :  { %v537_v52 = vcombine.low %v6374_v42, %v535_v43 }
  0x37   :  { %670 = vmatpush1.bf16.msra.mxu0 %v5434_v51  ;;  %v5471_v51 = vld [vmem:[%s7833_s1 + $0x184] ss:$8 sps:$4 sm:$0xff]  }
  0x38   :  { %671 = vmatprep.subr.bf16.mxu0 %v5439_v54  ;;  %v746_v54 = vcombine.high %v6131_v45, %v6134_v46 }
  0x3a   :  { %404 = vmatmul.mubr.bf16.gmra.mrb[4].mxu0 %v228_v55  ;;  %v748_v55 = vcombine.high %v6138_v48, %v6141_v49  ;;  %v762_v45 = vrot.slane %v746_v54, %v6066_v15  ;;  %v1078_v48 = vcombine.high %v6202_v8, %v6208_v10  ;;  %v1077_v49 = vcombine.low %v6202_v8, %v6208_v10  ;;  %v5504_v54 = vld [vmem:[%s7833_s1 + $0x238] ss:$8 sps:$4 sm:$0xff]  }
  0x3b   :  { %672 = vmatpush1.bf16.msra.mxu0 %v5437_v58  ;;  %4531 = vmatprep.mubr.msk.bf16.mxu0 %vm347_vm0, %v480_v59  ;;  %v528_v58 = vrot.slane %v6352_v30, %v6066_v15  ;;  %v5469_v59 = vld [vmem:[%s7833_s1 + $0x180] ss:$8 sps:$4 sm:$0xff]   ;;  %v1326_v8 = vcombine.low %v6273_v53, %v6374_v42  ;;  %v5545_v10 = vld [vmem:[%s7833_s1 + $0x310] ss:$8 sps:$4 sm:$0xff]   ;;  %v5553_v53 = vld [vmem:[%s7833_s1 + $0x334] ss:$8 sps:$4 sm:$0xff]  }
  0x3c   :  { %673 = vmatprep.subr.bf16.mxu0 %v5442_v60  ;;  %v5474_v60 = vld [vmem:[%s7833_s1 + $0x194] ss:$8 sps:$4 sm:$0xff]   ;;  %v776_v46 = vrot.slane %v748_v55, %v6066_v15  ;;  %v5551_v42 = vld [vmem:[%s7833_s1 + $0x330] ss:$8 sps:$4 sm:$0xff]  }
  0x3d   :  { %v5509_v55 = vld [vmem:[%s7833_s1 + $0x24c] ss:$8 sps:$4 sm:$0xff]  }
  0x3e   :  { %v778_v4 = vcombine.low %v762_v45, %v776_v46  ;;  %v5513_v45 = vld [vmem:[%s7833_s1 + $0x268] ss:$8 sps:$4 sm:$0xff]   ;;  %v5518_v46 = vld [vmem:[%s7833_s1 + $0x27c] ss:$8 sps:$4 sm:$0xff]  }
  0x3f   :  { %674 = vmatpush1.bf16.msra.mxu0 %v5440_v61  ;;  %v536_v61 = vcombine.low %v6236_v27, %v528_v58 }
  0x40   :  { %675 = vmatprep.subr.bf16.mxu0 %v5445_v2  ;;  %v5472_v2 = vld [vmem:[%s7833_s1 + $0x190] ss:$8 sps:$4 sm:$0xff]  }
  0x43   :  { %676 = vmatpush1.bf16.msra.mxu0 %v5443_v14  ;;  %v5478_v14 = vld [vmem:[%s7833_s1 + $0x1b0] ss:$8 sps:$4 sm:$0xff]  }
  0x44   :  { %677 = vmatprep.subr.bf16.mxu0 %v5448_v31  ;;  %v5483_v31 = vld [vmem:[%s7833_s1 + $0x1c4] ss:$8 sps:$4 sm:$0xff]  }
  0x47   :  { %678 = vmatpush1.bf16.msra.mxu0 %v5446_v7  ;;  %v5481_v7 = vld [vmem:[%s7833_s1 + $0x1c0] ss:$8 sps:$4 sm:$0xff]  }
  0x48   :  { %679 = vmatprep.subr.bf16.mxu0 %v5451_v19  ;;  %v5486_v19 = vld [vmem:[%s7833_s1 + $0x1d4] ss:$8 sps:$4 sm:$0xff]  }
  0x4b   :  { %680 = vmatpush1.bf16.msra.mxu0 %v5449_v20  ;;  %v5484_v20 = vld [vmem:[%s7833_s1 + $0x1d0] ss:$8 sps:$4 sm:$0xff]  }
  0x4c   :  { %681 = vmatprep.subr.bf16.mxu0 %v5454_v21  ;;  %v5489_v21 = vld [vmem:[%s7833_s1 + $0x1e4] ss:$8 sps:$4 sm:$0xff]  }
  0x4f   :  { %682 = vmatpush1.bf16.msra.mxu0 %v5452_v22  ;;  %v5487_v22 = vld [vmem:[%s7833_s1 + $0x1e0] ss:$8 sps:$4 sm:$0xff]  }
  0x50   :  { %683 = vmatprep.subr.bf16.mxu0 %v5457_v23  ;;  %v5492_v23 = vld [vmem:[%s7833_s1 + $0x1f4] ss:$8 sps:$4 sm:$0xff]  }
  0x53   :  { %684 = vmatpush1.bf16.msra.mxu0 %v5455_v24  ;;  %v4555_v24 = vld [vmem:[%s7833_s1 + $0x220] sm:$0x33] }
  0x54   :  { %685 = vmatprep.subr.bf16.mxu0 %v5460_v25  ;;  %v6450_v25 = vld [vmem:[%s7832_s0 + $0x1e] sm:$0x3]  ;;  %v4579_v41 = vcombine.high %v4555_v24, %v4555_v24 }
  0x55   :  { %v779_v35 = vcombine.low %v6187_v1, %v6450_v25  ;;  %v5496_v1 = vld [vmem:[%s7833_s1 + $0x210] ss:$8 sps:$4 sm:$0xff]  }
  0x57   :  { %686 = vmatpush1.bf16.msra.mxu0 %v5458_v17  ;;  %v5495_v17 = vld [vmem:[%s7833_s1 + $0x204] ss:$8 sps:$4 sm:$0xff]   ;;  %v6468_v38 = vrot.slane %v779_v35, %v6066_v15  ;;  %v5536_v35 = vld [vmem:[%s7833_s1 + $0x2e0] ss:$8 sps:$4 sm:$0xff]  }
  0x58   :  { %687 = vmatprep.subr.bf16.mxu0 %v5463_v32  ;;  %v4578_v32 = vcombine.low %v4555_v24, %v4555_v24 }
  0x59   :  { %v789_v40 = vcombine.high %v6468_v38, %v6468_v38 }
  0x5a   :  { %v944_v36 = vsel %vm354_vm1, %v4578_v32, 0 }
  0x5b   :  { %688 = vmatpush1.bf16.msra.mxu0 %v5461_v63  ;;  %v5498_v63 = vld [vmem:[%s7833_s1 + $0x214] ss:$8 sps:$4 sm:$0xff]  }
  0x5c   :  { %4530 = vmatprep.subr.msk.bf16.mxu0 %vm354_vm1, %v4529_v39  ;;  %v788_v39 = vcombine.high %v6213_v13, %v6352_v30 }
  0x5e   :  { %v803_v43 = vrot.slane %v788_v39, %v6066_v15 }
  0x5f   :  { %690 = vmatpush1.bf16.msra.mxu0 %v662_v44  ;;  %v817_v44 = vrot.slane %v789_v40, %v6066_v15  ;;  %v5548_v40 = vld [vmem:[%s7833_s1 + $0x320] ss:$8 sps:$4 sm:$0xff]  }
  0x60   :  { %949 = vmatprep.subr.bf16.mxu0 %v5468_v34  ;;  %v5503_v34 = vld [vmem:[%s7833_s1 + $0x22c] ss:$8 sps:$4 sm:$0xff]  }
  0x62   :  { %700 = vmatmul.mubr.bf16.vlgmr.msra.gmra.mrb[0].mxu0 %v479_v47  ;;  %v5501_v47 = vld [vmem:[%s7833_s1 + $0x228] ss:$8 sps:$4 sm:$0xff]  }
  0x63   :  { %950 = vmatpush1.bf16.msra.mxu0 %v5466_v50  ;;  %4532 = vmatprep.mubr.msk.bf16.mxu0 %vm347_vm0, %v537_v52  ;;  %v5506_v50 = vld [vmem:[%s7833_s1 + $0x23c] ss:$8 sps:$4 sm:$0xff]   ;;  %v819_v52 = vcombine.low %v803_v43, %v817_v44 }
  0x64   :  { %951 = vmatprep.subr.bf16.mxu0 %v5471_v51  ;;  %v787_v51 = vcombine.low %v6213_v13, %v6352_v30  ;;  %v810_v13 = vrot.slane %v6468_v38, %v6066_v15  ;;  %v5559_v43 = vld [vmem:[%s7833_s1 + $0x354] ss:$8 sps:$4 sm:$0xff]  }
  0x66   :  { %v796_v58 = vrot.slane %v787_v51, %v6066_v15 }
  0x67   :  { %952 = vmatpush1.bf16.msra.mxu0 %v5469_v59  ;;  %v5507_v59 = vld [vmem:[%s7833_s1 + $0x248] ss:$8 sps:$4 sm:$0xff]  }
  0x68   :  { %953 = vmatprep.subr.bf16.mxu0 %v5474_v60  ;;  %v818_v57 = vcombine.low %v796_v58, %v810_v13  ;;  %v5515_v60 = vld [vmem:[%s7833_s1 + $0x26c] ss:$8 sps:$4 sm:$0xff]  }
  0x6a   :  { %710 = vmatmul.mubr.bf16.gmra.mrb[4].mxu0 %v536_v61  ;;  %v5516_v61 = vld [vmem:[%s7833_s1 + $0x278] ss:$8 sps:$4 sm:$0xff]  }
  0x6b   :  { %954 = vmatpush1.bf16.msra.mxu0 %v5472_v2  ;;  %4581 = vmatprep.mubr.msk.bf16.mxu0 %vm347_vm0, %v778_v4  ;;  %v5522_v2 = vld [vmem:[%s7833_s1 + $0x298] ss:$8 sps:$4 sm:$0xff]  }
  0x6c   :  { %955 = vmatprep.subr.bf16.mxu0 %v5477_v3  ;;  %v5527_v3 = vld [vmem:[%s7833_s1 + $0x2ac] ss:$8 sps:$4 sm:$0xff]   ;;  %v6547_v4 = vld [vmem:[%s7832_s0 + $0x20] sm:$0x3] }
  0x6f   :  { %956 = vmatpush1.bf16.msra.mxu0 %v5475_v5  ;;  %v5525_v5 = vld [vmem:[%s7833_s1 + $0x2a8] ss:$8 sps:$4 sm:$0xff]  }
  0x70   :  { %957 = vmatprep.subr.bf16.mxu0 %v5480_v6  ;;  %v5530_v6 = vld [vmem:[%s7833_s1 + $0x2bc] ss:$8 sps:$4 sm:$0xff]  }
  0x73   :  { %958 = vmatpush1.bf16.msra.mxu0 %v5478_v14  ;;  %v1069_v14 = vcombine.low %v6450_v25, %v6547_v4  ;;  %v5538_v25 = vld [vmem:[%s7833_s1 + $0x2e4] ss:$8 sps:$4 sm:$0xff]  }
  0x74   :  { %959 = vmatprep.subr.bf16.mxu0 %v5483_v31  ;;  %v5528_v31 = vld [vmem:[%s7833_s1 + $0x2b8] ss:$8 sps:$4 sm:$0xff]  }
  0x77   :  { %960 = vmatpush1.bf16.msra.mxu0 %v5481_v7  ;;  %v5533_v7 = vld [vmem:[%s7833_s1 + $0x2cc] ss:$8 sps:$4 sm:$0xff]  }
  0x78   :  { %961 = vmatprep.subr.bf16.mxu0 %v5486_v19  ;;  %v4605_v19 = vld [vmem:[%s7833_s1 + $0x2d8] sm:$0x33] }
  0x79   :  { %v4628_v24 = vcombine.low %v4605_v19, %v4605_v19 }
  0x7b   :  { %962 = vmatpush1.bf16.msra.mxu0 %v5484_v20  ;;  %v1076_v20 = vrot.slane %v1069_v14, %v6066_v15  ;;  %v1234_v32 = vsel %vm354_vm1, %v4628_v24, 0 }
  0x7c   :  { %963 = vmatprep.subr.bf16.mxu0 %v5489_v21  ;;  %v5531_v21 = vld [vmem:[%s7833_s1 + $0x2c8] ss:$8 sps:$4 sm:$0xff]  }
  0x7d   :  { %v1100_v39 = vrot.slane %v1076_v20, %v6066_v15 }
  0x7f   :  { %964 = vmatpush1.bf16.msra.mxu0 %v5487_v22  ;;  %v1079_v22 = vcombine.high %v1076_v20, %v1076_v20 }
  0x80   :  { %965 = vmatprep.subr.bf16.mxu0 %v5492_v23  ;;  %v4629_v23 = vcombine.high %v4605_v19, %v4605_v19 }
  0x83   :  { %966 = vmatpush1.bf16.msra.mxu0 %v5490_v28  ;;  %v1093_v28 = vrot.slane %v1078_v48, %v6066_v15  ;;  %v5539_v48 = vld [vmem:[%s7833_s1 + $0x2f0] ss:$8 sps:$4 sm:$0xff]  }
  0x84   :  { %967 = vmatprep.subr.bf16.mxu0 %v5495_v17  ;;  %v1107_v17 = vrot.slane %v1079_v22, %v6066_v15 }
  0x87   :  { %968 = vmatpush1.bf16.msra.mxu0 %v5493_v62  ;;  %v5541_v62 = vld [vmem:[%s7833_s1 + $0x2f4] ss:$8 sps:$4 sm:$0xff]  }
  0x88   :  { %969 = vmatprep.subr.bf16.mxu0 %v5498_v63  ;;  %v1109_v63 = vcombine.low %v1093_v28, %v1107_v17 }
  0x8b   :  { %970 = vmatpush1.bf16.msra.mxu0 %v5496_v1  ;;  %v1086_v1 = vrot.slane %v1077_v49, %v6066_v15  ;;  %v5550_v49 = vld [vmem:[%s7833_s1 + $0x324] ss:$8 sps:$4 sm:$0xff]  }
  0x8c   :  { %4580 = vmatprep.subr.msk.bf16.mxu0 %vm354_vm1, %v4579_v41  ;;  %v5556_v41 = vld [vmem:[%s7833_s1 + $0x344] ss:$8 sps:$4 sm:$0xff]  }
  0x8f   :  { %972 = vmatpush1.bf16.msra.mxu0 %v944_v36  ;;  %v5544_v36 = vld [vmem:[%s7833_s1 + $0x304] ss:$8 sps:$4 sm:$0xff]  }
  0x90   :  { %1239 = vmatprep.subr.bf16.mxu0 %v5503_v34  ;;  %v5554_v34 = vld [vmem:[%s7833_s1 + $0x340] ss:$8 sps:$4 sm:$0xff]  }
  0x92   :  { %982 = vmatmul.mubr.bf16.vlgmr.msra.gmra.mrb[0].mxu0 %v777_v0  ;;  %v5510_v0 = vld [vmem:[%s7833_s1 + $0x258] ss:$8 sps:$4 sm:$0xff]  }
  0x93   :  { %1240 = vmatpush1.bf16.msra.mxu0 %v5501_v47  ;;  %4582 = vmatprep.mubr.msk.bf16.mxu0 %vm347_vm0, %v819_v52 }
  0x94   :  { %1241 = vmatprep.subr.bf16.mxu0 %v5506_v50 }
  0x97   :  { %1242 = vmatpush1.bf16.msra.mxu0 %v5504_v54 }
  0x98   :  { %1243 = vmatprep.subr.bf16.mxu0 %v5509_v55 }
  0x9a   :  { %992 = vmatmul.mubr.bf16.gmra.mrb[4].mxu0 %v818_v57 }
  0x9b   :  { %1244 = vmatpush1.bf16.msra.mxu0 %v5507_v59  ;;  %4631 = vmatprep.mubr.msk.bf16.mxu0 %vm347_vm0, %v1068_v33  ;;  %v5524_v33 = vld [vmem:[%s7833_s1 + $0x29c] ss:$8 sps:$4 sm:$0xff]  }
  0x9c   :  { %1245 = vmatprep.subr.bf16.mxu0 %v5512_v56 }
  0x9f   :  { %1246 = vmatpush1.bf16.msra.mxu0 %v5510_v0 }
  0xa0   :  { %1247 = vmatprep.subr.bf16.mxu0 %v5515_v60 }
  0xa3   :  { %1248 = vmatpush1.bf16.msra.mxu0 %v5513_v45 }
  0xa4   :  { %1249 = vmatprep.subr.bf16.mxu0 %v5518_v46 }
  0xa7   :  { %1250 = vmatpush1.bf16.msra.mxu0 %v5516_v61 }
  0xa8   :  { %1251 = vmatprep.subr.bf16.mxu0 %v5521_v9 }
  0xab   :  { %1252 = vmatpush1.bf16.msra.mxu0 %v5519_v12 }
  0xac   :  { %1253 = vmatprep.subr.bf16.mxu0 %v5524_v33 }
  0xaf   :  { %1254 = vmatpush1.bf16.msra.mxu0 %v5522_v2 }
  0xb0   :  { %1255 = vmatprep.subr.bf16.mxu0 %v5527_v3 }
  0xb3   :  { %1256 = vmatpush1.bf16.msra.mxu0 %v5525_v5 }
  0xb4   :  { %1257 = vmatprep.subr.bf16.mxu0 %v5530_v6 }
  0xb7   :  { %1258 = vmatpush1.bf16.msra.mxu0 %v5528_v31 }
  0xb8   :  { %1259 = vmatprep.subr.bf16.mxu0 %v5533_v7 }
  0xbb   :  { %1260 = vmatpush1.bf16.msra.mxu0 %v5531_v21 }
  0xbc   :  { %4630 = vmatprep.subr.msk.bf16.mxu0 %vm354_vm1, %v4629_v23 }
  0xbf   :  { %1262 = vmatpush1.bf16.msra.mxu0 %v1234_v32 }
  0xc0   :  { %1497 = vmatprep.subr.bf16.mxu0 %v5538_v25 }
  0xc2   :  { %1272 = vmatmul.mubr.bf16.vlgmr.msra.gmra.mrb[0].mxu0 %v1067_v37  ;;  %v1108_v37 = vcombine.low %v1086_v1, %v1100_v39 }
  0xc3   :  { %1498 = vmatpush1.bf16.msra.mxu0 %v5536_v35  ;;  %4632 = vmatprep.mubr.msk.bf16.mxu0 %vm347_vm0, %v1109_v63 }
  0xc4   :  { %1499 = vmatprep.subr.bf16.mxu0 %v5541_v62 }
  0xc7   :  { %1500 = vmatpush1.bf16.msra.mxu0 %v5539_v48 }
  0xc8   :  { %1501 = vmatprep.subr.bf16.mxu0 %v5544_v36 }
  0xca   :  { %1282 = vmatmul.mubr.bf16.gmra.mrb[4].mxu0 %v1108_v37 }
  0xcb   :  { %1502 = vmatpush1.bf16.msra.mxu0 %v5542_v16  ;;  %4681 = vmatprep.mubr.msk.bf16.mxu0 %vm347_vm0, %v1326_v8 }
  0xcc   :  { %1503 = vmatprep.subr.bf16.mxu0 %v5547_v18 }
  0xcf   :  { %1504 = vmatpush1.bf16.msra.mxu0 %v5545_v10 }
  0xd0   :  { %1505 = vmatprep.subr.bf16.mxu0 %v5550_v49 }
  0xd3   :  { %1506 = vmatpush1.bf16.msra.mxu0 %v5548_v40 }
  0xd4   :  { %1507 = vmatprep.subr.bf16.mxu0 %v5553_v53 }
  0xd7   :  { %1508 = vmatpush1.bf16.msra.mxu0 %v5551_v42 }
  0xd8   :  { %1509 = vmatprep.subr.bf16.mxu0 %v5556_v41 }
  0xd9   :  { %12 = vsyncpa [#allocation3], 0  ;;  %v5557_v44 = vld [vmem:[%s7833_s1 + $0x350] ss:$8 sps:$4 sm:$0xff]   ;;  %v5562_v47 = vld [vmem:[%s7833_s1 + $0x364] ss:$8 sps:$4 sm:$0xff]   ;;  %v1336_v57 = vcombine.high %v6352_v30, %v6468_v38  ;;  %v1335_v12 = vcombine.low %v6352_v30, %v6468_v38 }
  0xda   :  { %v45_v50 = vld [vmem:[%s7832_s0 + $0x22] sm:$0x3]  ;;  %v5565_v54 = vld [vmem:[%s7833_s1 + $0x374] ss:$8 sps:$4 sm:$0xff]   ;;  %v5563_v55 = vld [vmem:[%s7833_s1 + $0x370] ss:$8 sps:$4 sm:$0xff]  }
  0xdb   :  { %1510 = vmatpush1.bf16.msra.mxu0 %v5554_v34  ;;  %v5560_v51 = vld [vmem:[%s7833_s1 + $0x360] ss:$8 sps:$4 sm:$0xff]   ;;  %v1327_v52 = vcombine.low %v6547_v4, %v45_v50  ;;  %v5568_v13 = vld [vmem:[%s7833_s1 + $0x384] ss:$8 sps:$4 sm:$0xff]   ;;  %v4655_v59 = vld [vmem:[%s7833_s1 + $0x390] sm:$0x33]  ;;  %v1351_v46 = vrot.slane %v1336_v57, %v6066_v15  ;;  %v1344_v2 = vrot.slane %v1335_v12, %v6066_v15 }
  0xdc   :  { %1511 = vmatprep.subr.bf16.mxu0 %v5559_v43  ;;  %v5566_v56 = vld [vmem:[%s7833_s1 + $0x380] ss:$8 sps:$4 sm:$0xff]   ;;  %v4679_v60 = vcombine.high %v4655_v59, %v4655_v59  ;;  %v4678_v45 = vcombine.low %v4655_v59, %v4655_v59  ;;  %v5573_v30 = vld [vmem:[%s7835_s3 + $0x138] ss:$12 sps:$4 sm:$0xff]   ;;  %v5988_v27 = vmov 0   ;;  %vm1566_vm2 = vcmask 1045504  }
  0xdd   :  { %v1334_v58 = vrot.slane %v1327_v52, %v6066_v15  ;;  %v5571_v5 = vld [vmem:[%s7835_s3 + $0x13c] ss:$12 sps:$4 sm:$0xff]   ;;  %v5574_v26 = vld [vmem:[%s7835_s3 + $0x154] ss:$12 sps:$4 sm:$0xff]   ;;  %v5578_v6 = vld [vmem:[%s7835_s3 + $0x16c] ss:$12 sps:$4 sm:$0xff]  }
  0xde   :  { %v1492_v9 = vsel %vm354_vm1, %v4678_v45, 0  ;;  %1982 = vmatprep.subr.bf16.mxu1 %v5571_v5  ;;  %v5581_v38 = vld [vmem:[%s7835_s3 + $0x290] ss:$12 sps:$4 sm:$0xff]   ;;  %v5580_v14 = vld [vmem:[%s7835_s3 + $0x168] ss:$12 sps:$4 sm:$0xff]   ;;  %s5989_s13 = smov 112  }
  0xdf   :  { %1512 = vmatpush1.bf16.msra.mxu0 %v5557_v44  ;;  %v1337_v0 = vcombine.high %v1334_v58, %v1334_v58  ;;  %v1358_v3 = vrot.slane %v1334_v58, %v6066_v15  ;;  %1983 = vmatpush1.bf16.msra.mxu1 %v5573_v30  ;;  %v5585_v31 = vld [vmem:[%s7835_s3 + $0x2a8] ss:$12 sps:$4 sm:$0xff]   ;;  %v5582_v7 = vld [vmem:[%s7835_s3 + $0x184] ss:$12 sps:$4 sm:$0xff]   ;;  %v5584_v19 = vld [vmem:[%s7835_s3 + $0x180] ss:$12 sps:$4 sm:$0xff]  }
  0xe0   :  { %1513 = vmatprep.subr.bf16.mxu0 %v5562_v47  ;;  %1984 = vmatprep.subr.bf16.mxu1 %v5574_v26  ;;  %v5589_v20 = vld [vmem:[%s7835_s3 + $0x2c0] ss:$12 sps:$4 sm:$0xff]   ;;  %v5586_v21 = vld [vmem:[%s7835_s3 + $0x19c] ss:$12 sps:$4 sm:$0xff]   ;;  %v5588_v22 = vld [vmem:[%s7835_s3 + $0x198] ss:$12 sps:$4 sm:$0xff]  }
  0xe1   :  { %v1365_v61 = vrot.slane %v1337_v0, %v6066_v15  ;;  %v1366_v4 = vcombine.low %v1344_v2, %v1358_v3  ;;  %v5577_v15 = vld [vmem:[%s7835_s3 + $0x278] ss:$12 sps:$4 sm:$0xff]   ;;  %v5590_v24 = vld [vmem:[%s7835_s3 + $0x1b4] ss:$12 sps:$4 sm:$0xff]   ;;  %v5592_v25 = vld [vmem:[%s7835_s3 + $0x1b0] ss:$12 sps:$4 sm:$0xff]  }
  0xe2   :  { %v5593_v23 = vld [vmem:[%s7835_s3 + $0x2d8] ss:$12 sps:$4 sm:$0xff]   ;;  %v5597_v28 = vld [vmem:[%s7835_s3 + $0x2f0] ss:$12 sps:$4 sm:$0xff]   ;;  %v5596_v32 = vld [vmem:[%s7835_s3 + $0x1c8] ss:$12 sps:$4 sm:$0xff]  }
  0xe3   :  { %1514 = vmatpush1.bf16.msra.mxu0 %v5560_v51  ;;  %v1367_v33 = vcombine.low %v1351_v46, %v1365_v61  ;;  %v5594_v17 = vld [vmem:[%s7835_s3 + $0x1cc] ss:$12 sps:$4 sm:$0xff]   ;;  %v5601_v35 = vld [vmem:[%s7835_s3 + $0x308] ss:$12 sps:$4 sm:$0xff]   ;;  %v5598_v62 = vld [vmem:[%s7835_s3 + $0x1e4] ss:$12 sps:$4 sm:$0xff]  }
  0xe4   :  { %1515 = vmatprep.subr.bf16.mxu0 %v5565_v54  ;;  %v5600_v63 = vld [vmem:[%s7835_s3 + $0x1e0] ss:$12 sps:$4 sm:$0xff]   ;;  %v5602_v36 = vld [vmem:[%s7835_s3 + $0x1fc] ss:$12 sps:$4 sm:$0xff]   ;;  %v5604_v1 = vld [vmem:[%s7835_s3 + $0x1f8] ss:$12 sps:$4 sm:$0xff]  }
  0xe5   :  { %v5605_v48 = vld [vmem:[%s7835_s3 + $0x320] ss:$12 sps:$4 sm:$0xff]   ;;  %v5609_v39 = vld [vmem:[%s7835_s3 + $0x338] ss:$12 sps:$4 sm:$0xff]   ;;  %v5608_v18 = vld [vmem:[%s7835_s3 + $0x210] ss:$12 sps:$4 sm:$0xff]  }
  0xe6   :  { %v5606_v16 = vld [vmem:[%s7835_s3 + $0x214] ss:$12 sps:$4 sm:$0xff]   ;;  %v5610_v37 = vld [vmem:[%s7835_s3 + $0x22c] ss:$12 sps:$4 sm:$0xff]   ;;  %v5613_v10 = vld [vmem:[%s7835_s3 + $0x350] ss:$12 sps:$4 sm:$0xff]  }
  0xe7   :  { %1516 = vmatpush1.bf16.msra.mxu0 %v5563_v55  ;;  %v5612_v8 = vld [vmem:[%s7835_s3 + $0x228] ss:$12 sps:$4 sm:$0xff]   ;;  %v5614_v49 = vld [vmem:[%s7835_s3 + $0x244] ss:$12 sps:$4 sm:$0xff]   ;;  %v5616_v53 = vld [vmem:[%s7835_s3 + $0x240] ss:$12 sps:$4 sm:$0xff]  }
  0xe8   :  { %1517 = vmatprep.subr.bf16.mxu0 %v5568_v13  ;;  %v5617_v42 = vld [vmem:[%s7835_s3 + $0x368] ss:$12 sps:$4 sm:$0xff]   ;;  %v5620_v54 = vld [vmem:[%s7835_s3 + $0x258] ss:$12 sps:$4 sm:$0xff]   ;;  %v5621_v55 = vld [vmem:[%s7835_s3 + $0x380] ss:$12 sps:$4 sm:$0xff]  }
  0xe9   :  { %v5618_v50 = vld [vmem:[%s7835_s3 + $0x25c] ss:$12 sps:$4 sm:$0xff]   ;;  %v5623_v45 = vld [vmem:[%s7835_s3 + $0x398] ss:$12 sps:$4 sm:$0xff]   ;;  %vm1621_vm3 = vcmask 916480   ;;  %vm1978_vm4 = vcmask 654336  }
  0xea   :  { %vm5991_vm5 = vmmov 0  }
  0xeb   :  { %1518 = vmatpush1.bf16.msra.mxu0 %v5566_v56 }
  0xec   :  { %4680 = vmatprep.subr.msk.bf16.mxu0 %vm354_vm1, %v4679_v60 }
  0xef   :  { %1520 = vmatpush1.bf16.msra.mxu0 %v1492_v9 }
  0xf0   :  { %2666 = vmatprep.subr.bf16.mxu0 %v5988_v27 }
  0xf2   :  { %1530 = vmatmul.mubr.bf16.vlgmr.msra.gmra.mrb[0].mxu0 %v1325_v29  ;;  %v5576_v29 = vld [vmem:[%s7835_s3 + $0x150] ss:$12 sps:$4 sm:$0xff]  }
  0xf3   :  { %4682 = vmatprep.mubr.msk.bf16.mxu0 %vm347_vm0, %v1367_v33  ;;  %2667 = vmatpush1.bf16.msra.mxu0 %v5577_v15 }
  0xf4   :  { %2668 = vmatprep.subr.bf16.mxu0 %v5988_v27  ;;  %1985 = vmatpush1.bf16.msra.mxu1 %v5576_v29 }
  0xf5   :  { %1986 = vmatprep.subr.bf16.mxu1 %v5578_v6 }
  0xf7   :  { %2669 = vmatpush1.bf16.msra.mxu0 %v5581_v38 }
  0xf8   :  { %2670 = vmatprep.subr.bf16.mxu0 %v5988_v27  ;;  %1987 = vmatpush1.bf16.msra.mxu1 %v5580_v14  ;;  %v1650_v14 = vsub.s32 1, %v6054_v11 }
  0xf9   :  { %1988 = vmatprep.subr.bf16.mxu1 %v5582_v7  ;;  %v1642_v7 = vld [vmem:[%s7834_s2] sm:$0x3] }
  0xfa   :  { %1540 = vmatmul.mubr.bf16.gmra.mrb[4].mxu0 %v1366_v4 }
  0xfb   :  { %2671 = vmatpush1.bf16.msra.mxu0 %v5585_v31 }
  0xfc   :  { %2672 = vmatprep.subr.bf16.mxu0 %v5988_v27  ;;  %1989 = vmatpush1.bf16.msra.mxu1 %v5584_v19  ;;  %v1646_v19 = vsub.s32 0, %v6054_v11 }
  0xfd   :  { %1990 = vmatprep.subr.bf16.mxu1 %v5586_v21 }
  0xfe   :  { %v1647_v21 = vrot.slane %v1642_v7, %v1646_v19 }
  0xff   :  { %2673 = vmatpush1.bf16.msra.mxu0 %v5589_v20  ;;  %v6828_v20 = vrot.slane %v1642_v7, %v1650_v14  ;;  %v5644_v7 = vld [vmem:[%s7835_s3 + $0x248] ss:$12 sps:$4 sm:$0xff]  }
 0x100   :  { %2674 = vmatprep.subr.bf16.mxu0 %v5988_v27  ;;  %1991 = vmatpush1.bf16.msra.mxu1 %v5588_v22 }
 0x101   :  { %1992 = vmatprep.subr.bf16.mxu1 %v5590_v24 }
 0x103   :  { %2675 = vmatpush1.bf16.msra.mxu0 %v5593_v23 }
 0x104   :  { %2676 = vmatprep.subr.bf16.mxu0 %v5988_v27  ;;  %1993 = vmatpush1.bf16.msra.mxu1 %v5592_v25 }
 0x105   :  { %1994 = vmatprep.subr.bf16.mxu1 %v5594_v17 }
 0x107   :  { %2677 = vmatpush1.bf16.msra.mxu0 %v5597_v28 }
 0x108   :  { %2678 = vmatprep.subr.bf16.mxu0 %v5988_v27  ;;  %1995 = vmatpush1.bf16.msra.mxu1 %v5596_v32 }
 0x109   :  { %1996 = vmatprep.subr.bf16.mxu1 %v5598_v62 }
 0x10b   :  { %2679 = vmatpush1.bf16.msra.mxu0 %v5601_v35 }
 0x10c   :  { %2680 = vmatprep.subr.bf16.mxu0 %v5988_v27  ;;  %1997 = vmatpush1.bf16.msra.mxu1 %v5600_v63 }
 0x10d   :  { %1998 = vmatprep.subr.bf16.mxu1 %v5602_v36 }
 0x10f   :  { %2681 = vmatpush1.bf16.msra.mxu0 %v5605_v48 }
 0x110   :  { %2682 = vmatprep.subr.bf16.mxu0 %v5988_v27  ;;  %1999 = vmatpush1.bf16.msra.mxu1 %v5604_v1 }
 0x111   :  { %2000 = vmatprep.subr.bf16.mxu1 %v5606_v16 }
 0x113   :  { %2683 = vmatpush1.bf16.msra.mxu0 %v5609_v39 }
 0x114   :  { %2684 = vmatprep.subr.bf16.mxu0 %v5988_v27  ;;  %2001 = vmatpush1.bf16.msra.mxu1 %v5608_v18 }
 0x115   :  { %2002 = vmatprep.subr.bf16.mxu1 %v5610_v37 }
 0x117   :  { %2685 = vmatpush1.bf16.msra.mxu0 %v5613_v10  ;;  %v5622_v10 = vld [vmem:[%s7835_s3 + $0x140] ss:$12 sps:$4 sm:$0xff]  }
 0x118   :  { %2003 = vmatpush1.bf16.msra.mxu1 %v5612_v8  ;;  %2686 = vmatprep.subr.bf16.mxu0 %v5988_v27 }
 0x119   :  { %2004 = vmatprep.subr.bf16.mxu1 %v5614_v49 }
 0x11b   :  { %2687 = vmatpush1.bf16.msra.mxu0 %v5617_v42 }
 0x11c   :  { %2005 = vmatpush1.bf16.msra.mxu1 %v5616_v53  ;;  %2688 = vmatprep.subr.bf16.mxu0 %v5988_v27 }
 0x11d   :  { %2006 = vmatprep.subr.bf16.mxu1 %v5618_v50  ;;  %v5625_v50 = vld [vmem:[%s7835_s3 + $0x3b0] ss:$12 sps:$4 sm:$0xff]  }
 0x11f   :  { %2689 = vmatpush1.bf16.msra.mxu0 %v5621_v55 }
 0x120   :  { %2007 = vmatpush1.bf16.msra.mxu1 %v5620_v54  ;;  %2690 = vmatprep.subr.bf16.mxu0 %v5988_v27 }
 0x121   :  { %2023 = vmatprep.subr.bf16.mxu1 %v5988_v27 }
 0x123   :  { %2691 = vmatpush1.bf16.msra.mxu0 %v5623_v45  ;;  %v5629_v45 = vld [vmem:[%s7835_s3 + $0x3e0] ss:$12 sps:$4 sm:$0xff]  }
 0x124   :  { %3019 = vmatprep.subr.bf16.mxu0 %v5988_v27 }
 0x1c5   :  { %v1531_v40 = vpop.f32.mrb[0].mxu0 }
 0x1c6   :  { %v1533_v41 = vpop.f32.mrb[1].mxu0  ;;  %v1567_v43 = vrot.slane %v1531_v40, 2 }
 0x1c7   :  { %v1535_v34 = vpop.f32.mrb[2].mxu0  ;;  %v1570_v51 = vrot.slane %v1533_v41, 2 }
 0x1c8   :  { %v1568_v44 = vrot.slane %v1535_v34, 2  ;;  %v1537_v47 = vpop.f32.mrb[3].mxu0 }
 0x1c9   :  { %v1571_v52 = vrot.slane %v1537_v47, 2 }
 0x1ca   :  { %v1569_v58 = vsel %vm1566_vm2, %v1567_v43, %v1568_v44 }
 0x1cb   :  { %v1589_v13 = vmax.f32 %v1531_v40, %v1569_v58  ;;  %v1572_v59 = vsel %vm1566_vm2, %v1570_v51, %v1571_v52 }
 0x1cc   :  { %v1590_v56 = vmax.f32 %v1533_v41, %v1572_v59 }
 0x1cd   :  { %1605 = vrot.lane.b32.xlu0 %v1589_v13, %s5989_s13  ;;  %v1541_v57 = vpop.f32.mrb[4].mxu0 }
 0x1ce   :  { %v1573_v0 = vrot.slane %v1541_v57, 2  ;;  %v1543_v60 = vpop.f32.mrb[5].mxu0 }
 0x1cf   :  { %v1575_v46 = vrot.slane %v1543_v60, 2  ;;  %v1545_v61 = vpop.f32.mrb[6].mxu0 }
 0x1d0   :  { %v1577_v9 = vrot.slane %v1545_v61, 2  ;;  %v1547_v12 = vpop.f32.mrb[7].mxu0  ;;  %v1574_v33 = vsel %vm1566_vm2, %v1568_v44, %v1573_v0 }
 0x1d1   :  { %v1579_v2 = vrot.slane %v1547_v12, 2  ;;  %1607 = vrot.lane.b32.xlu0 %v1590_v56, %s5989_s13  ;;  %v1591_v3 = vmax.f32 %v1535_v34, %v1574_v33  ;;  %v1576_v4 = vsel %vm1566_vm2, %v1571_v52, %v1575_v46  ;;  %v5634_v33 = vld [vmem:[%s7835_s3 + $0x1d0] ss:$12 sps:$4 sm:$0xff]  }
 0x1d2   :  { %v1578_v5 = vsel %vm1566_vm2, %v1573_v0, %v1577_v9  ;;  %v1592_v30 = vmax.f32 %v1537_v47, %v1576_v4  ;;  %v1595_v38 = vmax.f32 %v1545_v61, %v1577_v9  ;;  %v5624_v47 = vld [vmem:[%s7835_s3 + $0x158] ss:$12 sps:$4 sm:$0xff]   ;;  %v5637_v4 = vld [vmem:[%s7835_s3 + $0x440] ss:$12 sps:$4 sm:$0xff]  }
 0x1d3   :  { %1609 = vrot.lane.b32.xlu1 %v1591_v3, %s5989_s13  ;;  %v1593_v26 = vmax.f32 %v1541_v57, %v1578_v5  ;;  %v1580_v15 = vsel %vm1566_vm2, %v1575_v46, %v1579_v2  ;;  %v6818_v6 = vmax.f32 %v1547_v12, %v1579_v2  ;;  %v5627_v57 = vld [vmem:[%s7835_s3 + $0x3c8] ss:$12 sps:$4 sm:$0xff]   ;;  %v5630_v46 = vld [vmem:[%s7835_s3 + $0x1a0] ss:$12 sps:$4 sm:$0xff]   ;;  %v5631_v61 = vld [vmem:[%s7835_s3 + $0x3f8] ss:$12 sps:$4 sm:$0xff]  }
 0x1d4   :  { %v6815_v29 = vmax.f32 %v1543_v60, %v1580_v15  ;;  %v5628_v60 = vld [vmem:[%s7835_s3 + $0x188] ss:$12 sps:$4 sm:$0xff]   ;;  %v5632_v9 = vld [vmem:[%s7835_s3 + $0x1b8] ss:$12 sps:$4 sm:$0xff]   ;;  %v5633_v12 = vld [vmem:[%s7835_s3 + $0x410] ss:$12 sps:$4 sm:$0xff]  }
 0x1d5   :  { %1613 = vrot.lane.b32.xlu0 %v1593_v26, %s5989_s13  ;;  %v5635_v2 = vld [vmem:[%s7835_s3 + $0x428] ss:$12 sps:$4 sm:$0xff]   ;;  %v5638_v5 = vld [vmem:[%s7835_s3 + $0x200] ss:$12 sps:$4 sm:$0xff]   ;;  %v5641_v15 = vld [vmem:[%s7835_s3 + $0x470] ss:$12 sps:$4 sm:$0xff]  }
 0x1d7   :  { %1611 = vrot.lane.b32.xlu1 %v1592_v30, %s5989_s13 }
 0x1d9   :  { %1617 = vrot.lane.b32.xlu0 %v1595_v38, %s5989_s13 }
 0x1db   :  { %1615 = vrot.lane.b32.xlu1 %v6815_v29, %s5989_s13 }
 0x1df   :  { %1619 = vrot.lane.b32.xlu1 %v6818_v6, %s5989_s13 }
 0x23f   :  { %v1606_v31 = vpop.permute.xlu0 %1605 }
 0x243   :  { %v1608_v22 = vpop.permute.xlu0 %1607 }
 0x244   :  { %v1622_v23 = vsel %vm1621_vm3, %v1606_v31, %v1608_v22  ;;  %v1635_v24 = vmax.f32 %v1590_v56, %v1608_v22  ;;  %v5626_v56 = vld [vmem:[%s7835_s3 + $0x170] ss:$12 sps:$4 sm:$0xff]   ;;  %v5643_v31 = vld [vmem:[%s7835_s3 + $0x488] ss:$12 sps:$4 sm:$0xff]  }
 0x245   :  { %v1634_v25 = vmax.f32 %v1589_v13, %v1622_v23  ;;  %v1610_v28 = vpop.permute.xlu1 %1609  ;;  %v5646_v23 = vld [vmem:[%s7835_s3 + $0x260] ss:$12 sps:$4 sm:$0xff]  }
 0x246   :  { %v1655_v17 = vadd.f32 %v6828_v20, %v1635_v24  ;;  %v5647_v24 = vld [vmem:[%s7835_s3 + $0x4b8] ss:$12 sps:$4 sm:$0xff]  }
 0x247   :  { %v1654_v32 = vadd.f32 %v1647_v21, %v1634_v25  ;;  %v1614_v16 = vpop.permute.xlu0 %1613  ;;  %v5650_v25 = vld [vmem:[%s7835_s3 + $0x4] ss:$12 sps:$4 sm:$0xff]  }
 0x248   :  { %v1657_v35 = vmax.f32 %v1655_v17, 0.0  ;;  %v5651_v17 = vld [vmem:[%s7835_s3 + $0x4d0] ss:$12 sps:$4 sm:$0xff]  }
 0x249   :  { %v1656_v62 = vmax.f32 %v1654_v32, 0.0  ;;  %v1612_v63 = vpop.permute.xlu1 %1611  ;;  %v5654_v32 = vld [vmem:[%s7835_s3 + $0x1c] ss:$12 sps:$4 sm:$0xff]  }
 0x24a   :  { %v6834_v48 = vpack.c.bf16 %v1657_v35, %v1657_v35  ;;  %v1623_v36 = vsel %vm1621_vm3, %v1610_v28, %v1612_v63  ;;  %v1637_v1 = vmax.f32 %v1592_v30, %v1612_v63  ;;  %v5639_v30 = vld [vmem:[%s7835_s3 + $0x458] ss:$12 sps:$4 sm:$0xff]   ;;  %v5648_v28 = vld [vmem:[%s7835_s3] ss:$12 sps:$4 sm:$0xff]   ;;  %v5655_v63 = vld [vmem:[%s7835_s3 + $0x4e8] ss:$12 sps:$4 sm:$0xff]  }
 0x24b   :  { %v6837_v39 = vpack.c.bf16 %v1656_v62, %v1656_v62  ;;  %v1636_v18 = vmax.f32 %v1591_v3, %v1623_v36  ;;  %v1618_v52 = vpop.permute.xlu0 %1617  ;;  %v5636_v3 = vld [vmem:[%s7835_s3 + $0x1e8] ss:$12 sps:$4 sm:$0xff]   ;;  %v5652_v62 = vld [vmem:[%s7835_s3 + $0x18] ss:$12 sps:$4 sm:$0xff]  }
 0x24c   :  { %v2356_v37 = vadd.f32 %v6828_v20, %v1637_v1  ;;  %v1768_v8 = vrot.slane %v6834_v48, 2  ;;  %v5658_v1 = vld [vmem:[%s7835_s3 + $0x34] ss:$12 sps:$4 sm:$0xff]  }
 0x24d   :  { %v2355_v49 = vadd.f32 %v1647_v21, %v1636_v18  ;;  %v6844_v40 = vpop.permute.xlu1 %1615  ;;  %v1767_v53 = vrot.slane %v6837_v39, 2  ;;  %v5656_v18 = vld [vmem:[%s7835_s3 + $0x30] ss:$12 sps:$4 sm:$0xff]  }
 0x24e   :  { %v2358_v42 = vmax.f32 %v2356_v37, 0.0  ;;  %v1624_v41 = vsel %vm1621_vm3, %v1614_v16, %v6844_v40  ;;  %4774 = vmatprep.mubr.msk.bf16.mxu1 %vm1978_vm4, %v1768_v8  ;;  %v1639_v22 = vmax.f32 %v6815_v29, %v6844_v40  ;;  %v5659_v37 = vld [vmem:[%s7835_s3 + $0x500] ss:$12 sps:$4 sm:$0xff]   ;;  %v5666_v40 = vld [vmem:[%s7835_s3 + $0x64] ss:$12 sps:$4 sm:$0xff]  }
 0x24f   :  { %v2357_v34 = vmax.f32 %v2355_v49, 0.0  ;;  %v1638_v43 = vmax.f32 %v1593_v26, %v1624_v41  ;;  %2015 = vmatmul.mubr.bf16.vlgmr.msra.gmra.mrb[0].mxu1 %v1767_v53  ;;  %v5640_v26 = vld [vmem:[%s7835_s3 + $0x218] ss:$12 sps:$4 sm:$0xff]   ;;  %v5670_v41 = vld [vmem:[%s7835_s3 + $0x7c] ss:$12 sps:$4 sm:$0xff]  }
 0x250   :  { %v6852_v44 = vpack.c.bf16 %v2358_v42, %v2358_v42  ;;  %2024 = vmatpush1.bf16.msra.mxu1 %v5622_v10  ;;  %4775 = vmatprep.mubr.msk.bf16.mxu1 %vm1978_vm4, %v1768_v8  ;;  %v3063_v29 = vadd.f32 %v6828_v20, %v1639_v22  ;;  %v5662_v8 = vld [vmem:[%s7835_s3 + $0x4c] ss:$12 sps:$4 sm:$0xff]   ;;  %v5660_v10 = vld [vmem:[%s7835_s3 + $0x48] ss:$12 sps:$4 sm:$0xff]   ;;  %v5667_v42 = vld [vmem:[%s7835_s3 + $0x530] ss:$12 sps:$4 sm:$0xff]  }
 0x251   :  { %v6861_v51 = vpack.c.bf16 %v2357_v34, %v2357_v34  ;;  %v6863_v54 = vadd.f32 %v1647_v21, %v1638_v43  ;;  %v6865_v55 = vpop.permute.xlu1 %1619  ;;  %2025 = vmatprep.subr.bf16.mxu1 %v5988_v27  ;;  %v5663_v49 = vld [vmem:[%s7835_s3 + $0x518] ss:$12 sps:$4 sm:$0xff]   ;;  %v5671_v43 = vld [vmem:[%s7835_s3 + $0x548] ss:$12 sps:$4 sm:$0xff]   ;;  %v5703_v22 = vld [vmem:[%s7835_s3 + $0x620] ss:$12 sps:$4 sm:$0xff]  }
 0x252   :  { %v1625_v58 = vsel %vm1621_vm3, %v1618_v52, %v6865_v55  ;;  %4909 = vmatprep.mubr.msk.bf16.mxu0 %vm1978_vm4, %v6852_v44  ;;  %v2765_v13 = vrot.slane %v6852_v44, 2  ;;  %v3065_v35 = vmax.f32 %v3063_v29, 0.0  ;;  %v5668_v34 = vld [vmem:[%s7835_s3 + $0x78] ss:$12 sps:$4 sm:$0xff]   ;;  %v5675_v52 = vld [vmem:[%s7835_s3 + $0x560] ss:$12 sps:$4 sm:$0xff]  }
 0x253   :  { %v1640_v59 = vmax.f32 %v1595_v38, %v1625_v58  ;;  %2699 = vmatmul.mubr.bf16.vlgmr.msra.gmra.mrb[8].mxu0 %v6861_v51  ;;  %v5642_v38 = vld [vmem:[%s7835_s3 + $0x230] ss:$12 sps:$4 sm:$0xff]   ;;  %v2764_v36 = vrot.slane %v6861_v51, 2  ;;  %v5678_v58 = vld [vmem:[%s7835_s3 + $0xac] ss:$12 sps:$4 sm:$0xff]  }
 0x254   :  { %2026 = vmatpush1.bf16.msra.mxu1 %v5624_v47  ;;  %3020 = vmatpush1.bf16.msra.mxu0 %v5625_v50  ;;  %v6998_v16 = vpack.c.bf16 %v3065_v35, %v3065_v35  ;;  %v5674_v47 = vld [vmem:[%s7835_s3 + $0x94] ss:$12 sps:$4 sm:$0xff]   ;;  %v5672_v50 = vld [vmem:[%s7835_s3 + $0x90] ss:$12 sps:$4 sm:$0xff]  }
 0x255   :  { %v6880_v0 = vadd.f32 %v1647_v21, %v1640_v59  ;;  %5002 = vmatprep.mubr.msk.bf16.mxu0 %vm1978_vm4, %v2765_v13  ;;  %2027 = vmatprep.subr.bf16.mxu1 %v5988_v27  ;;  %v5645_v21 = vld [vmem:[%s7835_s3 + $0x4a0] ss:$12 sps:$4 sm:$0xff]   ;;  %v5676_v59 = vld [vmem:[%s7835_s3 + $0xa8] ss:$12 sps:$4 sm:$0xff]   ;;  %v5707_v29 = vld [vmem:[%s7835_s3 + $0x650] ss:$12 sps:$4 sm:$0xff]  }
 0x256   :  { %3021 = vmatprep.subr.bf16.mxu0 %v5988_v27  ;;  %v5711_v35 = vld [vmem:[%s7835_s3 + $0x680] ss:$12 sps:$4 sm:$0xff]  }
 0x258   :  { %2028 = vmatpush1.bf16.msra.mxu1 %v5626_v56  ;;  %3022 = vmatpush1.bf16.msra.mxu0 %v5627_v57  ;;  %v5679_v56 = vld [vmem:[%s7835_s3 + $0x578] ss:$12 sps:$4 sm:$0xff]  }
 0x259   :  { %2029 = vmatprep.subr.bf16.mxu1 %v5988_v27  ;;  %3023 = vmatprep.subr.bf16.mxu0 %v5988_v27  ;;  %v5682_v57 = vld [vmem:[%s7835_s3 + $0xc4] ss:$12 sps:$4 sm:$0xff]  }
 0x25c   :  { %2030 = vmatpush1.bf16.msra.mxu1 %v5628_v60  ;;  %3024 = vmatpush1.bf16.msra.mxu0 %v5629_v45  ;;  %v5680_v60 = vld [vmem:[%s7835_s3 + $0xc0] ss:$12 sps:$4 sm:$0xff]   ;;  %v5683_v45 = vld [vmem:[%s7835_s3 + $0x590] ss:$12 sps:$4 sm:$0xff]  }
 0x25d   :  { %2031 = vmatprep.subr.bf16.mxu1 %v5988_v27  ;;  %3025 = vmatprep.subr.bf16.mxu0 %v5988_v27 }
 0x260   :  { %2032 = vmatpush1.bf16.msra.mxu1 %v5630_v46  ;;  %3026 = vmatpush1.bf16.msra.mxu0 %v5631_v61  ;;  %v5686_v46 = vld [vmem:[%s7835_s3 + $0xdc] ss:$12 sps:$4 sm:$0xff]   ;;  %v5684_v61 = vld [vmem:[%s7835_s3 + $0xd8] ss:$12 sps:$4 sm:$0xff]  }
 0x261   :  { %2033 = vmatprep.subr.bf16.mxu1 %v5988_v27  ;;  %3027 = vmatprep.subr.bf16.mxu0 %v5988_v27 }
 0x264   :  { %2034 = vmatpush1.bf16.msra.mxu1 %v5632_v9  ;;  %3028 = vmatpush1.bf16.msra.mxu0 %v5633_v12  ;;  %v5687_v9 = vld [vmem:[%s7835_s3 + $0x5a8] ss:$12 sps:$4 sm:$0xff]  }
 0x265   :  { %2035 = vmatprep.subr.bf16.mxu1 %v5988_v27  ;;  %3029 = vmatprep.subr.bf16.mxu0 %v5988_v27  ;;  %v5690_v12 = vld [vmem:[%s7835_s3 + $0xf4] ss:$12 sps:$4 sm:$0xff]  }
 0x268   :  { %2036 = vmatpush1.bf16.msra.mxu1 %v5634_v33  ;;  %3030 = vmatpush1.bf16.msra.mxu0 %v5635_v2  ;;  %v5688_v33 = vld [vmem:[%s7835_s3 + $0xf0] ss:$12 sps:$4 sm:$0xff]   ;;  %v5691_v2 = vld [vmem:[%s7835_s3 + $0x5c0] ss:$12 sps:$4 sm:$0xff]  }
 0x269   :  { %2037 = vmatprep.subr.bf16.mxu1 %v5988_v27  ;;  %3031 = vmatprep.subr.bf16.mxu0 %v5988_v27 }
 0x26c   :  { %2038 = vmatpush1.bf16.msra.mxu1 %v5636_v3  ;;  %3032 = vmatpush1.bf16.msra.mxu0 %v5637_v4  ;;  %v5694_v3 = vld [vmem:[%s7835_s3 + $0x10c] ss:$12 sps:$4 sm:$0xff]   ;;  %v5692_v4 = vld [vmem:[%s7835_s3 + $0x108] ss:$12 sps:$4 sm:$0xff]  }
 0x26d   :  { %2039 = vmatprep.subr.bf16.mxu1 %v5988_v27  ;;  %3033 = vmatprep.subr.bf16.mxu0 %v5988_v27 }
 0x270   :  { %2040 = vmatpush1.bf16.msra.mxu1 %v5638_v5  ;;  %3034 = vmatpush1.bf16.msra.mxu0 %v5639_v30  ;;  %v5695_v5 = vld [vmem:[%s7835_s3 + $0x5d8] ss:$12 sps:$4 sm:$0xff]  }
 0x271   :  { %2041 = vmatprep.subr.bf16.mxu1 %v5988_v27  ;;  %3035 = vmatprep.subr.bf16.mxu0 %v5988_v27  ;;  %v5698_v30 = vld [vmem:[%s7835_s3 + $0x124] ss:$12 sps:$4 sm:$0xff]  }
 0x274   :  { %2042 = vmatpush1.bf16.msra.mxu1 %v5640_v26  ;;  %3036 = vmatpush1.bf16.msra.mxu0 %v5641_v15  ;;  %v5696_v26 = vld [vmem:[%s7835_s3 + $0x120] ss:$12 sps:$4 sm:$0xff]   ;;  %v5699_v15 = vld [vmem:[%s7835_s3 + $0x5f0] ss:$12 sps:$4 sm:$0xff]  }
 0x275   :  { %2043 = vmatprep.subr.bf16.mxu1 %v5988_v27  ;;  %3037 = vmatprep.subr.bf16.mxu0 %v5988_v27 }
 0x278   :  { %2044 = vmatpush1.bf16.msra.mxu1 %v5642_v38  ;;  %3038 = vmatpush1.bf16.msra.mxu0 %v5643_v31  ;;  %v5700_v38 = vld [vmem:[%s7835_s3 + $0x8] ss:$12 sps:$4 sm:$0xff]  }
 0x279   :  { %2045 = vmatprep.subr.bf16.mxu1 %v5988_v27  ;;  %3039 = vmatprep.subr.bf16.mxu0 %v5988_v27  ;;  %v5701_v31 = vld [vmem:[%s7835_s3 + $0x608] ss:$12 sps:$4 sm:$0xff]  }
 0x27c   :  { %2046 = vmatpush1.bf16.msra.mxu1 %v5644_v7  ;;  %3040 = vmatpush1.bf16.msra.mxu0 %v5645_v21  ;;  %v3064_v7 = vmax.f32 %v6863_v54, 0.0  ;;  %v5702_v21 = vld [vmem:[%s7835_s3 + $0x20] ss:$12 sps:$4 sm:$0xff]  }
 0x27d   :  { %2047 = vmatprep.subr.bf16.mxu1 %v5988_v27  ;;  %3041 = vmatprep.subr.bf16.mxu0 %v5988_v27 }
 0x27e   :  { %v7130_v54 = vpack.c.bf16 %v3064_v7, %v3064_v7  ;;  %v5754_v7 = vld [vmem:[%s7835_s3 + $0x318] ss:$12 sps:$4 sm:$0xff]  }
 0x280   :  { %2048 = vmatpush1.bf16.msra.mxu1 %v5646_v23  ;;  %3042 = vmatpush1.bf16.msra.mxu0 %v5647_v24  ;;  %v3472_v23 = vrot.slane %v6998_v16, 2  ;;  %v5705_v24 = vld [vmem:[%s7835_s3 + $0x638] ss:$12 sps:$4 sm:$0xff]  }
 0x281   :  { %2274 = vmatprep.subr.bf16.mxu1 %v5650_v25  ;;  %3043 = vmatprep.subr.bf16.mxu0 %v5988_v27  ;;  %v5706_v25 = vld [vmem:[%s7835_s3 + $0x50] ss:$12 sps:$4 sm:$0xff]  }
 0x283   :  { %2056 = vmatmul.mubr.bf16.vlgmr.msra.gmra.mrb[4].mxu1 %v1767_v53  ;;  %v5664_v53 = vld [vmem:[%s7835_s3 + $0x60] ss:$12 sps:$4 sm:$0xff]  }
 0x284   :  { %2275 = vmatpush1.bf16.msra.mxu1 %v5648_v28  ;;  %4815 = vmatprep.mubr.msk.bf16.mxu1 %vm1978_vm4, %v6834_v48  ;;  %v5708_v28 = vld [vmem:[%s7835_s3 + $0x68] ss:$12 sps:$4 sm:$0xff]  }
 0x285   :  { %3044 = vmatpush1.bf16.msra.mxu0 %v5651_v17  ;;  %2276 = vmatprep.subr.bf16.mxu1 %v5654_v32  ;;  %v5709_v17 = vld [vmem:[%s7835_s3 + $0x668] ss:$12 sps:$4 sm:$0xff]   ;;  %v5710_v32 = vld [vmem:[%s7835_s3 + $0x80] ss:$12 sps:$4 sm:$0xff]  }
 0x286   :  { %3373 = vmatprep.subr.bf16.mxu0 %v5988_v27 }
 0x288   :  { %3052 = vmatmul.mubr.bf16.vlgmr.msra.gmra.mrb[12].mxu0 %v2764_v36  ;;  %2277 = vmatpush1.bf16.msra.mxu1 %v5652_v62  ;;  %v5712_v62 = vld [vmem:[%s7835_s3 + $0x98] ss:$12 sps:$4 sm:$0xff]  }
 0x289   :  { %3374 = vmatpush1.bf16.msra.mxu0 %v5655_v63  ;;  %5095 = vmatprep.mubr.msk.bf16.mxu0 %vm1978_vm4, %v6998_v16  ;;  %v5713_v63 = vld [vmem:[%s7835_s3 + $0x698] ss:$12 sps:$4 sm:$0xff]  }
 0x28a   :  { %2278 = vmatprep.subr.bf16.mxu1 %v5658_v1  ;;  %3375 = vmatprep.subr.bf16.mxu0 %v5988_v27  ;;  %v5714_v1 = vld [vmem:[%s7835_s3 + $0xb0] ss:$12 sps:$4 sm:$0xff]  }
 0x28c   :  { %2279 = vmatpush1.bf16.msra.mxu1 %v5656_v18  ;;  %v5715_v18 = vld [vmem:[%s7835_s3 + $0x6b0] ss:$12 sps:$4 sm:$0xff]  }
 0x28d   :  { %3376 = vmatpush1.bf16.msra.mxu0 %v5659_v37  ;;  %2280 = vmatprep.subr.bf16.mxu1 %v5662_v8  ;;  %v5716_v37 = vld [vmem:[%s7835_s3 + $0xc8] ss:$12 sps:$4 sm:$0xff]  }
 0x28e   :  { %3377 = vmatprep.subr.bf16.mxu0 %v5988_v27  ;;  %v5717_v8 = vld [vmem:[%s7835_s3 + $0x6c8] ss:$12 sps:$4 sm:$0xff]  }
 0x290   :  { %2281 = vmatpush1.bf16.msra.mxu1 %v5660_v10  ;;  %v5718_v10 = vld [vmem:[%s7835_s3 + $0xe0] ss:$12 sps:$4 sm:$0xff]  }
 0x291   :  { %3378 = vmatpush1.bf16.msra.mxu0 %v5663_v49  ;;  %2282 = vmatprep.subr.bf16.mxu1 %v5666_v40  ;;  %v5719_v49 = vld [vmem:[%s7835_s3 + $0x6e0] ss:$12 sps:$4 sm:$0xff]   ;;  %v5720_v40 = vld [vmem:[%s7835_s3 + $0xf8] ss:$12 sps:$4 sm:$0xff]  }
 0x292   :  { %3379 = vmatprep.subr.bf16.mxu0 %v5988_v27 }
 0x294   :  { %2283 = vmatpush1.bf16.msra.mxu1 %v5664_v53  ;;  %v5721_v53 = vld [vmem:[%s7835_s3 + $0x6f8] ss:$12 sps:$4 sm:$0xff]  }
 0x295   :  { %3380 = vmatpush1.bf16.msra.mxu0 %v5667_v42  ;;  %2284 = vmatprep.subr.bf16.mxu1 %v5670_v41  ;;  %v5722_v42 = vld [vmem:[%s7835_s3 + $0x110] ss:$12 sps:$4 sm:$0xff]  }
 0x296   :  { %3381 = vmatprep.subr.bf16.mxu0 %v5988_v27  ;;  %v5723_v41 = vld [vmem:[%s7835_s3 + $0x710] ss:$12 sps:$4 sm:$0xff]  }
 0x298   :  { %2285 = vmatpush1.bf16.msra.mxu1 %v5668_v34  ;;  %v1641_v34 = vmax.f32 %v6818_v6, %v6865_v55  ;;  %v5726_v55 = vld [vmem:[%s7835_s3 + $0x270] ss:$12 sps:$4 sm:$0xff]  }
 0x299   :  { %3382 = vmatpush1.bf16.msra.mxu0 %v5671_v43  ;;  %2286 = vmatprep.subr.bf16.mxu1 %v5674_v47  ;;  %v5724_v43 = vld [vmem:[%s7835_s3 + $0x128] ss:$12 sps:$4 sm:$0xff]  }
 0x29a   :  { %3383 = vmatprep.subr.bf16.mxu0 %v5988_v27  ;;  %v5725_v47 = vld [vmem:[%s7835_s3 + $0x728] ss:$12 sps:$4 sm:$0xff]   ;;  %v3770_v6 = vadd.f32 %v6828_v20, %v1641_v34 }
 0x29b   :  { %v5730_v20 = vld [vmem:[%s7835_s3 + $0x288] ss:$12 sps:$4 sm:$0xff]  }
 0x29c   :  { %2287 = vmatpush1.bf16.msra.mxu1 %v5672_v50  ;;  %v5728_v50 = vld [vmem:[%s7835_s3 + $0x274] ss:$12 sps:$4 sm:$0xff]   ;;  %v5787_v34 = vld [vmem:[%s7835_s3 + $0x3dc] ss:$12 sps:$4 sm:$0xff]  }
 0x29d   :  { %3384 = vmatpush1.bf16.msra.mxu0 %v5675_v52  ;;  %2288 = vmatprep.subr.bf16.mxu1 %v5678_v58  ;;  %v5729_v52 = vld [vmem:[%s7835_s3 + $0x740] ss:$12 sps:$4 sm:$0xff]  }
 0x29e   :  { %3385 = vmatprep.subr.bf16.mxu0 %v5988_v27  ;;  %v5732_v58 = vld [vmem:[%s7835_s3 + $0x28c] ss:$12 sps:$4 sm:$0xff]  }
 0x2a0   :  { %2289 = vmatpush1.bf16.msra.mxu1 %v5676_v59  ;;  %v3772_v59 = vmax.f32 %v3770_v6, 0.0 }
 0x2a1   :  { %3386 = vmatpush1.bf16.msra.mxu0 %v5679_v56  ;;  %2290 = vmatprep.subr.bf16.mxu1 %v5682_v57  ;;  %v5733_v56 = vld [vmem:[%s7835_s3 + $0x758] ss:$12 sps:$4 sm:$0xff]   ;;  %v3471_v57 = vrot.slane %v7130_v54, 2 }
 0x2a2   :  { %3387 = vmatprep.subr.bf16.mxu0 %v5988_v27 }
 0x2a4   :  { %2291 = vmatpush1.bf16.msra.mxu1 %v5680_v60  ;;  %v7256_v60 = vpack.c.bf16 %v3772_v59, %v3772_v59 }
 0x2a5   :  { %3388 = vmatpush1.bf16.msra.mxu0 %v5683_v45  ;;  %2292 = vmatprep.subr.bf16.mxu1 %v5686_v46  ;;  %v5734_v45 = vld [vmem:[%s7835_s3 + $0x2a0] ss:$12 sps:$4 sm:$0xff]   ;;  %v5737_v46 = vld [vmem:[%s7835_s3 + $0x770] ss:$12 sps:$4 sm:$0xff]  }
 0x2a6   :  { %3389 = vmatprep.subr.bf16.mxu0 %v5988_v27 }
 0x2a8   :  { %2293 = vmatpush1.bf16.msra.mxu1 %v5684_v61  ;;  %v5740_v61 = vld [vmem:[%s7835_s3 + $0x2bc] ss:$12 sps:$4 sm:$0xff]  }
 0x2a9   :  { %3390 = vmatpush1.bf16.msra.mxu0 %v5687_v9  ;;  %2294 = vmatprep.subr.bf16.mxu1 %v5690_v12  ;;  %v5738_v9 = vld [vmem:[%s7835_s3 + $0x2b8] ss:$12 sps:$4 sm:$0xff]   ;;  %v5741_v12 = vld [vmem:[%s7835_s3 + $0x788] ss:$12 sps:$4 sm:$0xff]  }
 0x2aa   :  { %3391 = vmatprep.subr.bf16.mxu0 %v5988_v27 }
 0x2ac   :  { %2295 = vmatpush1.bf16.msra.mxu1 %v5688_v33  ;;  %v5744_v33 = vld [vmem:[%s7835_s3 + $0x2d4] ss:$12 sps:$4 sm:$0xff]  }
 0x2ad   :  { %3392 = vmatpush1.bf16.msra.mxu0 %v5691_v2  ;;  %2296 = vmatprep.subr.bf16.mxu1 %v5694_v3  ;;  %v5742_v2 = vld [vmem:[%s7835_s3 + $0x2d0] ss:$12 sps:$4 sm:$0xff]   ;;  %v5745_v3 = vld [vmem:[%s7835_s3 + $0x7a0] ss:$12 sps:$4 sm:$0xff]  }
 0x2ae   :  { %3393 = vmatprep.subr.bf16.mxu0 %v5988_v27 }
 0x2b0   :  { %2297 = vmatpush1.bf16.msra.mxu1 %v5692_v4  ;;  %v5748_v4 = vld [vmem:[%s7835_s3 + $0x2ec] ss:$12 sps:$4 sm:$0xff]  }
 0x2b1   :  { %3394 = vmatpush1.bf16.msra.mxu0 %v5695_v5  ;;  %2298 = vmatprep.subr.bf16.mxu1 %v5698_v30  ;;  %v5746_v5 = vld [vmem:[%s7835_s3 + $0x2e8] ss:$12 sps:$4 sm:$0xff]   ;;  %v5749_v30 = vld [vmem:[%s7835_s3 + $0x7b8] ss:$12 sps:$4 sm:$0xff]  }
 0x2b2   :  { %3395 = vmatprep.subr.bf16.mxu0 %v5988_v27 }
 0x2b4   :  { %2299 = vmatpush1.bf16.msra.mxu1 %v5696_v26  ;;  %v5752_v26 = vld [vmem:[%s7835_s3 + $0x304] ss:$12 sps:$4 sm:$0xff]  }
 0x2b5   :  { %3396 = vmatpush1.bf16.msra.mxu0 %v5699_v15  ;;  %2315 = vmatprep.subr.bf16.mxu1 %v5988_v27  ;;  %v5750_v15 = vld [vmem:[%s7835_s3 + $0x300] ss:$12 sps:$4 sm:$0xff]  }
 0x2b6   :  { %3397 = vmatprep.subr.bf16.mxu0 %v5988_v27 }
 0x2b7   :  { %2307 = vmatmul.mubr.bf16.vlgmr.msra.gmra.mrb[8].mxu1 %v6837_v39 }
 0x2b8   :  { %2316 = vmatpush1.bf16.msra.mxu1 %v5700_v38  ;;  %4816 = vmatprep.mubr.msk.bf16.mxu1 %vm1978_vm4, %v6834_v48  ;;  %v5704_v48 = vld [vmem:[%s7835_s3 + $0x38] ss:$12 sps:$4 sm:$0xff]   ;;  %v5753_v38 = vld [vmem:[%s7835_s3 + $0x7d0] ss:$12 sps:$4 sm:$0xff]  }
 0x2b9   :  { %3398 = vmatpush1.bf16.msra.mxu0 %v5701_v31  ;;  %2317 = vmatprep.subr.bf16.mxu1 %v5988_v27  ;;  %v5756_v31 = vld [vmem:[%s7835_s3 + $0x31c] ss:$12 sps:$4 sm:$0xff]  }
 0x2ba   :  { %3726 = vmatprep.subr.bf16.mxu0 %v5988_v27 }
 0x2bc   :  { %3406 = vmatmul.mubr.bf16.vlgmr.msra.gmra.mrb[16].mxu0 %v7130_v54  ;;  %2318 = vmatpush1.bf16.msra.mxu1 %v5702_v21  ;;  %v5757_v21 = vld [vmem:[%s7835_s3 + $0x7e8] ss:$12 sps:$4 sm:$0xff]  }
 0x2bd   :  { %3727 = vmatpush1.bf16.msra.mxu0 %v5703_v22  ;;  %5188 = vmatprep.mubr.msk.bf16.mxu0 %vm1978_vm4, %v3472_v23  ;;  %v5760_v22 = vld [vmem:[%s7835_s3 + $0x334] ss:$12 sps:$4 sm:$0xff]  }
 0x2be   :  { %2319 = vmatprep.subr.bf16.mxu1 %v5988_v27  ;;  %3728 = vmatprep.subr.bf16.mxu0 %v5988_v27 }
 0x2c0   :  { %2320 = vmatpush1.bf16.msra.mxu1 %v5704_v48  ;;  %v5758_v48 = vld [vmem:[%s7835_s3 + $0x330] ss:$12 sps:$4 sm:$0xff]  }
 0x2c1   :  { %3729 = vmatpush1.bf16.msra.mxu0 %v5705_v24  ;;  %2321 = vmatprep.subr.bf16.mxu1 %v5988_v27  ;;  %v5761_v24 = vld [vmem:[%s7835_s3 + $0x800] ss:$12 sps:$4 sm:$0xff]  }
 0x2c2   :  { %3730 = vmatprep.subr.bf16.mxu0 %v5988_v27 }
 0x2c4   :  { %2322 = vmatpush1.bf16.msra.mxu1 %v5706_v25  ;;  %v5764_v25 = vld [vmem:[%s7835_s3 + $0x34c] ss:$12 sps:$4 sm:$0xff]  }
 0x2c5   :  { %3731 = vmatpush1.bf16.msra.mxu0 %v5707_v29  ;;  %2323 = vmatprep.subr.bf16.mxu1 %v5988_v27  ;;  %v5762_v29 = vld [vmem:[%s7835_s3 + $0x348] ss:$12 sps:$4 sm:$0xff]  }
 0x2c6   :  { %3732 = vmatprep.subr.bf16.mxu0 %v5988_v27 }
 0x2c8   :  { %2324 = vmatpush1.bf16.msra.mxu1 %v5708_v28  ;;  %v5765_v28 = vld [vmem:[%s7835_s3 + $0x818] ss:$12 sps:$4 sm:$0xff]  }
 0x2c9   :  { %3733 = vmatpush1.bf16.msra.mxu0 %v5709_v17  ;;  %2325 = vmatprep.subr.bf16.mxu1 %v5988_v27  ;;  %v5768_v17 = vld [vmem:[%s7835_s3 + $0x364] ss:$12 sps:$4 sm:$0xff]  }
 0x2ca   :  { %3734 = vmatprep.subr.bf16.mxu0 %v5988_v27 }
 0x2cc   :  { %2326 = vmatpush1.bf16.msra.mxu1 %v5710_v32  ;;  %v5766_v32 = vld [vmem:[%s7835_s3 + $0x360] ss:$12 sps:$4 sm:$0xff]  }
 0x2cd   :  { %3735 = vmatpush1.bf16.msra.mxu0 %v5711_v35  ;;  %2327 = vmatprep.subr.bf16.mxu1 %v5988_v27  ;;  %v5769_v35 = vld [vmem:[%s7835_s3 + $0x830] ss:$12 sps:$4 sm:$0xff]  }
 0x2ce   :  { %3736 = vmatprep.subr.bf16.mxu0 %v5988_v27 }
 0x2d0   :  { %2328 = vmatpush1.bf16.msra.mxu1 %v5712_v62  ;;  %v5772_v62 = vld [vmem:[%s7835_s3 + $0x37c] ss:$12 sps:$4 sm:$0xff]  }
 0x2d1   :  { %3737 = vmatpush1.bf16.msra.mxu0 %v5713_v63  ;;  %2329 = vmatprep.subr.bf16.mxu1 %v5988_v27  ;;  %v5770_v63 = vld [vmem:[%s7835_s3 + $0x378] ss:$12 sps:$4 sm:$0xff]  }
 0x2d2   :  { %3738 = vmatprep.subr.bf16.mxu0 %v5988_v27 }
 0x2d4   :  { %2330 = vmatpush1.bf16.msra.mxu1 %v5714_v1  ;;  %v5773_v1 = vld [vmem:[%s7835_s3 + $0x848] ss:$12 sps:$4 sm:$0xff]  }
 0x2d5   :  { %3739 = vmatpush1.bf16.msra.mxu0 %v5715_v18  ;;  %2331 = vmatprep.subr.bf16.mxu1 %v5988_v27  ;;  %v5776_v18 = vld [vmem:[%s7835_s3 + $0x394] ss:$12 sps:$4 sm:$0xff]  }
 0x2d6   :  { %3740 = vmatprep.subr.bf16.mxu0 %v5988_v27 }
 0x2d8   :  { %2332 = vmatpush1.bf16.msra.mxu1 %v5716_v37  ;;  %v5774_v37 = vld [vmem:[%s7835_s3 + $0x390] ss:$12 sps:$4 sm:$0xff]  }
 0x2d9   :  { %3741 = vmatpush1.bf16.msra.mxu0 %v5717_v8  ;;  %2333 = vmatprep.subr.bf16.mxu1 %v5988_v27  ;;  %v5777_v8 = vld [vmem:[%s7835_s3 + $0x860] ss:$12 sps:$4 sm:$0xff]  }
 0x2da   :  { %3742 = vmatprep.subr.bf16.mxu0 %v5988_v27 }
 0x2dc   :  { %2334 = vmatpush1.bf16.msra.mxu1 %v5718_v10  ;;  %v5780_v10 = vld [vmem:[%s7835_s3 + $0x3ac] ss:$12 sps:$4 sm:$0xff]  }
 0x2dd   :  { %3743 = vmatpush1.bf16.msra.mxu0 %v5719_v49  ;;  %2335 = vmatprep.subr.bf16.mxu1 %v5988_v27  ;;  %v5778_v49 = vld [vmem:[%s7835_s3 + $0x3a8] ss:$12 sps:$4 sm:$0xff]  }
 0x2de   :  { %3744 = vmatprep.subr.bf16.mxu0 %v5988_v27 }
 0x2e0   :  { %2336 = vmatpush1.bf16.msra.mxu1 %v5720_v40  ;;  %v5781_v40 = vld [vmem:[%s7835_s3 + $0x878] ss:$12 sps:$4 sm:$0xff]  }
 0x2e1   :  { %3745 = vmatpush1.bf16.msra.mxu0 %v5721_v53  ;;  %2337 = vmatprep.subr.bf16.mxu1 %v5988_v27  ;;  %v5784_v53 = vld [vmem:[%s7835_s3 + $0x3c4] ss:$12 sps:$4 sm:$0xff]  }
 0x2e2   :  { %3746 = vmatprep.subr.bf16.mxu0 %v5988_v27 }
 0x2e4   :  { %2338 = vmatpush1.bf16.msra.mxu1 %v5722_v42  ;;  %v3771_v42 = vmax.f32 %v6880_v0, 0.0 }
 0x2e5   :  { %3747 = vmatpush1.bf16.msra.mxu0 %v5723_v41  ;;  %2339 = vmatprep.subr.bf16.mxu1 %v5988_v27  ;;  %v5782_v41 = vld [vmem:[%s7835_s3 + $0x3c0] ss:$12 sps:$4 sm:$0xff]  }
 0x2e6   :  { %3748 = vmatprep.subr.bf16.mxu0 %v5988_v27  ;;  %v7393_v0 = vpack.c.bf16 %v3771_v42, %v3771_v42  ;;  %v5838_v42 = vld [vmem:[%s7835_s3 + $0x574] ss:$12 sps:$4 sm:$0xff]  }
 0x2e8   :  { %2340 = vmatpush1.bf16.msra.mxu1 %v5724_v43 }
 0x2e9   :  { %3749 = vmatpush1.bf16.msra.mxu0 %v5725_v47  ;;  %2625 = vmatprep.subr.bf16.mxu1 %v5728_v50  ;;  %v5790_v50 = vld [vmem:[%s7835_s3 + $0x3f4] ss:$12 sps:$4 sm:$0xff]  }
 0x2ea   :  { %3750 = vmatprep.subr.bf16.mxu0 %v5988_v27 }
 0x2eb   :  { %2348 = vmatmul.mubr.bf16.vlgmr.msra.gmra.mrb[12].mxu1 %v6837_v39  ;;  %v5736_v39 = vld [vmem:[%s7835_s3 + $0x2a4] ss:$12 sps:$4 sm:$0xff]  }
 0x2ec   :  { %2626 = vmatpush1.bf16.msra.mxu1 %v5726_v55  ;;  %4908 = vmatprep.mubr.msk.bf16.mxu1 %vm1978_vm4, %v6852_v44 }
 0x2ed   :  { %3751 = vmatpush1.bf16.msra.mxu0 %v5729_v52  ;;  %2627 = vmatprep.subr.bf16.mxu1 %v5732_v58  ;;  %v5788_v58 = vld [vmem:[%s7835_s3 + $0x3f0] ss:$12 sps:$4 sm:$0xff]  }
 0x2ee   :  { %4080 = vmatprep.subr.bf16.mxu0 %v5988_v27 }
 0x2f0   :  { %3759 = vmatmul.mubr.bf16.vlgmr.msra.gmra.mrb[20].mxu0 %v3471_v57  ;;  %2628 = vmatpush1.bf16.msra.mxu1 %v5730_v20  ;;  %v5793_v20 = vld [vmem:[%s7835_s3 + $0x40c] ss:$12 sps:$4 sm:$0xff]  }
 0x2f1   :  { %4081 = vmatpush1.bf16.msra.mxu0 %v5733_v56  ;;  %5281 = vmatprep.mubr.msk.bf16.mxu0 %vm1978_vm4, %v7256_v60  ;;  %v5791_v56 = vld [vmem:[%s7835_s3 + $0x408] ss:$12 sps:$4 sm:$0xff]  }
 0x2f2   :  { %2629 = vmatprep.subr.bf16.mxu1 %v5736_v39  ;;  %4082 = vmatprep.subr.bf16.mxu0 %v5988_v27  ;;  %v5796_v39 = vld [vmem:[%s7835_s3 + $0x424] ss:$12 sps:$4 sm:$0xff]  }
 0x2f4   :  { %2630 = vmatpush1.bf16.msra.mxu1 %v5734_v45  ;;  %v5794_v45 = vld [vmem:[%s7835_s3 + $0x420] ss:$12 sps:$4 sm:$0xff]  }
 0x2f5   :  { %4083 = vmatpush1.bf16.msra.mxu0 %v5737_v46  ;;  %2631 = vmatprep.subr.bf16.mxu1 %v5740_v61  ;;  %v5799_v46 = vld [vmem:[%s7835_s3 + $0x43c] ss:$12 sps:$4 sm:$0xff]   ;;  %v5797_v61 = vld [vmem:[%s7835_s3 + $0x438] ss:$12 sps:$4 sm:$0xff]  }
 0x2f6   :  { %4084 = vmatprep.subr.bf16.mxu0 %v5988_v27 }
 0x2f8   :  { %2632 = vmatpush1.bf16.msra.mxu1 %v5738_v9  ;;  %v5802_v9 = vld [vmem:[%s7835_s3 + $0x454] ss:$12 sps:$4 sm:$0xff]  }
 0x2f9   :  { %4085 = vmatpush1.bf16.msra.mxu0 %v5741_v12  ;;  %2633 = vmatprep.subr.bf16.mxu1 %v5744_v33  ;;  %v5800_v12 = vld [vmem:[%s7835_s3 + $0x450] ss:$12 sps:$4 sm:$0xff]   ;;  %v5805_v33 = vld [vmem:[%s7835_s3 + $0x46c] ss:$12 sps:$4 sm:$0xff]  }
 0x2fa   :  { %4086 = vmatprep.subr.bf16.mxu0 %v5988_v27 }
 0x2fc   :  { %2634 = vmatpush1.bf16.msra.mxu1 %v5742_v2  ;;  %v5803_v2 = vld [vmem:[%s7835_s3 + $0x468] ss:$12 sps:$4 sm:$0xff]  }
 0x2fd   :  { %4087 = vmatpush1.bf16.msra.mxu0 %v5745_v3  ;;  %2635 = vmatprep.subr.bf16.mxu1 %v5748_v4  ;;  %v5808_v3 = vld [vmem:[%s7835_s3 + $0x484] ss:$12 sps:$4 sm:$0xff]   ;;  %v5806_v4 = vld [vmem:[%s7835_s3 + $0x480] ss:$12 sps:$4 sm:$0xff]  }
 0x2fe   :  { %4088 = vmatprep.subr.bf16.mxu0 %v5988_v27 }
 0x300   :  { %2636 = vmatpush1.bf16.msra.mxu1 %v5746_v5  ;;  %v5811_v5 = vld [vmem:[%s7835_s3 + $0x49c] ss:$12 sps:$4 sm:$0xff]  }
 0x301   :  { %4089 = vmatpush1.bf16.msra.mxu0 %v5749_v30  ;;  %2637 = vmatprep.subr.bf16.mxu1 %v5752_v26  ;;  %v5809_v30 = vld [vmem:[%s7835_s3 + $0x498] ss:$12 sps:$4 sm:$0xff]   ;;  %v5814_v26 = vld [vmem:[%s7835_s3 + $0x4b4] ss:$12 sps:$4 sm:$0xff]  }
 0x302   :  { %4090 = vmatprep.subr.bf16.mxu0 %v5988_v27 }
 0x304   :  { %2638 = vmatpush1.bf16.msra.mxu1 %v5750_v15  ;;  %v5812_v15 = vld [vmem:[%s7835_s3 + $0x4b0] ss:$12 sps:$4 sm:$0xff]  }
 0x305   :  { %4091 = vmatpush1.bf16.msra.mxu0 %v5753_v38  ;;  %2639 = vmatprep.subr.bf16.mxu1 %v5756_v31  ;;  %v5817_v38 = vld [vmem:[%s7835_s3 + $0x4cc] ss:$12 sps:$4 sm:$0xff]   ;;  %v5815_v31 = vld [vmem:[%s7835_s3 + $0x4c8] ss:$12 sps:$4 sm:$0xff]  }
 0x306   :  { %4092 = vmatprep.subr.bf16.mxu0 %v5988_v27 }
 0x308   :  { %2640 = vmatpush1.bf16.msra.mxu1 %v5754_v7  ;;  %v5820_v7 = vld [vmem:[%s7835_s3 + $0x4e4] ss:$12 sps:$4 sm:$0xff]  }
 0x309   :  { %4093 = vmatpush1.bf16.msra.mxu0 %v5757_v21  ;;  %2641 = vmatprep.subr.bf16.mxu1 %v5760_v22  ;;  %v5818_v21 = vld [vmem:[%s7835_s3 + $0x4e0] ss:$12 sps:$4 sm:$0xff]   ;;  %v5823_v22 = vld [vmem:[%s7835_s3 + $0x4fc] ss:$12 sps:$4 sm:$0xff]  }
 0x30a   :  { %4094 = vmatprep.subr.bf16.mxu0 %v5988_v27 }
 0x30c   :  { %2642 = vmatpush1.bf16.msra.mxu1 %v5758_v48  ;;  %v5821_v48 = vld [vmem:[%s7835_s3 + $0x4f8] ss:$12 sps:$4 sm:$0xff]  }
 0x30d   :  { %4095 = vmatpush1.bf16.msra.mxu0 %v5761_v24  ;;  %2643 = vmatprep.subr.bf16.mxu1 %v5764_v25  ;;  %v5826_v24 = vld [vmem:[%s7835_s3 + $0x514] ss:$12 sps:$4 sm:$0xff]  }
 0x30e   :  { %4096 = vmatprep.subr.bf16.mxu0 %v5988_v27 }
 0x310   :  { %2644 = vmatpush1.bf16.msra.mxu1 %v5762_v29 }
 0x311   :  { %4097 = vmatpush1.bf16.msra.mxu0 %v5765_v28  ;;  %2645 = vmatprep.subr.bf16.mxu1 %v5768_v17  ;;  %v5829_v17 = vld [vmem:[%s7835_s3 + $0x52c] ss:$12 sps:$4 sm:$0xff]  }
 0x312   :  { %4098 = vmatprep.subr.bf16.mxu0 %v5988_v27 }
 0x314   :  { %2646 = vmatpush1.bf16.msra.mxu1 %v5766_v32 }
 0x315   :  { %4099 = vmatpush1.bf16.msra.mxu0 %v5769_v35  ;;  %2647 = vmatprep.subr.bf16.mxu1 %v5772_v62  ;;  %v5827_v62 = vld [vmem:[%s7835_s3 + $0x528] ss:$12 sps:$4 sm:$0xff]  }
 0x316   :  { %4100 = vmatprep.subr.bf16.mxu0 %v5988_v27 }
 0x318   :  { %2648 = vmatpush1.bf16.msra.mxu1 %v5770_v63 }
 0x319   :  { %4101 = vmatpush1.bf16.msra.mxu0 %v5773_v1  ;;  %2649 = vmatprep.subr.bf16.mxu1 %v5776_v18  ;;  %v5832_v1 = vld [vmem:[%s7835_s3 + $0x544] ss:$12 sps:$4 sm:$0xff]  }
 0x31a   :  { %4102 = vmatprep.subr.bf16.mxu0 %v5988_v27 }
 0x31c   :  { %2650 = vmatpush1.bf16.msra.mxu1 %v5774_v37  ;;  %v5990_v37 = vmov 0.0  }
 0x31d   :  { %4103 = vmatpush1.bf16.msra.mxu0 %v5777_v8  ;;  %2978 = vmatprep.subr.bf16.mxu1 %v5780_v10  ;;  %v5926_v8 = vld [vmem:[%s7837_s5 + $0x80] sm:$0xff]  }
 0x31e   :  { %4104 = vmatprep.subr.bf16.mxu0 %v5988_v27  ;;  %v5830_v10 = vld [vmem:[%s7835_s3 + $0x540] ss:$12 sps:$4 sm:$0xff]  }
 0x31f   :  { %2658 = vmatmul.mubr.bf16.vlgmr.msra.gmra.mrb[16].mxu1 %v6861_v51  ;;  %v5824_v51 = vld [vmem:[%s7835_s3 + $0x510] ss:$12 sps:$4 sm:$0xff]  }
 0x320   :  { %2979 = vmatpush1.bf16.msra.mxu1 %v5778_v49  ;;  %5001 = vmatprep.mubr.msk.bf16.mxu1 %vm1978_vm4, %v2765_v13  ;;  %v5785_v13 = vld [vmem:[%s7835_s3 + $0x3d8] ss:$12 sps:$4 sm:$0xff]   ;;  %v5835_v49 = vld [vmem:[%s7835_s3 + $0x55c] ss:$12 sps:$4 sm:$0xff]  }
 0x321   :  { %4105 = vmatpush1.bf16.msra.mxu0 %v5781_v40  ;;  %2980 = vmatprep.subr.bf16.mxu1 %v5784_v53  ;;  %v5930_v40 = vld [vmem:[%s7837_s5 + $0x88] sm:$0xff]   ;;  %v5833_v53 = vld [vmem:[%s7835_s3 + $0x558] ss:$12 sps:$4 sm:$0xff]  }
 0x322   :  { %v7395_v27 = vpop.f32.mrb[0].mxu1  ;;  %5338 = vmatprep.subr.bf16.mxu0 %v5990_v37 }
 0x323   :  { %v7397_v43 = vpop.f32.mrb[1].mxu1 }
 0x324   :  { %4113 = vmatmul.mubr.bf16.vlgmr.msra.gmra.mrb[24].mxu0 %v7393_v0  ;;  %2981 = vmatpush1.bf16.msra.mxu1 %v5782_v41  ;;  %v2020_v44 = vpop.f32.mrb[2].mxu1  ;;  %v5934_v41 = vld [vmem:[%s7837_s5 + $0x90] sm:$0xff]  }
 0x325   :  { %v2021_v47 = vpop.f32.mrb[3].mxu1  ;;  %2982 = vmatprep.subr.bf16.mxu1 %v5787_v34  ;;  %5339 = vmatpush3.bf16.msra.mxu0 %v5926_v8  ;;  %v5836_v34 = vld [vmem:[%s7835_s3 + $0x570] ss:$12 sps:$4 sm:$0xff]   ;;  %v5841_v44 = vld [vmem:[%s7835_s3 + $0x58c] ss:$12 sps:$4 sm:$0xff]  }
 0x326   :  { %v7406_v6 = vpop.f32.mrb[8].mxu0  ;;  %5340 = vmatprep.subr.bf16.mxu0 %v5990_v37  ;;  %v5839_v47 = vld [vmem:[%s7835_s3 + $0x588] ss:$12 sps:$4 sm:$0xff]   ;;  %5354 = vmatprep.mubr.msk.bf16.mxu0 %vm5991_vm5, %v5990_v37  ;;  %v5884_v8 = vld [vmem:[%s7835_s3 + $0x6f0] ss:$12 sps:$4 sm:$0xff]  }
 0x327   :  { %v2702_v55 = vpop.f32.mrb[9].mxu0 }
 0x328   :  { %2983 = vmatpush1.bf16.msra.mxu1 %v5785_v13  ;;  %v2703_v52 = vpop.f32.mrb[10].mxu0  ;;  %v5938_v13 = vld [vmem:[%s7837_s5 + $0x98] sm:$0xff]   ;;  %v5939_v55 = vld [vmem:[%s7837_s5 + $0xa0] sm:$0xff]  }
 0x329   :  { %v2704_v59 = vpop.f32.mrb[11].mxu0  ;;  %2984 = vmatprep.subr.bf16.mxu1 %v5790_v50  ;;  %5341 = vmatpush3.bf16.msra.mxu0 %v5930_v40  ;;  %v5844_v50 = vld [vmem:[%s7835_s3 + $0x5a4] ss:$12 sps:$4 sm:$0xff]   ;;  %v5842_v52 = vld [vmem:[%s7835_s3 + $0x5a0] ss:$12 sps:$4 sm:$0xff]  }
 0x32a   :  { %5342 = vmatprep.subr.bf16.mxu0 %v5990_v37  ;;  %v5940_v59 = vld [vmem:[%s7837_s5 + $0xa8] sm:$0xff]   ;;  %v5892_v40 = vld [vmem:[%s7835_s3 + $0x724] ss:$12 sps:$4 sm:$0xff]  }
 0x32c   :  { %2985 = vmatpush1.bf16.msra.mxu1 %v5788_v58  ;;  %v5847_v58 = vld [vmem:[%s7835_s3 + $0x5bc] ss:$12 sps:$4 sm:$0xff]  }
 0x32d   :  { %2986 = vmatprep.subr.bf16.mxu1 %v5793_v20  ;;  %5343 = vmatpush3.bf16.msra.mxu0 %v5934_v41  ;;  %v5845_v20 = vld [vmem:[%s7835_s3 + $0x5b8] ss:$12 sps:$4 sm:$0xff]  }
 0x32e   :  { %5344 = vmatprep.subr.bf16.mxu0 %v5990_v37  ;;  %v5893_v41 = vld [vmem:[%s7835_s3 + $0x738] ss:$12 sps:$4 sm:$0xff]  }
 0x330   :  { %2987 = vmatpush1.bf16.msra.mxu1 %v5791_v56  ;;  %v5850_v56 = vld [vmem:[%s7835_s3 + $0x5d4] ss:$12 sps:$4 sm:$0xff]  }
 0x331   :  { %2988 = vmatprep.subr.bf16.mxu1 %v5796_v39  ;;  %5345 = vmatpush3.bf16.msra.mxu0 %v5938_v13  ;;  %v5941_v39 = vld [vmem:[%s7837_s5 + $0xb0] sm:$0xff]   ;;  %v5901_v13 = vld [vmem:[%s7835_s3 + $0x76c] ss:$12 sps:$4 sm:$0xff]  }
 0x332   :  { %5346 = vmatprep.subr.bf16.mxu0 %v5990_v37 }
 0x334   :  { %2989 = vmatpush1.bf16.msra.mxu1 %v5794_v45  ;;  %v5848_v45 = vld [vmem:[%s7835_s3 + $0x5d0] ss:$12 sps:$4 sm:$0xff]  }
 0x335   :  { %2990 = vmatprep.subr.bf16.mxu1 %v5799_v46  ;;  %5347 = vmatpush3.bf16.msra.mxu0 %v5939_v55  ;;  %v5853_v46 = vld [vmem:[%s7835_s3 + $0x5ec] ss:$12 sps:$4 sm:$0xff]  }
 0x336   :  { %5348 = vmatprep.subr.bf16.mxu0 %v5990_v37 }
 0x338   :  { %2991 = vmatpush1.bf16.msra.mxu1 %v5797_v61  ;;  %v5942_v61 = vld [vmem:[%s7837_s5 + $0xb8] sm:$0xff]  }
 0x339   :  { %2992 = vmatprep.subr.bf16.mxu1 %v5802_v9  ;;  %5349 = vmatpush3.bf16.msra.mxu0 %v5940_v59  ;;  %v5851_v9 = vld [vmem:[%s7835_s3 + $0x5e8] ss:$12 sps:$4 sm:$0xff]  }
 0x33a   :  { %5350 = vmatprep.subr.bf16.mxu0 %v5990_v37 }
 0x33c   :  { %2993 = vmatpush1.bf16.msra.mxu1 %v5800_v12  ;;  %v5856_v12 = vld [vmem:[%s7835_s3 + $0x604] ss:$12 sps:$4 sm:$0xff]  }
 0x33d   :  { %2994 = vmatprep.subr.bf16.mxu1 %v5805_v33  ;;  %5351 = vmatpush3.bf16.msra.mxu0 %v5941_v39  ;;  %v5854_v33 = vld [vmem:[%s7835_s3 + $0x600] ss:$12 sps:$4 sm:$0xff]  }
 0x33e   :  { %5352 = vmatprep.subr.bf16.mxu0 %v5990_v37  ;;  %v5886_v37 = vld [vmem:[%s7835_s3 + $0x6f4] ss:$12 sps:$4 sm:$0xff]  }
 0x340   :  { %2995 = vmatpush1.bf16.msra.mxu1 %v5803_v2  ;;  %v5859_v2 = vld [vmem:[%s7835_s3 + $0x61c] ss:$12 sps:$4 sm:$0xff]  }
 0x341   :  { %2996 = vmatprep.subr.bf16.mxu1 %v5808_v3  ;;  %5353 = vmatpush3.bf16.msra.mxu0 %v5942_v61  ;;  %v5857_v3 = vld [vmem:[%s7835_s3 + $0x618] ss:$12 sps:$4 sm:$0xff]  }
 0x344   :  { %2997 = vmatpush1.bf16.msra.mxu1 %v5806_v4  ;;  %v5862_v4 = vld [vmem:[%s7835_s3 + $0x634] ss:$12 sps:$4 sm:$0xff]  }
 0x345   :  { %2998 = vmatprep.subr.bf16.mxu1 %v5811_v5  ;;  %v5860_v5 = vld [vmem:[%s7835_s3 + $0x630] ss:$12 sps:$4 sm:$0xff]  }
 0x348   :  { %2999 = vmatpush1.bf16.msra.mxu1 %v5809_v30  ;;  %v5865_v30 = vld [vmem:[%s7835_s3 + $0x64c] ss:$12 sps:$4 sm:$0xff]  }
 0x349   :  { %3000 = vmatprep.subr.bf16.mxu1 %v5814_v26 }
 0x34c   :  { %3001 = vmatpush1.bf16.msra.mxu1 %v5812_v15 }
 0x34d   :  { %3002 = vmatprep.subr.bf16.mxu1 %v5817_v38 }
 0x350   :  { %3003 = vmatpush1.bf16.msra.mxu1 %v5815_v31 }
 0x351   :  { %3332 = vmatprep.subr.bf16.mxu1 %v5820_v7 }
 0x353   :  { %3011 = vmatmul.mubr.bf16.vlgmr.msra.gmra.mrb[20].mxu1 %v2764_v36 }
 0x354   :  { %3333 = vmatpush1.bf16.msra.mxu1 %v5818_v21  ;;  %5094 = vmatprep.mubr.msk.bf16.mxu1 %vm1978_vm4, %v6998_v16  ;;  %v5868_v21 = vld [vmem:[%s7835_s3 + $0x664] ss:$12 sps:$4 sm:$0xff]  }
 0x355   :  { %3334 = vmatprep.subr.bf16.mxu1 %v5823_v22 }
 0x356   :  { %v7484_v25 = vpop.f32.mrb[4].mxu1 }
 0x357   :  { %v2059_v29 = vpop.f32.mrb[5].mxu1 }
 0x358   :  { %v2060_v28 = vpop.f32.mrb[6].mxu1  ;;  %3335 = vmatpush1.bf16.msra.mxu1 %v5821_v48 }
 0x359   :  { %v2061_v36 = vpop.f32.mrb[7].mxu1  ;;  %3336 = vmatprep.subr.bf16.mxu1 %v5826_v24  ;;  %v5871_v24 = vld [vmem:[%s7835_s3 + $0x67c] ss:$12 sps:$4 sm:$0xff]   ;;  %v5869_v28 = vld [vmem:[%s7835_s3 + $0x678] ss:$12 sps:$4 sm:$0xff]  }
 0x35a   :  { %v5872_v36 = vld [vmem:[%s7835_s3 + $0x690] ss:$12 sps:$4 sm:$0xff]  }
 0x35b   :  { %v7492_v32 = vpop.f32.mrb[12].mxu0 }
 0x35c   :  { %v3055_v35 = vpop.f32.mrb[13].mxu0  ;;  %3337 = vmatpush1.bf16.msra.mxu1 %v5824_v51  ;;  %v5874_v51 = vld [vmem:[%s7835_s3 + $0x694] ss:$12 sps:$4 sm:$0xff]  }
 0x35d   :  { %v3056_v63 = vpop.f32.mrb[14].mxu0  ;;  %3338 = vmatprep.subr.bf16.mxu1 %v5829_v17  ;;  %v5877_v17 = vld [vmem:[%s7835_s3 + $0x6ac] ss:$12 sps:$4 sm:$0xff]   ;;  %v5875_v35 = vld [vmem:[%s7835_s3 + $0x6a8] ss:$12 sps:$4 sm:$0xff]  }
 0x35e   :  { %v3057_v18 = vpop.f32.mrb[15].mxu0  ;;  %v5878_v63 = vld [vmem:[%s7835_s3 + $0x6c0] ss:$12 sps:$4 sm:$0xff]  }
 0x35f   :  { %v5881_v18 = vld [vmem:[%s7835_s3 + $0x6d8] ss:$12 sps:$4 sm:$0xff]  }
 0x360   :  { %3339 = vmatpush1.bf16.msra.mxu1 %v5827_v62  ;;  %v5880_v62 = vld [vmem:[%s7835_s3 + $0x6c4] ss:$12 sps:$4 sm:$0xff]  }
 0x361   :  { %3340 = vmatprep.subr.bf16.mxu1 %v5832_v1  ;;  %v5883_v1 = vld [vmem:[%s7835_s3 + $0x6dc] ss:$12 sps:$4 sm:$0xff]  }
 0x364   :  { %3341 = vmatpush1.bf16.msra.mxu1 %v5830_v10  ;;  %v5889_v10 = vld [vmem:[%s7835_s3 + $0x70c] ss:$12 sps:$4 sm:$0xff]  }
 0x365   :  { %3342 = vmatprep.subr.bf16.mxu1 %v5835_v49  ;;  %v5887_v49 = vld [vmem:[%s7835_s3 + $0x708] ss:$12 sps:$4 sm:$0xff]  }
 0x368   :  { %3343 = vmatpush1.bf16.msra.mxu1 %v5833_v53  ;;  %v5890_v53 = vld [vmem:[%s7835_s3 + $0x720] ss:$12 sps:$4 sm:$0xff]  }
 0x369   :  { %3344 = vmatprep.subr.bf16.mxu1 %v5838_v42  ;;  %v5895_v42 = vld [vmem:[%s7835_s3 + $0x73c] ss:$12 sps:$4 sm:$0xff]  }
 0x36c   :  { %3345 = vmatpush1.bf16.msra.mxu1 %v5836_v34  ;;  %v5898_v34 = vld [vmem:[%s7835_s3 + $0x754] ss:$12 sps:$4 sm:$0xff]  }
 0x36d   :  { %3346 = vmatprep.subr.bf16.mxu1 %v5841_v44  ;;  %v5896_v44 = vld [vmem:[%s7835_s3 + $0x750] ss:$12 sps:$4 sm:$0xff]  }
 0x370   :  { %3347 = vmatpush1.bf16.msra.mxu1 %v5839_v47  ;;  %v5899_v47 = vld [vmem:[%s7835_s3 + $0x768] ss:$12 sps:$4 sm:$0xff]  }
 0x371   :  { %3348 = vmatprep.subr.bf16.mxu1 %v5844_v50  ;;  %v5904_v50 = vld [vmem:[%s7835_s3 + $0x784] ss:$12 sps:$4 sm:$0xff]  }
 0x374   :  { %3349 = vmatpush1.bf16.msra.mxu1 %v5842_v52 }
 0x375   :  { %3350 = vmatprep.subr.bf16.mxu1 %v5847_v58 }
 0x378   :  { %3351 = vmatpush1.bf16.msra.mxu1 %v5845_v20  ;;  %v5907_v20 = vld [vmem:[%s7835_s3 + $0x79c] ss:$12 sps:$4 sm:$0xff]  }
 0x379   :  { %3352 = vmatprep.subr.bf16.mxu1 %v5850_v56 }
 0x37c   :  { %3353 = vmatpush1.bf16.msra.mxu1 %v5848_v45 }
 0x37d   :  { %3354 = vmatprep.subr.bf16.mxu1 %v5853_v46 }
 0x380   :  { %3355 = vmatpush1.bf16.msra.mxu1 %v5851_v9 }
 0x381   :  { %3356 = vmatprep.subr.bf16.mxu1 %v5856_v12 }
 0x384   :  { %3357 = vmatpush1.bf16.msra.mxu1 %v5854_v33  ;;  %v5913_v33 = vld [vmem:[%s7835_s3 + $0x7cc] ss:$12 sps:$4 sm:$0xff]  }
 0x385   :  { %3685 = vmatprep.subr.bf16.mxu1 %v5859_v2  ;;  %v5911_v2 = vld [vmem:[%s7835_s3 + $0x7c8] ss:$12 sps:$4 sm:$0xff]  }
 0x387   :  { %3365 = vmatmul.mubr.bf16.vlgmr.msra.gmra.mrb[24].mxu1 %v7130_v54  ;;  %v5902_v54 = vld [vmem:[%s7835_s3 + $0x780] ss:$12 sps:$4 sm:$0xff]  }
 0x388   :  { %3686 = vmatpush1.bf16.msra.mxu1 %v5857_v3  ;;  %5187 = vmatprep.mubr.msk.bf16.mxu1 %vm1978_vm4, %v3472_v23  ;;  %v5863_v23 = vld [vmem:[%s7835_s3 + $0x648] ss:$12 sps:$4 sm:$0xff]   ;;  %v5916_v3 = vld [vmem:[%s7835_s3 + $0x7e4] ss:$12 sps:$4 sm:$0xff]  }
 0x389   :  { %3687 = vmatprep.subr.bf16.mxu1 %v5862_v4  ;;  %v5914_v4 = vld [vmem:[%s7835_s3 + $0x7e0] ss:$12 sps:$4 sm:$0xff]  }
 0x38a   :  { %v2308_v26 = vpop.f32.mrb[8].mxu1 }
 0x38b   :  { %v7595_v15 = vadd.f32 %v2308_v26, %v7395_v27  ;;  %v2310_v38 = vpop.f32.mrb[9].mxu1  ;;  %v5922_v26 = vld [vmem:[%s7835_s3 + $0x814] ss:$12 sps:$4 sm:$0xff]  }
 0x38c   :  { %v7598_v31 = vadd.f32 %v2310_v38, %v7397_v43  ;;  %v2312_v16 = vpop.f32.mrb[10].mxu1  ;;  %3688 = vmatpush1.bf16.msra.mxu1 %v5860_v5  ;;  %v5866_v43 = vld [vmem:[%s7835_s3 + $0x660] ss:$12 sps:$4 sm:$0xff]   ;;  %v5919_v5 = vld [vmem:[%s7835_s3 + $0x7fc] ss:$12 sps:$4 sm:$0xff]  }
 0x38d   :  { %v2313_v7 = vpop.f32.mrb[11].mxu1  ;;  %3689 = vmatprep.subr.bf16.mxu1 %v5865_v30  ;;  %v5917_v30 = vld [vmem:[%s7835_s3 + $0x7f8] ss:$12 sps:$4 sm:$0xff]   ;;  %v5920_v38 = vld [vmem:[%s7835_s3 + $0x810] ss:$12 sps:$4 sm:$0xff]  }
 0x38e   :  { %v5925_v16 = vld [vmem:[%s7835_s3 + $0x82c] ss:$12 sps:$4 sm:$0xff]   ;;  %v5929_v7 = vld [vmem:[%s7835_s3 + $0x844] ss:$12 sps:$4 sm:$0xff]  }
 0x38f   :  { %v7606_v22 = vpop.f32.mrb[16].mxu0 }
 0x390   :  { %v3409_v27 = vpop.f32.mrb[17].mxu0  ;;  %3690 = vmatpush1.bf16.msra.mxu1 %v5863_v23  ;;  %v5923_v23 = vld [vmem:[%s7835_s3 + $0x828] ss:$12 sps:$4 sm:$0xff]  }
 0x391   :  { %v3410_v48 = vpop.f32.mrb[18].mxu0  ;;  %3691 = vmatprep.subr.bf16.mxu1 %v5868_v21  ;;  %v5927_v21 = vld [vmem:[%s7835_s3 + $0x840] ss:$12 sps:$4 sm:$0xff]   ;;  %v5931_v27 = vld [vmem:[%s7835_s3 + $0x858] ss:$12 sps:$4 sm:$0xff]  }
 0x392   :  { %v3411_v29 = vpop.f32.mrb[19].mxu0  ;;  %v5935_v48 = vld [vmem:[%s7835_s3 + $0x870] ss:$12 sps:$4 sm:$0xff]  }
 0x393   :  { %v4135_v29 = vsub.s32 2, %v6054_v11 }
 0x394   :  { %3692 = vmatpush1.bf16.msra.mxu1 %v5866_v43  ;;  %v5937_v43 = vld [vmem:[%s7835_s3 + $0x874] ss:$12 sps:$4 sm:$0xff]  }
 0x395   :  { %3693 = vmatprep.subr.bf16.mxu1 %v5871_v24 }
 0x398   :  { %3694 = vmatpush1.bf16.msra.mxu1 %v5869_v28 }
 0x399   :  { %3695 = vmatprep.subr.bf16.mxu1 %v5874_v51 }
 0x39c   :  { %3696 = vmatpush1.bf16.msra.mxu1 %v5872_v36  ;;  %v7757_v36 = vld [vmem:[%s7836_s4] sm:$0x7] }
 0x39d   :  { %3697 = vmatprep.subr.bf16.mxu1 %v5877_v17 }
 0x3a0   :  { %3698 = vmatpush1.bf16.msra.mxu1 %v5875_v35 }
 0x3a1   :  { %3699 = vmatprep.subr.bf16.mxu1 %v5880_v62 }
 0x3a4   :  { %3700 = vmatpush1.bf16.msra.mxu1 %v5878_v63  ;;  %v4136_v63 = vrot.slane %v7757_v36, %v4135_v29 }
 0x3a5   :  { %3701 = vmatprep.subr.bf16.mxu1 %v5883_v1 }
 0x3a8   :  { %3702 = vmatpush1.bf16.msra.mxu1 %v5881_v18 }
 0x3a9   :  { %3703 = vmatprep.subr.bf16.mxu1 %v5886_v37 }
 0x3ac   :  { %3704 = vmatpush1.bf16.msra.mxu1 %v5884_v8 }
 0x3ad   :  { %3705 = vmatprep.subr.bf16.mxu1 %v5889_v10 }
 0x3b0   :  { %3706 = vmatpush1.bf16.msra.mxu1 %v5887_v49 }
 0x3b1   :  { %3707 = vmatprep.subr.bf16.mxu1 %v5892_v40  ;;  %v5943_v40 = vld [vmem:[%s7837_s5 + $0x40] sm:$0xff]  }
 0x3b4   :  { %3708 = vmatpush1.bf16.msra.mxu1 %v5890_v53  ;;  %v5945_v53 = vld [vmem:[%s7837_s5 + $0x48] sm:$0xff]  }
 0x3b5   :  { %3709 = vmatprep.subr.bf16.mxu1 %v5895_v42  ;;  %v5946_v42 = vld [vmem:[%s7837_s5 + $0x8] sm:$0xff]  }
 0x3b8   :  { %3710 = vmatpush1.bf16.msra.mxu1 %v5893_v41  ;;  %v5947_v41 = vld [vmem:[%s7837_s5 + $0x50] sm:$0xff]  }
 0x3b9   :  { %4039 = vmatprep.subr.bf16.mxu1 %v5898_v34  ;;  %v5948_v34 = vld [vmem:[%s7837_s5 + $0x10] sm:$0xff]  }
 0x3bb   :  { %3718 = vmatmul.mubr.bf16.vlgmr.msra.gmra.mrb[28].mxu1 %v3471_v57 }
 0x3bc   :  { %4040 = vmatpush1.bf16.msra.mxu1 %v5896_v44  ;;  %5280 = vmatprep.mubr.msk.bf16.mxu1 %vm1978_vm4, %v7256_v60  ;;  %v5949_v44 = vld [vmem:[%s7837_s5 + $0x58] sm:$0xff]  }
 0x3bd   :  { %4041 = vmatprep.subr.bf16.mxu1 %v5901_v13  ;;  %v5950_v13 = vld [vmem:[%s7837_s5 + $0x18] sm:$0xff]  }
 0x3be   :  { %v2349_v55 = vpop.f32.mrb[12].mxu1 }
 0x3bf   :  { %v2350_v52 = vadd.f32 %v2349_v55, %v7484_v25  ;;  %v2351_v58 = vpop.f32.mrb[13].mxu1  ;;  %v5905_v25 = vld [vmem:[%s7835_s3 + $0x798] ss:$12 sps:$4 sm:$0xff]   ;;  %v5953_v55 = vld [vmem:[%s7837_s5 + $0x68] sm:$0xff]  }
 0x3c0   :  { %v2352_v59 = vpop.f32.mrb[14].mxu1  ;;  %4042 = vmatpush1.bf16.msra.mxu1 %v5899_v47  ;;  %v5951_v47 = vld [vmem:[%s7837_s5 + $0x60] sm:$0xff]  }
 0x3c1   :  { %v2708_v57 = vadd.f32 %v7406_v6, %v2350_v52  ;;  %v2353_v60 = vpop.f32.mrb[15].mxu1  ;;  %4043 = vmatprep.subr.bf16.mxu1 %v5904_v50  ;;  %v5910_v6 = vld [vmem:[%s7835_s3 + $0x7b4] ss:$12 sps:$4 sm:$0xff]  }
 0x3c2   :  { %v5952_v50 = vld [vmem:[%s7837_s5 + $0x20] sm:$0xff]  }
 0x3c3   :  { %v3061_v56 = vadd.f32 %v7492_v32, %v2708_v57  ;;  %v3760_v39 = vpop.f32.mrb[20].mxu0  ;;  %v5908_v32 = vld [vmem:[%s7835_s3 + $0x7b0] ss:$12 sps:$4 sm:$0xff]  }
 0x3c4   :  { %v3762_v45 = vpop.f32.mrb[21].mxu0  ;;  %4044 = vmatpush1.bf16.msra.mxu1 %v5902_v54 }
 0x3c5   :  { %v3415_v46 = vadd.f32 %v7606_v22, %v3061_v56  ;;  %v3763_v61 = vpop.f32.mrb[22].mxu0  ;;  %4045 = vmatprep.subr.bf16.mxu1 %v5907_v20  ;;  %v5933_v22 = vld [vmem:[%s7835_s3 + $0x85c] ss:$12 sps:$4 sm:$0xff]   ;;  %v5955_v56 = vld [vmem:[%s7837_s5 + $0x70] sm:$0xff]  }
 0x3c6   :  { %v3764_v9 = vpop.f32.mrb[23].mxu0  ;;  %v5954_v20 = vld [vmem:[%s7837_s5 + $0x28] sm:$0xff]   ;;  %v5957_v45 = vld [vmem:[%s7837_s5 + $0x78] sm:$0xff]  }
 0x3c7   :  { %v3768_v12 = vadd.f32 %v3760_v39, %v3415_v46  ;;  %v5956_v39 = vld [vmem:[%s7837_s5 + $0x30] sm:$0xff]  }
 0x3c8   :  { %4046 = vmatpush1.bf16.msra.mxu1 %v5905_v25  ;;  %v5958_v25 = vld [vmem:[%s7837_s5 + $0x38] sm:$0xff]  }
 0x3c9   :  { %4047 = vmatprep.subr.bf16.mxu1 %v5910_v6 }
 0x3cc   :  { %4048 = vmatpush1.bf16.msra.mxu1 %v5908_v32 }
 0x3cd   :  { %4049 = vmatprep.subr.bf16.mxu1 %v5913_v33 }
 0x3d0   :  { %4050 = vmatpush1.bf16.msra.mxu1 %v5911_v2 }
 0x3d1   :  { %4051 = vmatprep.subr.bf16.mxu1 %v5916_v3 }
 0x3d4   :  { %4052 = vmatpush1.bf16.msra.mxu1 %v5914_v4 }
 0x3d5   :  { %4053 = vmatprep.subr.bf16.mxu1 %v5919_v5 }
 0x3d8   :  { %4054 = vmatpush1.bf16.msra.mxu1 %v5917_v30 }
 0x3d9   :  { %4055 = vmatprep.subr.bf16.mxu1 %v5922_v26  ;;  %v4128_v26 = vrot.slane %v7757_v36, %v1646_v19 }
 0x3dc   :  { %4056 = vmatpush1.bf16.msra.mxu1 %v5920_v38 }
 0x3dd   :  { %4057 = vmatprep.subr.bf16.mxu1 %v5925_v16  ;;  %v4132_v16 = vrot.slane %v7757_v36, %v1650_v14  ;;  %v5282_v14 = vld [vmem:[%s7838_s6] ss:$0 sm:$0xff]  ;;  %s5992_s6 = smov [#allocation2]  }
 0x3de   :  { %s4448_s13 = sshll.u32 %s5992_s6, 4  ;;  %s4449_s13 = int_to_ptr.vmem [resolvable:$true] %s4448_s13 }
 0x3df   :  { %s5963_s14 = scalar_lea.vmem %s4449_s13, 32  ;;  %p5968_p1 = scmp.lt.s32.totalorder %s4449_s13, %s4449_s13 }
 0x3e0   :  { %4058 = vmatpush1.bf16.msra.mxu1 %v5923_v23  ;;  %p5964_p0 = scmp.ne.s32.totalorder %s4449_s13, %s5963_s14  ;;  %p5969_p2 = scmp.lt.s32.totalorder %s5963_s14, %s5963_s14 }
 0x3e1   :  { %4059 = vmatprep.subr.bf16.mxu1 %v5929_v7 }
 0x3e2   :  { %p5970_p3 = por %p5969_p2, %p5968_p1 }
 0x3e4   :  { %4060 = vmatpush1.bf16.msra.mxu1 %v5927_v21  ;;  %p5971_p4 = pnand %p5970_p3, %p5964_p0 }
 0x3e5   :  { %4061 = vmatprep.subr.bf16.mxu1 %v5933_v22 }
 0x3e8   :  { %4062 = vmatpush1.bf16.msra.mxu1 %v5931_v27 }
 0x3e9   :  { %4063 = vmatprep.subr.bf16.mxu1 %v5937_v43 }
 0x3ec   :  { %4064 = vmatpush1.bf16.msra.mxu1 %v5935_v48 }
 0x3ed   :  { %5307 = vmatprep.subr.bf16.mxu1 %v5943_v40 }
 0x3ef   :  { %4072 = vmatmul.mubr.bf16.vlgmr.msra.gmra.mrb[32].mxu1 %v7393_v0 }
 0x3f2   :  { %v2659_v24 = vpop.f32.mrb[16].mxu1 }
 0x3f3   :  { %v2706_v28 = vadd.f32 %v2659_v24, %v7595_v15  ;;  %v2661_v51 = vpop.f32.mrb[17].mxu1 }
 0x3f4   :  { %v2707_v17 = vadd.f32 %v2661_v51, %v7598_v31  ;;  %v2663_v35 = vpop.f32.mrb[18].mxu1  ;;  %v5944_v31 = vld [vmem:[%s7837_s5] sm:$0xff]  }
 0x3f5   :  { %v2664_v62 = vpop.f32.mrb[19].mxu1  ;;  %5308 = vmatpush3.bf16.msra.mxu1 %v5944_v31 }
 0x3f6   :  { %5309 = vmatprep.subr.bf16.mxu1 %v5945_v53 }
 0x3f7   :  { %v4114_v1 = vpop.f32.mrb[24].mxu0 }
 0x3f8   :  { %v4122_v18 = vadd.f32 %v4114_v1, %v3768_v12  ;;  %v4116_v0 = vpop.f32.mrb[25].mxu0 }
 0x3f9   :  { %v4117_v37 = vpop.f32.mrb[26].mxu0  ;;  %5310 = vmatpush3.bf16.msra.mxu1 %v5946_v42 }
 0x3fa   :  { %v4142_v8 = vadd.f32 %v4136_v63, %v4122_v18  ;;  %v4118_v10 = vpop.f32.mrb[27].mxu0  ;;  %5311 = vmatprep.subr.bf16.mxu1 %v5947_v41 }
 0x3fc   :  { %v4145_v49 = vmax.f32 %v4142_v8, 0.0 }
 0x3fd   :  { %5312 = vmatpush3.bf16.msra.mxu1 %v5948_v34 }
 0x3fe   :  { %v4148_v15 = vpack.c.bf16 %v4145_v49, %v4145_v49  ;;  %5313 = vmatprep.subr.bf16.mxu1 %v5949_v44 }
 0x400   :  { %5355 = vmatmul.mubr.bf16.vlgmr.msra.gmra.mrb[28].mxu0 %v4148_v15 }
 0x401   :  { %5314 = vmatpush3.bf16.msra.mxu1 %v5950_v13 }
 0x402   :  { %5315 = vmatprep.subr.bf16.mxu1 %v5951_v47 }
 0x405   :  { %5316 = vmatpush3.bf16.msra.mxu1 %v5952_v50 }
 0x406   :  { %5317 = vmatprep.subr.bf16.mxu1 %v5953_v55 }
 0x409   :  { %5318 = vmatpush3.bf16.msra.mxu1 %v5954_v20 }
 0x40a   :  { %5319 = vmatprep.subr.bf16.mxu1 %v5955_v56 }
 0x40d   :  { %5320 = vmatpush3.bf16.msra.mxu1 %v5956_v39 }
 0x40e   :  { %5321 = vmatprep.subr.bf16.mxu1 %v5957_v45 }
 0x411   :  { %5322 = vmatpush3.bf16.msra.mxu1 %v5958_v25 }
 0x426   :  { %v3012_v52 = vpop.f32.mrb[20].mxu1 }
 0x427   :  { %v3059_v58 = vadd.f32 %v3012_v52, %v2706_v28  ;;  %v3014_v59 = vpop.f32.mrb[21].mxu1 }
 0x428   :  { %v3060_v54 = vadd.f32 %v3014_v59, %v2707_v17  ;;  %v3016_v57 = vpop.f32.mrb[22].mxu1 }
 0x429   :  { %v3017_v60 = vpop.f32.mrb[23].mxu1 }
 0x45a   :  { %v3366_v46 = vpop.f32.mrb[24].mxu1 }
 0x45b   :  { %v3413_v61 = vadd.f32 %v3366_v46, %v3059_v58  ;;  %v3368_v6 = vpop.f32.mrb[25].mxu1 }
 0x45c   :  { %v3414_v9 = vadd.f32 %v3368_v6, %v3060_v54  ;;  %v3370_v12 = vpop.f32.mrb[26].mxu1 }
 0x45d   :  { %v3371_v32 = vpop.f32.mrb[27].mxu1 }
 0x48e   :  { %v3719_v33 = vpop.f32.mrb[28].mxu1 }
 0x48f   :  { %v3766_v2 = vadd.f32 %v3719_v33, %v3413_v61  ;;  %v3721_v3 = vpop.f32.mrb[29].mxu1 }
 0x490   :  { %v3767_v4 = vadd.f32 %v3721_v3, %v3414_v9  ;;  %v3723_v5 = vpop.f32.mrb[30].mxu1 }
 0x491   :  { %v3724_v30 = vpop.f32.mrb[31].mxu1 }
 0x4c2   :  { %v4073_v38 = vpop.f32.mrb[32].mxu1 }
 0x4c3   :  { %v4120_v23 = vadd.f32 %v4073_v38, %v3766_v2  ;;  %v4075_v7 = vpop.f32.mrb[33].mxu1 }
 0x4c4   :  { %v4121_v21 = vadd.f32 %v4075_v7, %v3767_v4  ;;  %v4077_v22 = vpop.f32.mrb[34].mxu1 }
 0x4c5   :  { %v4140_v27 = vadd.f32 %v4128_v26, %v4120_v23  ;;  %v4078_v43 = vpop.f32.mrb[35].mxu1 }
 0x4c6   :  { %v4141_v48 = vadd.f32 %v4132_v16, %v4121_v21 }
 0x4c7   :  { %v4143_v24 = vmax.f32 %v4140_v27, 0.0 }
 0x4c8   :  { %v4144_v29 = vmax.f32 %v4141_v48, 0.0 }
 0x4c9   :  { %v4146_v51 = vpack.c.bf16 %v4143_v24, %v4143_v24 }
 0x4ca   :  { %v4147_v28 = vpack.c.bf16 %v4144_v29, %v4144_v29 }
 0x4cc   :  { %4380 = vmatprep.mubr.bf16.mxu1 %v4147_v28 }
 0x4cd   :  { %4381 = vmatmul.mubr.bf16.vlgmr.msra.gmra.mrb[36].mxu1 %v4146_v51 }
 0x4d3   :  { %v4422_v17 = vpop.f32.mrb[28].mxu0 }
 0x4d4   :  { %v5356_v19 = vpop.f32.mrb[29].mxu0 }
 0x4d5   :  { %v4425_v35 = vpop.f32.mrb[30].mxu0 }
 0x4d6   :  { %v5357_v62 = vpop.f32.mrb[31].mxu0 }
 0x5a0   :  { %v5323_v11 = vpop.f32.mrb[36].mxu1 }
 0x5a1   :  { %v5324_v36 = vpop.f32.mrb[37].mxu1 }
 0x5a2   :  { %v5325_v63 = vadd.f32 %v5324_v36, %v5323_v11  ;;  %v5326_v1 = vpop.f32.mrb[38].mxu1 }
 0x5a3   :  { %v5327_v18 = vpop.f32.mrb[39].mxu1 }
 0x5a4   :  { %v4383_v0 = vadd.f32 %v5325_v63, %v5282_v14 }
 0x5a6   :  { %v4423_v37 = vadd.f32 %v4422_v17, %v4383_v0 }
 0x5a8   :  { %v4428_v8 = vsel %vm354_vm1, %v4423_v37, -inf }
 0x5a9   :  { %4429 = vmax.xlane.f32.xlu0 %v4428_v8 }
 0x636   :  { %v4430_v10 = vpop.xlane.xlu0 %4429 }
 0x637   :  { %v4431_v49 = vsub.f32 %v4423_v37, %v4430_v10 }
 0x639   :  { %v4432_v15 = vmul.f32 1.442695, %v4431_v49 }
 0x63b   :  { %5959 = vpow2.f32 %v4432_v15 }
 0x645   :  { %v5960_v40 = vpop.eup %5959 }
 0x646   :  { %v4434_v31 = vsel %vm354_vm1, %v5960_v40, 0.0 }
 0x647   :  { %4435 = vadd.xlane.f32.xlu1 %v4434_v31 }
 0x6d4   :  { %v4436_v53 = vpop.xlane.xlu1 %4435 }
 0x6d5   :  { %5961 = vlog2.f32 %v4436_v53 }
 0x6df   :  { %v5962_v42 = vpop.eup %5961 }
 0x6e0   :  { %v4438_v41 = vmul.f32 0.6931472, %v5962_v42 }
 0x6e2   :  { %v4439_v34 = vadd.f32 %v4438_v41, %v4430_v10 }
 0x6e4   :  { %v4440_v44 = vsub.f32 %v4423_v37, %v4439_v34 }
 0x6e6   :  { %4441 = vst [vmem:[#allocation2] sm:$0x3] %v4440_v44 }
 0x6e7   :  { %5974 = shalt.err (!%p5971_p4)
}
 0x6e8   :  { %s5975_s17 = scalar_lea.hbm %s7839_s7, 32 }
 0x6e9   :  { %p5976_p5 = scmp.ne.s32.totalorder %s7839_s7, %s5975_s17  ;;  %p5979_p6 = scmp.lt.u32.totalorder %s5975_s17, %s7839_s7 }
 0x6eb   :  { %p5981_p7 = pnand %p5979_p6, %p5976_p5 }
 0x6ed   :  { %5984 = shalt.err (!%p5981_p7)
}
 0x6ee   :  { %4451 = dma.vmem_to_hbm [thread:$0]  %s4449_s13, 32, %s7839_s7, [#allocation3]  }
 0x6ef   :  { %5985 = dma.done.wait [#allocation3], 32  }
 0x6f0   :  { %5986 = vsyncadd [#allocation3], 4294967264 }
 0x6f1   :  { %4455 = vsyncpa [#allocation3], 1 }

</bundles_post_ra>
